<compile_context>
chip_gen: v5e
topology: v5e:2x2
jax: 0.10.0
libtpu: 0.0.40
codegen_flags: <defaults>
</compile_context>

<pallas_src>
import math

import jax
import jax.numpy as jnp
from jax import lax
from jax.experimental import pallas as pl
from jax.experimental.pallas import tpu as pltpu


# ----------------------------------------------------------------------------
# Layout helpers
# ----------------------------------------------------------------------------
def _gate_pitch(hidden_size):
    """Lane pitch of one gate block: [gate_fwd(H) | gate_bwd(H) | optional 0-pad].
    2H < 128  -> pitch = 2H exactly (no wasted lanes; mid-vreg slices are cheap).
    2H >= 128 -> pitch = 2H rounded up to the 128-lane tile (lane-aligned slices)."""
    two_h = 2 * hidden_size
    return two_h if two_h < 128 else ((two_h + 127) // 128) * 128


_VMEM_SPEC = pl.BlockSpec(memory_space=pltpu.MemorySpace.VMEM)


# ----------------------------------------------------------------------------
# Fused Pallas kernel (all layers + FC head in one pallas_call)
# ----------------------------------------------------------------------------
def _make_fused_kernel(num_layers, hidden_size, gate_pitch, T, B):
    H, GP = hidden_size, gate_pitch

    def kernel(*refs):
        x_ref = refs[0]                                  # (T*B, F0)  f32
        layer_refs = refs[1:1 + 3 * num_layers]          # (wih, whh, bias) per layer
        w_fc_ref = refs[1 + 3 * num_layers]              # (2H, C)    f32
        b_fc_ref = refs[2 + 3 * num_layers]              # (1, C)     f32
        out_ref = refs[3 + 3 * num_layers]               # (B, C)     f32
        gproj_ref, seq_ref = refs[4 + 3 * num_layers:]   # VMEM scratch

        cur_in = x_ref
        for layer in range(num_layers):
            wih_ref, whh_ref, b_ref = layer_refs[3 * layer:3 * layer + 3]

            # --- Hoisted input projection: ALL timesteps, BOTH directions, one
            #     bf16 MXU matmul; fused (b_ih + b_hh) bias folded in.
            #     gproj lanes [0, 4*GP) = fwd gates, [4*GP, 8*GP) = bwd gates.
            xin = cur_in[...].astype(jnp.bfloat16)       # flat (T*B, F): no reshape
            gproj_ref[...] = (
                jnp.dot(xin, wih_ref[...], preferred_element_type=jnp.float32)
                + b_ref[...])

            # --- Interleaved fwd/bwd recurrence, statically unrolled (T small).
            #     h / c pack both directions: lanes [0,H)=fwd, [H,2H)=bwd, rest 0.
            h = jnp.zeros((B, GP), jnp.float32)
            c = jnp.zeros((B, GP), jnp.float32)
            for t in range(T):
                rt = T - 1 - t
                rec = jnp.dot(h.astype(jnp.bfloat16), whh_ref[...],
                              preferred_element_type=jnp.float32)
                gates = (gproj_ref[t * B:(t + 1) * B, 0:4 * GP]
                         + gproj_ref[rt * B:(rt + 1) * B, 4 * GP:8 * GP]
                         + rec)
                # i/f/o columns were pre-scaled by 0.5 at pack time, so ONE tanh
                # over the whole gate tensor yields sigmoid via 0.5*t + 0.5.
                tg = jnp.tanh(gates)
                i_g = 0.5 * tg[:, 0 * GP:1 * GP] + 0.5
                f_g = 0.5 * tg[:, 1 * GP:2 * GP] + 0.5
                g_g = tg[:, 2 * GP:3 * GP]
                o_g = 0.5 * tg[:, 3 * GP:4 * GP] + 0.5
                c = f_g * c + i_g * g_g                  # pad lanes stay exactly 0
                h = o_g * jnp.tanh(c)                    # pad lanes stay exactly 0
                # single concatenated layer output (fwd half | bwd half), flat rows
                seq_ref[t * B:(t + 1) * B, 0:H] = h[:, 0:H]            # fwd @ t
                seq_ref[rt * B:(rt + 1) * B, H:2 * H] = h[:, H:2 * H]  # bwd @ rt
            cur_in = seq_ref                             # next layer input (view)

        # --- FC + LeakyReLU + Sigmoid head, fused into the same kernel (kept f32).
        last = seq_ref[(T - 1) * B:T * B, :]             # == torch out[:, -1, :]
        y = (jnp.dot(last, w_fc_ref[...], preferred_element_type=jnp.float32)
             + b_fc_ref[...])
        y = jnp.where(y >= 0.0, y, 0.01 * y)             # LeakyReLU (slope 0.01)
        out_ref[...] = 0.5 * jnp.tanh(0.5 * y) + 0.5     # sigmoid via one tanh

    return kernel


# ----------------------------------------------------------------------------
# Wrapper
# ----------------------------------------------------------------------------
@jax.jit
def bilstm_forward(x, packed_layers, w_fc_t, b_fc_row):
    """x: (B, T, input_size) batch-first (or (B, input_size), like the module)."""
    if x.ndim == 2:                                      # torch: unsqueeze(1)
        x = x[:, None, :]
    B, T, F0 = x.shape
    H = w_fc_t.shape[0] // 2
    C = w_fc_t.shape[1]
    GP = _gate_pitch(H)
    num_layers = len(packed_layers)

    # pad batch to the 8-sublane f32 tile; padded rows are sliced off at the end
    B_pad = ((max(B, 8) + 7) // 8) * 8
    x_tm = jnp.transpose(x, (1, 0, 2)).astype(jnp.float32)      # (T, B, F)
    if B_pad != B:
        x_tm = jnp.pad(x_tm, ((0, 0), (0, B_pad - B), (0, 0)))
    x_flat = x_tm.reshape(T * B_pad, F0)                 # flat time-major rows

    flat_inputs = [x_flat]
    for layer_w in packed_layers:
        flat_inputs.extend(layer_w)
    flat_inputs.extend([w_fc_t, b_fc_row])

    # VMEM budget from actual scratch + weight + I/O bytes (with 2x headroom).
    scratch_bytes = 4 * (T * B_pad * 8 * GP + T * B_pad * 2 * H)
    static_bytes = sum(int(a.size) * a.dtype.itemsize for a in flat_inputs)
    static_bytes += 4 * B_pad * C
    vmem_limit = int(min(100 * 1024 * 1024,
                         max(2 * (scratch_bytes + static_bytes), 4 * 1024 * 1024)))

    out = pl.pallas_call(
        _make_fused_kernel(num_layers, H, GP, T, B_pad),
        out_shape=jax.ShapeDtypeStruct((B_pad, C), jnp.float32),
        in_specs=[_VMEM_SPEC] * len(flat_inputs),
        out_specs=_VMEM_SPEC,
        scratch_shapes=[
            pltpu.VMEM((T * B_pad, 8 * GP), jnp.float32),  # fused fwd|bwd input proj
            pltpu.VMEM((T * B_pad, 2 * H), jnp.float32),   # layer output sequence
        ],
        compiler_params=pltpu.CompilerParams(vmem_limit_bytes=vmem_limit),
    )(*flat_inputs)
    return out[:B]


# ----------------------------------------------------------------------------
# PyTorch-style parameter init (natural nn.LSTM / nn.Linear layout)
# ----------------------------------------------------------------------------
def init_params(key, input_size, hidden_size, num_layers, num_classes):
    k_lstm = 1.0 / math.sqrt(hidden_size)
    layers = []
    for layer in range(num_layers):
        in_f = input_size if layer == 0 else 2 * hidden_size
        dirs = []
        for _ in range(2):                               # forward, backward
            key, k1, k2, k3, k4 = jax.random.split(key, 5)
            w_ih = jax.random.uniform(k1, (4 * hidden_size, in_f),
                                      minval=-k_lstm, maxval=k_lstm)
            w_hh = jax.random.uniform(k2, (4 * hidden_size, hidden_size),
                                      minval=-k_lstm, maxval=k_lstm)
            b_ih = jax.random.uniform(k3, (4 * hidden_size,),
                                      minval=-k_lstm, maxval=k_lstm)
            b_hh = jax.random.uniform(k4, (4 * hidden_size,),
                                      minval=-k_lstm, maxval=k_lstm)
            dirs.append((w_ih, w_hh, b_ih, b_hh))
        layers.append(tuple(dirs))

    k_fc = 1.0 / math.sqrt(2 * hidden_size)
    key, k1, k2 = jax.random.split(key, 3)
    w_fc = jax.random.uniform(k1, (num_classes, 2 * hidden_size),
                              minval=-k_fc, maxval=k_fc)
    b_fc = jax.random.uniform(k2, (num_classes,), minval=-k_fc, maxval=k_fc)
    return layers, w_fc, b_fc


def pack_params(raw_layers, w_fc, b_fc, hidden_size):
    """Repack natural PyTorch weights into the kernel layout.

    Per layer the kernel consumes:
      wih_p  (F, 8*GP)  bf16  fused input->gate: lanes [0,4GP)=fwd, [4GP,8GP)=bwd
      whh_p  (GP, 4*GP) bf16  block-diagonal hidden->gate for both directions
      bias_p (1, 8*GP)  f32   fused b_ih + b_hh (both dirs) in the fwd half only
    Gate order k matches PyTorch (i, f, g, o).  The 0.5 sigmoid pre-scale is
    folded into the i/f/o columns.  All padding lanes/rows are exactly zero
    (required for the "pad lanes stay 0" invariant in the kernel).
    """
    H = hidden_size
    GP = _gate_pitch(H)
    gate_scale = (0.5, 0.5, 1.0, 0.5)                    # i, f, g, o
    packed = []
    for (fwd, bwd) in raw_layers:
        w_ih_f, w_hh_f, b_ih_f, b_hh_f = [jnp.asarray(a, jnp.float32) for a in fwd]
        w_ih_b, w_hh_b, b_ih_b, b_hh_b = [jnp.asarray(a, jnp.float32) for a in bwd]
        in_f = w_ih_f.shape[1]
        wih_p = jnp.zeros((in_f, 8 * GP), jnp.float32)
        whh_p = jnp.zeros((GP, 4 * GP), jnp.float32)
        bias_p = jnp.zeros((1, 8 * GP), jnp.float32)
        for k in range(4):
            s = gate_scale[k]
            g = slice(k * H, (k + 1) * H)
            lo_f = k * GP                                # fwd lanes in gate block k
            lo_b = k * GP + H                            # bwd lanes in gate block k
            wih_p = wih_p.at[:, lo_f:lo_f + H].set(s * w_ih_f[g, :].T)
            wih_p = wih_p.at[:, 4 * GP + lo_b:4 * GP + lo_b + H].set(s * w_ih_b[g, :].T)
            whh_p = whh_p.at[0:H, lo_f:lo_f + H].set(s * w_hh_f[g, :].T)
            whh_p = whh_p.at[H:2 * H, lo_b:lo_b + H].set(s * w_hh_b[g, :].T)
            bias_p = bias_p.at[0, lo_f:lo_f + H].set(s * (b_ih_f[g] + b_hh_f[g]))
            bias_p = bias_p.at[0, lo_b:lo_b + H].set(s * (b_ih_b[g] + b_hh_b[g]))
        packed.append((wih_p.astype(jnp.bfloat16),
                       whh_p.astype(jnp.bfloat16),
                       bias_p))
    w_fc_t = jnp.asarray(w_fc, jnp.float32).T            # (2H, C)
    b_fc_row = jnp.asarray(b_fc, jnp.float32)[None, :]   # (1, C)
    return packed, w_fc_t, b_fc_row


# ----------------------------------------------------------------------------
# Pure-JAX reference (PyTorch semantics, f32) for correctness check
# ----------------------------------------------------------------------------
def reference_forward(x, raw_layers, w_fc, b_fc, hidden_size):
    H = hidden_size
    if x.ndim == 2:
        x = x[:, None, :]
    x_tm = jnp.transpose(x, (1, 0, 2)).astype(jnp.float32)   # (T, B, F)
    B = x_tm.shape[1]

    def make_cell(w_ih, w_hh, b_ih, b_hh):
        def cell(carry, x_t):
            h, c = carry
            g = x_t @ w_ih.T + h @ w_hh.T + b_ih + b_hh
            i = jax.nn.sigmoid(g[:, 0 * H:1 * H])
            f = jax.nn.sigmoid(g[:, 1 * H:2 * H])
            gg = jnp.tanh(g[:, 2 * H:3 * H])
            o = jax.nn.sigmoid(g[:, 3 * H:4 * H])
            c = f * c + i * gg
            h = o * jnp.tanh(c)
            return (h, c), h
        return cell

    for (fwd, bwd) in raw_layers:
        init = (jnp.zeros((B, H), jnp.float32), jnp.zeros((B, H), jnp.float32))
        _, out_f = lax.scan(make_cell(*fwd), init, x_tm)
        _, out_b_rev = lax.scan(make_cell(*bwd), init, x_tm[::-1])
        x_tm = jnp.concatenate([out_f, out_b_rev[::-1]], axis=-1)

    last = x_tm[-1]
    y = last @ w_fc.T + b_fc
    y = jnp.where(y >= 0, y, 0.01 * y)
    return jax.nn.sigmoid(y)


# ----------------------------------------------------------------------------
if __name__ == "__main__":
    input_size = 16
    hidden_size = 32
    num_layers = 2
    num_classes = 5
    batch = 4
    seq_len = 8

    key = jax.random.PRNGKey(0)
    key, kx = jax.random.split(key)
    x = jax.random.normal(kx, (batch, seq_len, input_size), dtype=jnp.float32)

    raw_layers, w_fc, b_fc = init_params(key, input_size, hidden_size,
                                         num_layers, num_classes)
    packed_layers, w_fc_t, b_fc_row = pack_params(raw_layers, w_fc, b_fc,
                                                  hidden_size)

    out = bilstm_forward(x, packed_layers, w_fc_t, b_fc_row)
    out = jax.block_until_ready(out)

    ref = reference_forward(x, raw_layers, w_fc, b_fc, hidden_size)
    assert out.shape == (batch, num_classes)
    # bf16 MXU operands in the kernel vs f32 reference -> relaxed tolerance.
    assert jnp.allclose(out, ref, atol=1e-2, rtol=1e-2), (out, ref)

    print("KERNEL_OK")
</pallas_src>

<mosaic_0001>
module attributes {stable_mosaic.version = 11 : i64} {
  func.func @kernel(%arg0: memref<64x16xf32, #tpu.memory_space<vmem>>, %arg1: memref<16x512xbf16, #tpu.memory_space<vmem>>, %arg2: memref<64x256xbf16, #tpu.memory_space<vmem>>, %arg3: memref<1x512xf32, #tpu.memory_space<vmem>>, %arg4: memref<64x512xbf16, #tpu.memory_space<vmem>>, %arg5: memref<64x256xbf16, #tpu.memory_space<vmem>>, %arg6: memref<1x512xf32, #tpu.memory_space<vmem>>, %arg7: memref<64x5xf32, #tpu.memory_space<vmem>>, %arg8: memref<1x5xf32, #tpu.memory_space<vmem>>, %arg9: memref<8x5xf32, #tpu.memory_space<vmem>>, %arg10: memref<64x512xf32, #tpu.memory_space<vmem>>, %arg11: memref<64x64xf32, #tpu.memory_space<vmem>>) attributes {dimension_semantics = [], scalar_prefetch = 0 : i64, scratch_operands = 2 : i64, tpu.core_type = #tpu.core_type<tc>} {
    %c0 = arith.constant 0 : index
    %c0_0 = arith.constant 0 : index
    %0 = vector.load %arg0[%c0, %c0_0] : memref<64x16xf32, #tpu.memory_space<vmem>>, vector<64x16xf32>
    %1 = arith.truncf %0 : vector<64x16xf32> to vector<64x16xbf16>
    %c0_1 = arith.constant 0 : index
    %c0_2 = arith.constant 0 : index
    %2 = vector.load %arg1[%c0_1, %c0_2] : memref<16x512xbf16, #tpu.memory_space<vmem>>, vector<16x512xbf16>
    %cst = arith.constant dense<0.000000e+00> : vector<64x512xf32>
    %3 = tpu.matmul %1, %2, %cst {dimension_numbers = #tpu.dot_dimension_numbers<[1], [0], [0], [1], [0, 0, 1, 1], [], []>} : vector<64x16xbf16>, vector<16x512xbf16>, vector<64x512xf32> -> vector<64x512xf32>
    %c0_3 = arith.constant 0 : index
    %c0_4 = arith.constant 0 : index
    %4 = vector.load %arg3[%c0_3, %c0_4] : memref<1x512xf32, #tpu.memory_space<vmem>>, vector<1x512xf32>
    %5 = vector.broadcast %4 : vector<1x512xf32> to vector<64x512xf32>
    %6 = arith.addf %3, %5 : vector<64x512xf32>
    %c0_5 = arith.constant 0 : index
    %c0_6 = arith.constant 0 : index
    %7 = vector.load %arg10[%c0_5, %c0_6] : memref<64x512xf32, #tpu.memory_space<vmem>>, vector<64x512xf32>
    tpu.vector_store %arg10[%c0_5, %c0_6], %6 {strides = array<i32>} : memref<64x512xf32, #tpu.memory_space<vmem>>, vector<64x512xf32>,
    %cst_7 = arith.constant 0.000000e+00 : f32
    %8 = vector.broadcast %cst_7 : f32 to vector<8x64xf32>
    %cst_8 = arith.constant 0.000000e+00 : f32
    %9 = vector.broadcast %cst_8 : f32 to vector<8x64xf32>
    %10 = arith.truncf %8 : vector<8x64xf32> to vector<8x64xbf16>
    %c0_9 = arith.constant 0 : index
    %c0_10 = arith.constant 0 : index
    %11 = vector.load %arg2[%c0_9, %c0_10] : memref<64x256xbf16, #tpu.memory_space<vmem>>, vector<64x256xbf16>
    %cst_11 = arith.constant dense<0.000000e+00> : vector<8x256xf32>
    %12 = tpu.matmul %10, %11, %cst_11 {dimension_numbers = #tpu.dot_dimension_numbers<[1], [0], [0], [1], [0, 0, 1, 1], [], []>} : vector<8x64xbf16>, vector<64x256xbf16>, vector<8x256xf32> -> vector<8x256xf32>
    %c0_12 = arith.constant 0 : index
    %c0_13 = arith.constant 0 : index
    %13 = vector.load %arg10[%c0_12, %c0_13] : memref<64x512xf32, #tpu.memory_space<vmem>>, vector<8x256xf32>
    %c56 = arith.constant 56 : index
    %c256 = arith.constant 256 : index
    %14 = vector.load %arg10[%c56, %c256] : memref<64x512xf32, #tpu.memory_space<vmem>>, vector<8x256xf32>
    %15 = arith.addf %13, %14 : vector<8x256xf32>
    %16 = arith.addf %15, %12 : vector<8x256xf32>
    %17 = math.tanh %16 : vector<8x256xf32>
    %18 = vector.extract_strided_slice %17 {offsets = [0, 0], sizes = [8, 64], strides = [1, 1]} : vector<8x256xf32> to vector<8x64xf32>
    %cst_14 = arith.constant 5.000000e-01 : f32
    %19 = vector.broadcast %cst_14 : f32 to vector<8x64xf32>
    %20 = arith.mulf %19, %18 : vector<8x64xf32>
    %cst_15 = arith.constant 5.000000e-01 : f32
    %21 = vector.broadcast %cst_15 : f32 to vector<8x64xf32>
    %22 = arith.addf %20, %21 : vector<8x64xf32>
    %23 = vector.extract_strided_slice %17 {offsets = [0, 64], sizes = [8, 64], strides = [1, 1]} : vector<8x256xf32> to vector<8x64xf32>
    %cst_16 = arith.constant 5.000000e-01 : f32
    %24 = vector.broadcast %cst_16 : f32 to vector<8x64xf32>
    %25 = arith.mulf %24, %23 : vector<8x64xf32>
    %cst_17 = arith.constant 5.000000e-01 : f32
    %26 = vector.broadcast %cst_17 : f32 to vector<8x64xf32>
    %27 = arith.addf %25, %26 : vector<8x64xf32>
    %28 = vector.extract_strided_slice %17 {offsets = [0, 128], sizes = [8, 64], strides = [1, 1]} : vector<8x256xf32> to vector<8x64xf32>
    %29 = vector.extract_strided_slice %17 {offsets = [0, 192], sizes = [8, 64], strides = [1, 1]} : vector<8x256xf32> to vector<8x64xf32>
    %cst_18 = arith.constant 5.000000e-01 : f32
    %30 = vector.broadcast %cst_18 : f32 to vector<8x64xf32>
    %31 = arith.mulf %30, %29 : vector<8x64xf32>
    %cst_19 = arith.constant 5.000000e-01 : f32
    %32 = vector.broadcast %cst_19 : f32 to vector<8x64xf32>
    %33 = arith.addf %31, %32 : vector<8x64xf32>
    %34 = arith.mulf %27, %9 : vector<8x64xf32>
    %35 = arith.mulf %22, %28 : vector<8x64xf32>
    %36 = arith.addf %34, %35 : vector<8x64xf32>
    %37 = math.tanh %36 : vector<8x64xf32>
    %38 = arith.mulf %33, %37 : vector<8x64xf32>
    %39 = vector.extract_strided_slice %38 {offsets = [0, 0], sizes = [8, 32], strides = [1, 1]} : vector<8x64xf32> to vector<8x32xf32>
    %c0_20 = arith.constant 0 : index
    %c0_21 = arith.constant 0 : index
    %40 = vector.load %arg11[%c0_20, %c0_21] : memref<64x64xf32, #tpu.memory_space<vmem>>, vector<8x32xf32>
    tpu.vector_store %arg11[%c0_20, %c0_21], %39 {strides = array<i32>} : memref<64x64xf32, #tpu.memory_space<vmem>>, vector<8x32xf32>,
    %41 = vector.extract_strided_slice %38 {offsets = [0, 32], sizes = [8, 32], strides = [1, 1]} : vector<8x64xf32> to vector<8x32xf32>
    %c56_22 = arith.constant 56 : index
    %c32 = arith.constant 32 : index
    %42 = vector.load %arg11[%c56_22, %c32] : memref<64x64xf32, #tpu.memory_space<vmem>>, vector<8x32xf32>
    tpu.vector_store %arg11[%c56_22, %c32], %41 {strides = array<i32>} : memref<64x64xf32, #tpu.memory_space<vmem>>, vector<8x32xf32>,
    %43 = arith.truncf %38 : vector<8x64xf32> to vector<8x64xbf16>
    %c0_23 = arith.constant 0 : index
    %c0_24 = arith.constant 0 : index
    %44 = vector.load %arg2[%c0_23, %c0_24] : memref<64x256xbf16, #tpu.memory_space<vmem>>, vector<64x256xbf16>
    %cst_25 = arith.constant dense<0.000000e+00> : vector<8x256xf32>
    %45 = tpu.matmul %43, %44, %cst_25 {dimension_numbers = #tpu.dot_dimension_numbers<[1], [0], [0], [1], [0, 0, 1, 1], [], []>} : vector<8x64xbf16>, vector<64x256xbf16>, vector<8x256xf32> -> vector<8x256xf32>
    %c8 = arith.constant 8 : index
    %c0_26 = arith.constant 0 : index
    %46 = vector.load %arg10[%c8, %c0_26] : memref<64x512xf32, #tpu.memory_space<vmem>>, vector<8x256xf32>
    %c48 = arith.constant 48 : index
    %c256_27 = arith.constant 256 : index
    %47 = vector.load %arg10[%c48, %c256_27] : memref<64x512xf32, #tpu.memory_space<vmem>>, vector<8x256xf32>
    %48 = arith.addf %46, %47 : vector<8x256xf32>
    %49 = arith.addf %48, %45 : vector<8x256xf32>
    %50 = math.tanh %49 : vector<8x256xf32>
    %51 = vector.extract_strided_slice %50 {offsets = [0, 0], sizes = [8, 64], strides = [1, 1]} : vector<8x256xf32> to vector<8x64xf32>
    %cst_28 = arith.constant 5.000000e-01 : f32
    %52 = vector.broadcast %cst_28 : f32 to vector<8x64xf32>
    %53 = arith.mulf %52, %51 : vector<8x64xf32>
    %cst_29 = arith.constant 5.000000e-01 : f32
    %54 = vector.broadcast %cst_29 : f32 to vector<8x64xf32>
    %55 = arith.addf %53, %54 : vector<8x64xf32>
    %56 = vector.extract_strided_slice %50 {offsets = [0, 64], sizes = [8, 64], strides = [1, 1]} : vector<8x256xf32> to vector<8x64xf32>
    %cst_30 = arith.constant 5.000000e-01 : f32
    %57 = vector.broadcast %cst_30 : f32 to vector<8x64xf32>
    %58 = arith.mulf %57, %56 : vector<8x64xf32>
    %cst_31 = arith.constant 5.000000e-01 : f32
    %59 = vector.broadcast %cst_31 : f32 to vector<8x64xf32>
    %60 = arith.addf %58, %59 : vector<8x64xf32>
    %61 = vector.extract_strided_slice %50 {offsets = [0, 128], sizes = [8, 64], strides = [1, 1]} : vector<8x256xf32> to vector<8x64xf32>
    %62 = vector.extract_strided_slice %50 {offsets = [0, 192], sizes = [8, 64], strides = [1, 1]} : vector<8x256xf32> to vector<8x64xf32>
    %cst_32 = arith.constant 5.000000e-01 : f32
    %63 = vector.broadcast %cst_32 : f32 to vector<8x64xf32>
    %64 = arith.mulf %63, %62 : vector<8x64xf32>
    %cst_33 = arith.constant 5.000000e-01 : f32
    %65 = vector.broadcast %cst_33 : f32 to vector<8x64xf32>
    %66 = arith.addf %64, %65 : vector<8x64xf32>
    %67 = arith.mulf %60, %36 : vector<8x64xf32>
    %68 = arith.mulf %55, %61 : vector<8x64xf32>
    %69 = arith.addf %67, %68 : vector<8x64xf32>
    %70 = math.tanh %69 : vector<8x64xf32>
    %71 = arith.mulf %66, %70 : vector<8x64xf32>
    %72 = vector.extract_strided_slice %71 {offsets = [0, 0], sizes = [8, 32], strides = [1, 1]} : vector<8x64xf32> to vector<8x32xf32>
    %c8_34 = arith.constant 8 : index
    %c0_35 = arith.constant 0 : index
    %73 = vector.load %arg11[%c8_34, %c0_35] : memref<64x64xf32, #tpu.memory_space<vmem>>, vector<8x32xf32>
    tpu.vector_store %arg11[%c8_34, %c0_35], %72 {strides = array<i32>} : memref<64x64xf32, #tpu.memory_space<vmem>>, vector<8x32xf32>,
    %74 = vector.extract_strided_slice %71 {offsets = [0, 32], sizes = [8, 32], strides = [1, 1]} : vector<8x64xf32> to vector<8x32xf32>
    %c48_36 = arith.constant 48 : index
    %c32_37 = arith.constant 32 : index
    %75 = vector.load %arg11[%c48_36, %c32_37] : memref<64x64xf32, #tpu.memory_space<vmem>>, vector<8x32xf32>
    tpu.vector_store %arg11[%c48_36, %c32_37], %74 {strides = array<i32>} : memref<64x64xf32, #tpu.memory_space<vmem>>, vector<8x32xf32>,
    %76 = arith.truncf %71 : vector<8x64xf32> to vector<8x64xbf16>
    %c0_38 = arith.constant 0 : index
    %c0_39 = arith.constant 0 : index
    %77 = vector.load %arg2[%c0_38, %c0_39] : memref<64x256xbf16, #tpu.memory_space<vmem>>, vector<64x256xbf16>
    %cst_40 = arith.constant dense<0.000000e+00> : vector<8x256xf32>
    %78 = tpu.matmul %76, %77, %cst_40 {dimension_numbers = #tpu.dot_dimension_numbers<[1], [0], [0], [1], [0, 0, 1, 1], [], []>} : vector<8x64xbf16>, vector<64x256xbf16>, vector<8x256xf32> -> vector<8x256xf32>
    %c16 = arith.constant 16 : index
    %c0_41 = arith.constant 0 : index
    %79 = vector.load %arg10[%c16, %c0_41] : memref<64x512xf32, #tpu.memory_space<vmem>>, vector<8x256xf32>
    %c40 = arith.constant 40 : index
    %c256_42 = arith.constant 256 : index
    %80 = vector.load %arg10[%c40, %c256_42] : memref<64x512xf32, #tpu.memory_space<vmem>>, vector<8x256xf32>
    %81 = arith.addf %79, %80 : vector<8x256xf32>
    %82 = arith.addf %81, %78 : vector<8x256xf32>
    %83 = math.tanh %82 : vector<8x256xf32>
    %84 = vector.extract_strided_slice %83 {offsets = [0, 0], sizes = [8, 64], strides = [1, 1]} : vector<8x256xf32> to vector<8x64xf32>
    %cst_43 = arith.constant 5.000000e-01 : f32
    %85 = vector.broadcast %cst_43 : f32 to vector<8x64xf32>
    %86 = arith.mulf %85, %84 : vector<8x64xf32>
    %cst_44 = arith.constant 5.000000e-01 : f32
    %87 = vector.broadcast %cst_44 : f32 to vector<8x64xf32>
    %88 = arith.addf %86, %87 : vector<8x64xf32>
    %89 = vector.extract_strided_slice %83 {offsets = [0, 64], sizes = [8, 64], strides = [1, 1]} : vector<8x256xf32> to vector<8x64xf32>
    %cst_45 = arith.constant 5.000000e-01 : f32
    %90 = vector.broadcast %cst_45 : f32 to vector<8x64xf32>
    %91 = arith.mulf %90, %89 : vector<8x64xf32>
    %cst_46 = arith.constant 5.000000e-01 : f32
    %92 = vector.broadcast %cst_46 : f32 to vector<8x64xf32>
    %93 = arith.addf %91, %92 : vector<8x64xf32>
    %94 = vector.extract_strided_slice %83 {offsets = [0, 128], sizes = [8, 64], strides = [1, 1]} : vector<8x256xf32> to vector<8x64xf32>
    %95 = vector.extract_strided_slice %83 {offsets = [0, 192], sizes = [8, 64], strides = [1, 1]} : vector<8x256xf32> to vector<8x64xf32>
    %cst_47 = arith.constant 5.000000e-01 : f32
    %96 = vector.broadcast %cst_47 : f32 to vector<8x64xf32>
    %97 = arith.mulf %96, %95 : vector<8x64xf32>
    %cst_48 = arith.constant 5.000000e-01 : f32
    %98 = vector.broadcast %cst_48 : f32 to vector<8x64xf32>
    %99 = arith.addf %97, %98 : vector<8x64xf32>
    %100 = arith.mulf %93, %69 : vector<8x64xf32>
    %101 = arith.mulf %88, %94 : vector<8x64xf32>
    %102 = arith.addf %100, %101 : vector<8x64xf32>
    %103 = math.tanh %102 : vector<8x64xf32>
    %104 = arith.mulf %99, %103 : vector<8x64xf32>
    %105 = vector.extract_strided_slice %104 {offsets = [0, 0], sizes = [8, 32], strides = [1, 1]} : vector<8x64xf32> to vector<8x32xf32>
    %c16_49 = arith.constant 16 : index
    %c0_50 = arith.constant 0 : index
    %106 = vector.load %arg11[%c16_49, %c0_50] : memref<64x64xf32, #tpu.memory_space<vmem>>, vector<8x32xf32>
    tpu.vector_store %arg11[%c16_49, %c0_50], %105 {strides = array<i32>} : memref<64x64xf32, #tpu.memory_space<vmem>>, vector<8x32xf32>,
    %107 = vector.extract_strided_slice %104 {offsets = [0, 32], sizes = [8, 32], strides = [1, 1]} : vector<8x64xf32> to vector<8x32xf32>
    %c40_51 = arith.constant 40 : index
    %c32_52 = arith.constant 32 : index
    %108 = vector.load %arg11[%c40_51, %c32_52] : memref<64x64xf32, #tpu.memory_space<vmem>>, vector<8x32xf32>
    tpu.vector_store %arg11[%c40_51, %c32_52], %107 {strides = array<i32>} : memref<64x64xf32, #tpu.memory_space<vmem>>, vector<8x32xf32>,
    %109 = arith.truncf %104 : vector<8x64xf32> to vector<8x64xbf16>
    %c0_53 = arith.constant 0 : index
    %c0_54 = arith.constant 0 : index
    %110 = vector.load %arg2[%c0_53, %c0_54] : memref<64x256xbf16, #tpu.memory_space<vmem>>, vector<64x256xbf16>
    %cst_55 = arith.constant dense<0.000000e+00> : vector<8x256xf32>
    %111 = tpu.matmul %109, %110, %cst_55 {dimension_numbers = #tpu.dot_dimension_numbers<[1], [0], [0], [1], [0, 0, 1, 1], [], []>} : vector<8x64xbf16>, vector<64x256xbf16>, vector<8x256xf32> -> vector<8x256xf32>
    %c24 = arith.constant 24 : index
    %c0_56 = arith.constant 0 : index
    %112 = vector.load %arg10[%c24, %c0_56] : memref<64x512xf32, #tpu.memory_space<vmem>>, vector<8x256xf32>
    %c32_57 = arith.constant 32 : index
    %c256_58 = arith.constant 256 : index
    %113 = vector.load %arg10[%c32_57, %c256_58] : memref<64x512xf32, #tpu.memory_space<vmem>>, vector<8x256xf32>
    %114 = arith.addf %112, %113 : vector<8x256xf32>
    %115 = arith.addf %114, %111 : vector<8x256xf32>
    %116 = math.tanh %115 : vector<8x256xf32>
    %117 = vector.extract_strided_slice %116 {offsets = [0, 0], sizes = [8, 64], strides = [1, 1]} : vector<8x256xf32> to vector<8x64xf32>
    %cst_59 = arith.constant 5.000000e-01 : f32
    %118 = vector.broadcast %cst_59 : f32 to vector<8x64xf32>
    %119 = arith.mulf %118, %117 : vector<8x64xf32>
    %cst_60 = arith.constant 5.000000e-01 : f32
    %120 = vector.broadcast %cst_60 : f32 to vector<8x64xf32>
    %121 = arith.addf %119, %120 : vector<8x64xf32>
    %122 = vector.extract_strided_slice %116 {offsets = [0, 64], sizes = [8, 64], strides = [1, 1]} : vector<8x256xf32> to vector<8x64xf32>
    %cst_61 = arith.constant 5.000000e-01 : f32
    %123 = vector.broadcast %cst_61 : f32 to vector<8x64xf32>
    %124 = arith.mulf %123, %122 : vector<8x64xf32>
    %cst_62 = arith.constant 5.000000e-01 : f32
    %125 = vector.broadcast %cst_62 : f32 to vector<8x64xf32>
    %126 = arith.addf %124, %125 : vector<8x64xf32>
    %127 = vector.extract_strided_slice %116 {offsets = [0, 128], sizes = [8, 64], strides = [1, 1]} : vector<8x256xf32> to vector<8x64xf32>
    %128 = vector.extract_strided_slice %116 {offsets = [0, 192], sizes = [8, 64], strides = [1, 1]} : vector<8x256xf32> to vector<8x64xf32>
    %cst_63 = arith.constant 5.000000e-01 : f32
    %129 = vector.broadcast %cst_63 : f32 to vector<8x64xf32>
    %130 = arith.mulf %129, %128 : vector<8x64xf32>
    %cst_64 = arith.constant 5.000000e-01 : f32
    %131 = vector.broadcast %cst_64 : f32 to vector<8x64xf32>
    %132 = arith.addf %130, %131 : vector<8x64xf32>
    %133 = arith.mulf %126, %102 : vector<8x64xf32>
    %134 = arith.mulf %121, %127 : vector<8x64xf32>
    %135 = arith.addf %133, %134 : vector<8x64xf32>
    %136 = math.tanh %135 : vector<8x64xf32>
    %137 = arith.mulf %132, %136 : vector<8x64xf32>
    %138 = vector.extract_strided_slice %137 {offsets = [0, 0], sizes = [8, 32], strides = [1, 1]} : vector<8x64xf32> to vector<8x32xf32>
    %c24_65 = arith.constant 24 : index
    %c0_66 = arith.constant 0 : index
    %139 = vector.load %arg11[%c24_65, %c0_66] : memref<64x64xf32, #tpu.memory_space<vmem>>, vector<8x32xf32>
    tpu.vector_store %arg11[%c24_65, %c0_66], %138 {strides = array<i32>} : memref<64x64xf32, #tpu.memory_space<vmem>>, vector<8x32xf32>,
    %140 = vector.extract_strided_slice %137 {offsets = [0, 32], sizes = [8, 32], strides = [1, 1]} : vector<8x64xf32> to vector<8x32xf32>
    %c32_67 = arith.constant 32 : index
    %c32_68 = arith.constant 32 : index
    %141 = vector.load %arg11[%c32_67, %c32_68] : memref<64x64xf32, #tpu.memory_space<vmem>>, vector<8x32xf32>
    tpu.vector_store %arg11[%c32_67, %c32_68], %140 {strides = array<i32>} : memref<64x64xf32, #tpu.memory_space<vmem>>, vector<8x32xf32>,
    %142 = arith.truncf %137 : vector<8x64xf32> to vector<8x64xbf16>
    %c0_69 = arith.constant 0 : index
    %c0_70 = arith.constant 0 : index
    %143 = vector.load %arg2[%c0_69, %c0_70] : memref<64x256xbf16, #tpu.memory_space<vmem>>, vector<64x256xbf16>
    %cst_71 = arith.constant dense<0.000000e+00> : vector<8x256xf32>
    %144 = tpu.matmul %142, %143, %cst_71 {dimension_numbers = #tpu.dot_dimension_numbers<[1], [0], [0], [1], [0, 0, 1, 1], [], []>} : vector<8x64xbf16>, vector<64x256xbf16>, vector<8x256xf32> -> vector<8x256xf32>
    %c32_72 = arith.constant 32 : index
    %c0_73 = arith.constant 0 : index
    %145 = vector.load %arg10[%c32_72, %c0_73] : memref<64x512xf32, #tpu.memory_space<vmem>>, vector<8x256xf32>
    %c24_74 = arith.constant 24 : index
    %c256_75 = arith.constant 256 : index
    %146 = vector.load %arg10[%c24_74, %c256_75] : memref<64x512xf32, #tpu.memory_space<vmem>>, vector<8x256xf32>
    %147 = arith.addf %145, %146 : vector<8x256xf32>
    %148 = arith.addf %147, %144 : vector<8x256xf32>
    %149 = math.tanh %148 : vector<8x256xf32>
    %150 = vector.extract_strided_slice %149 {offsets = [0, 0], sizes = [8, 64], strides = [1, 1]} : vector<8x256xf32> to vector<8x64xf32>
    %cst_76 = arith.constant 5.000000e-01 : f32
    %151 = vector.broadcast %cst_76 : f32 to vector<8x64xf32>
    %152 = arith.mulf %151, %150 : vector<8x64xf32>
    %cst_77 = arith.constant 5.000000e-01 : f32
    %153 = vector.broadcast %cst_77 : f32 to vector<8x64xf32>
    %154 = arith.addf %152, %153 : vector<8x64xf32>
    %155 = vector.extract_strided_slice %149 {offsets = [0, 64], sizes = [8, 64], strides = [1, 1]} : vector<8x256xf32> to vector<8x64xf32>
    %cst_78 = arith.constant 5.000000e-01 : f32
    %156 = vector.broadcast %cst_78 : f32 to vector<8x64xf32>
    %157 = arith.mulf %156, %155 : vector<8x64xf32>
    %cst_79 = arith.constant 5.000000e-01 : f32
    %158 = vector.broadcast %cst_79 : f32 to vector<8x64xf32>
    %159 = arith.addf %157, %158 : vector<8x64xf32>
    %160 = vector.extract_strided_slice %149 {offsets = [0, 128], sizes = [8, 64], strides = [1, 1]} : vector<8x256xf32> to vector<8x64xf32>
    %161 = vector.extract_strided_slice %149 {offsets = [0, 192], sizes = [8, 64], strides = [1, 1]} : vector<8x256xf32> to vector<8x64xf32>
    %cst_80 = arith.constant 5.000000e-01 : f32
    %162 = vector.broadcast %cst_80 : f32 to vector<8x64xf32>
    %163 = arith.mulf %162, %161 : vector<8x64xf32>
    %cst_81 = arith.constant 5.000000e-01 : f32
    %164 = vector.broadcast %cst_81 : f32 to vector<8x64xf32>
    %165 = arith.addf %163, %164 : vector<8x64xf32>
    %166 = arith.mulf %159, %135 : vector<8x64xf32>
    %167 = arith.mulf %154, %160 : vector<8x64xf32>
    %168 = arith.addf %166, %167 : vector<8x64xf32>
    %169 = math.tanh %168 : vector<8x64xf32>
    %170 = arith.mulf %165, %169 : vector<8x64xf32>
    %171 = vector.extract_strided_slice %170 {offsets = [0, 0], sizes = [8, 32], strides = [1, 1]} : vector<8x64xf32> to vector<8x32xf32>
    %c32_82 = arith.constant 32 : index
    %c0_83 = arith.constant 0 : index
    %172 = vector.load %arg11[%c32_82, %c0_83] : memref<64x64xf32, #tpu.memory_space<vmem>>, vector<8x32xf32>
    tpu.vector_store %arg11[%c32_82, %c0_83], %171 {strides = array<i32>} : memref<64x64xf32, #tpu.memory_space<vmem>>, vector<8x32xf32>,
    %173 = vector.extract_strided_slice %170 {offsets = [0, 32], sizes = [8, 32], strides = [1, 1]} : vector<8x64xf32> to vector<8x32xf32>
    %c24_84 = arith.constant 24 : index
    %c32_85 = arith.constant 32 : index
    %174 = vector.load %arg11[%c24_84, %c32_85] : memref<64x64xf32, #tpu.memory_space<vmem>>, vector<8x32xf32>
    tpu.vector_store %arg11[%c24_84, %c32_85], %173 {strides = array<i32>} : memref<64x64xf32, #tpu.memory_space<vmem>>, vector<8x32xf32>,
    %175 = arith.truncf %170 : vector<8x64xf32> to vector<8x64xbf16>
    %c0_86 = arith.constant 0 : index
    %c0_87 = arith.constant 0 : index
    %176 = vector.load %arg2[%c0_86, %c0_87] : memref<64x256xbf16, #tpu.memory_space<vmem>>, vector<64x256xbf16>
    %cst_88 = arith.constant dense<0.000000e+00> : vector<8x256xf32>
    %177 = tpu.matmul %175, %176, %cst_88 {dimension_numbers = #tpu.dot_dimension_numbers<[1], [0], [0], [1], [0, 0, 1, 1], [], []>} : vector<8x64xbf16>, vector<64x256xbf16>, vector<8x256xf32> -> vector<8x256xf32>
    %c40_89 = arith.constant 40 : index
    %c0_90 = arith.constant 0 : index
    %178 = vector.load %arg10[%c40_89, %c0_90] : memref<64x512xf32, #tpu.memory_space<vmem>>, vector<8x256xf32>
    %c16_91 = arith.constant 16 : index
    %c256_92 = arith.constant 256 : index
    %179 = vector.load %arg10[%c16_91, %c256_92] : memref<64x512xf32, #tpu.memory_space<vmem>>, vector<8x256xf32>
    %180 = arith.addf %178, %179 : vector<8x256xf32>
    %181 = arith.addf %180, %177 : vector<8x256xf32>
    %182 = math.tanh %181 : vector<8x256xf32>
    %183 = vector.extract_strided_slice %182 {offsets = [0, 0], sizes = [8, 64], strides = [1, 1]} : vector<8x256xf32> to vector<8x64xf32>
    %cst_93 = arith.constant 5.000000e-01 : f32
    %184 = vector.broadcast %cst_93 : f32 to vector<8x64xf32>
    %185 = arith.mulf %184, %183 : vector<8x64xf32>
    %cst_94 = arith.constant 5.000000e-01 : f32
    %186 = vector.broadcast %cst_94 : f32 to vector<8x64xf32>
    %187 = arith.addf %185, %186 : vector<8x64xf32>
    %188 = vector.extract_strided_slice %182 {offsets = [0, 64], sizes = [8, 64], strides = [1, 1]} : vector<8x256xf32> to vector<8x64xf32>
    %cst_95 = arith.constant 5.000000e-01 : f32
    %189 = vector.broadcast %cst_95 : f32 to vector<8x64xf32>
    %190 = arith.mulf %189, %188 : vector<8x64xf32>
    %cst_96 = arith.constant 5.000000e-01 : f32
    %191 = vector.broadcast %cst_96 : f32 to vector<8x64xf32>
    %192 = arith.addf %190, %191 : vector<8x64xf32>
    %193 = vector.extract_strided_slice %182 {offsets = [0, 128], sizes = [8, 64], strides = [1, 1]} : vector<8x256xf32> to vector<8x64xf32>
    %194 = vector.extract_strided_slice %182 {offsets = [0, 192], sizes = [8, 64], strides = [1, 1]} : vector<8x256xf32> to vector<8x64xf32>
    %cst_97 = arith.constant 5.000000e-01 : f32
    %195 = vector.broadcast %cst_97 : f32 to vector<8x64xf32>
    %196 = arith.mulf %195, %194 : vector<8x64xf32>
    %cst_98 = arith.constant 5.000000e-01 : f32
    %197 = vector.broadcast %cst_98 : f32 to vector<8x64xf32>
    %198 = arith.addf %196, %197 : vector<8x64xf32>
    %199 = arith.mulf %192, %168 : vector<8x64xf32>
    %200 = arith.mulf %187, %193 : vector<8x64xf32>
    %201 = arith.addf %199, %200 : vector<8x64xf32>
    %202 = math.tanh %201 : vector<8x64xf32>
    %203 = arith.mulf %198, %202 : vector<8x64xf32>
    %204 = vector.extract_strided_slice %203 {offsets = [0, 0], sizes = [8, 32], strides = [1, 1]} : vector<8x64xf32> to vector<8x32xf32>
    %c40_99 = arith.constant 40 : index
    %c0_100 = arith.constant 0 : index
    %205 = vector.load %arg11[%c40_99, %c0_100] : memref<64x64xf32, #tpu.memory_space<vmem>>, vector<8x32xf32>
    tpu.vector_store %arg11[%c40_99, %c0_100], %204 {strides = array<i32>} : memref<64x64xf32, #tpu.memory_space<vmem>>, vector<8x32xf32>,
    %206 = vector.extract_strided_slice %203 {offsets = [0, 32], sizes = [8, 32], strides = [1, 1]} : vector<8x64xf32> to vector<8x32xf32>
    %c16_101 = arith.constant 16 : index
    %c32_102 = arith.constant 32 : index
    %207 = vector.load %arg11[%c16_101, %c32_102] : memref<64x64xf32, #tpu.memory_space<vmem>>, vector<8x32xf32>
    tpu.vector_store %arg11[%c16_101, %c32_102], %206 {strides = array<i32>} : memref<64x64xf32, #tpu.memory_space<vmem>>, vector<8x32xf32>,
    %208 = arith.truncf %203 : vector<8x64xf32> to vector<8x64xbf16>
    %c0_103 = arith.constant 0 : index
    %c0_104 = arith.constant 0 : index
    %209 = vector.load %arg2[%c0_103, %c0_104] : memref<64x256xbf16, #tpu.memory_space<vmem>>, vector<64x256xbf16>
    %cst_105 = arith.constant dense<0.000000e+00> : vector<8x256xf32>
    %210 = tpu.matmul %208, %209, %cst_105 {dimension_numbers = #tpu.dot_dimension_numbers<[1], [0], [0], [1], [0, 0, 1, 1], [], []>} : vector<8x64xbf16>, vector<64x256xbf16>, vector<8x256xf32> -> vector<8x256xf32>
    %c48_106 = arith.constant 48 : index
    %c0_107 = arith.constant 0 : index
    %211 = vector.load %arg10[%c48_106, %c0_107] : memref<64x512xf32, #tpu.memory_space<vmem>>, vector<8x256xf32>
    %c8_108 = arith.constant 8 : index
    %c256_109 = arith.constant 256 : index
    %212 = vector.load %arg10[%c8_108, %c256_109] : memref<64x512xf32, #tpu.memory_space<vmem>>, vector<8x256xf32>
    %213 = arith.addf %211, %212 : vector<8x256xf32>
    %214 = arith.addf %213, %210 : vector<8x256xf32>
    %215 = math.tanh %214 : vector<8x256xf32>
    %216 = vector.extract_strided_slice %215 {offsets = [0, 0], sizes = [8, 64], strides = [1, 1]} : vector<8x256xf32> to vector<8x64xf32>
    %cst_110 = arith.constant 5.000000e-01 : f32
    %217 = vector.broadcast %cst_110 : f32 to vector<8x64xf32>
    %218 = arith.mulf %217, %216 : vector<8x64xf32>
    %cst_111 = arith.constant 5.000000e-01 : f32
    %219 = vector.broadcast %cst_111 : f32 to vector<8x64xf32>
    %220 = arith.addf %218, %219 : vector<8x64xf32>
    %221 = vector.extract_strided_slice %215 {offsets = [0, 64], sizes = [8, 64], strides = [1, 1]} : vector<8x256xf32> to vector<8x64xf32>
    %cst_112 = arith.constant 5.000000e-01 : f32
    %222 = vector.broadcast %cst_112 : f32 to vector<8x64xf32>
    %223 = arith.mulf %222, %221 : vector<8x64xf32>
    %cst_113 = arith.constant 5.000000e-01 : f32
    %224 = vector.broadcast %cst_113 : f32 to vector<8x64xf32>
    %225 = arith.addf %223, %224 : vector<8x64xf32>
    %226 = vector.extract_strided_slice %215 {offsets = [0, 128], sizes = [8, 64], strides = [1, 1]} : vector<8x256xf32> to vector<8x64xf32>
    %227 = vector.extract_strided_slice %215 {offsets = [0, 192], sizes = [8, 64], strides = [1, 1]} : vector<8x256xf32> to vector<8x64xf32>
    %cst_114 = arith.constant 5.000000e-01 : f32
    %228 = vector.broadcast %cst_114 : f32 to vector<8x64xf32>
    %229 = arith.mulf %228, %227 : vector<8x64xf32>
    %cst_115 = arith.constant 5.000000e-01 : f32
    %230 = vector.broadcast %cst_115 : f32 to vector<8x64xf32>
    %231 = arith.addf %229, %230 : vector<8x64xf32>
    %232 = arith.mulf %225, %201 : vector<8x64xf32>
    %233 = arith.mulf %220, %226 : vector<8x64xf32>
    %234 = arith.addf %232, %233 : vector<8x64xf32>
    %235 = math.tanh %234 : vector<8x64xf32>
    %236 = arith.mulf %231, %235 : vector<8x64xf32>
    %237 = vector.extract_strided_slice %236 {offsets = [0, 0], sizes = [8, 32], strides = [1, 1]} : vector<8x64xf32> to vector<8x32xf32>
    %c48_116 = arith.constant 48 : index
    %c0_117 = arith.constant 0 : index
    %238 = vector.load %arg11[%c48_116, %c0_117] : memref<64x64xf32, #tpu.memory_space<vmem>>, vector<8x32xf32>
    tpu.vector_store %arg11[%c48_116, %c0_117], %237 {strides = array<i32>} : memref<64x64xf32, #tpu.memory_space<vmem>>, vector<8x32xf32>,
    %239 = vector.extract_strided_slice %236 {offsets = [0, 32], sizes = [8, 32], strides = [1, 1]} : vector<8x64xf32> to vector<8x32xf32>
    %c8_118 = arith.constant 8 : index
    %c32_119 = arith.constant 32 : index
    %240 = vector.load %arg11[%c8_118, %c32_119] : memref<64x64xf32, #tpu.memory_space<vmem>>, vector<8x32xf32>
    tpu.vector_store %arg11[%c8_118, %c32_119], %239 {strides = array<i32>} : memref<64x64xf32, #tpu.memory_space<vmem>>, vector<8x32xf32>,
    %241 = arith.truncf %236 : vector<8x64xf32> to vector<8x64xbf16>
    %c0_120 = arith.constant 0 : index
    %c0_121 = arith.constant 0 : index
    %242 = vector.load %arg2[%c0_120, %c0_121] : memref<64x256xbf16, #tpu.memory_space<vmem>>, vector<64x256xbf16>
    %cst_122 = arith.constant dense<0.000000e+00> : vector<8x256xf32>
    %243 = tpu.matmul %241, %242, %cst_122 {dimension_numbers = #tpu.dot_dimension_numbers<[1], [0], [0], [1], [0, 0, 1, 1], [], []>} : vector<8x64xbf16>, vector<64x256xbf16>, vector<8x256xf32> -> vector<8x256xf32>
    %c56_123 = arith.constant 56 : index
    %c0_124 = arith.constant 0 : index
    %244 = vector.load %arg10[%c56_123, %c0_124] : memref<64x512xf32, #tpu.memory_space<vmem>>, vector<8x256xf32>
    %c0_125 = arith.constant 0 : index
    %c256_126 = arith.constant 256 : index
    %245 = vector.load %arg10[%c0_125, %c256_126] : memref<64x512xf32, #tpu.memory_space<vmem>>, vector<8x256xf32>
    %246 = arith.addf %244, %245 : vector<8x256xf32>
    %247 = arith.addf %246, %243 : vector<8x256xf32>
    %248 = math.tanh %247 : vector<8x256xf32>
    %249 = vector.extract_strided_slice %248 {offsets = [0, 0], sizes = [8, 64], strides = [1, 1]} : vector<8x256xf32> to vector<8x64xf32>
    %cst_127 = arith.constant 5.000000e-01 : f32
    %250 = vector.broadcast %cst_127 : f32 to vector<8x64xf32>
    %251 = arith.mulf %250, %249 : vector<8x64xf32>
    %cst_128 = arith.constant 5.000000e-01 : f32
    %252 = vector.broadcast %cst_128 : f32 to vector<8x64xf32>
    %253 = arith.addf %251, %252 : vector<8x64xf32>
    %254 = vector.extract_strided_slice %248 {offsets = [0, 64], sizes = [8, 64], strides = [1, 1]} : vector<8x256xf32> to vector<8x64xf32>
    %cst_129 = arith.constant 5.000000e-01 : f32
    %255 = vector.broadcast %cst_129 : f32 to vector<8x64xf32>
    %256 = arith.mulf %255, %254 : vector<8x64xf32>
    %cst_130 = arith.constant 5.000000e-01 : f32
    %257 = vector.broadcast %cst_130 : f32 to vector<8x64xf32>
    %258 = arith.addf %256, %257 : vector<8x64xf32>
    %259 = vector.extract_strided_slice %248 {offsets = [0, 128], sizes = [8, 64], strides = [1, 1]} : vector<8x256xf32> to vector<8x64xf32>
    %260 = vector.extract_strided_slice %248 {offsets = [0, 192], sizes = [8, 64], strides = [1, 1]} : vector<8x256xf32> to vector<8x64xf32>
    %cst_131 = arith.constant 5.000000e-01 : f32
    %261 = vector.broadcast %cst_131 : f32 to vector<8x64xf32>
    %262 = arith.mulf %261, %260 : vector<8x64xf32>
    %cst_132 = arith.constant 5.000000e-01 : f32
    %263 = vector.broadcast %cst_132 : f32 to vector<8x64xf32>
    %264 = arith.addf %262, %263 : vector<8x64xf32>
    %265 = arith.mulf %258, %234 : vector<8x64xf32>
    %266 = arith.mulf %253, %259 : vector<8x64xf32>
    %267 = arith.addf %265, %266 : vector<8x64xf32>
    %268 = math.tanh %267 : vector<8x64xf32>
    %269 = arith.mulf %264, %268 : vector<8x64xf32>
    %270 = vector.extract_strided_slice %269 {offsets = [0, 0], sizes = [8, 32], strides = [1, 1]} : vector<8x64xf32> to vector<8x32xf32>
    %c56_133 = arith.constant 56 : index
    %c0_134 = arith.constant 0 : index
    %271 = vector.load %arg11[%c56_133, %c0_134] : memref<64x64xf32, #tpu.memory_space<vmem>>, vector<8x32xf32>
    tpu.vector_store %arg11[%c56_133, %c0_134], %270 {strides = array<i32>} : memref<64x64xf32, #tpu.memory_space<vmem>>, vector<8x32xf32>,
    %272 = vector.extract_strided_slice %269 {offsets = [0, 32], sizes = [8, 32], strides = [1, 1]} : vector<8x64xf32> to vector<8x32xf32>
    %c0_135 = arith.constant 0 : index
    %c32_136 = arith.constant 32 : index
    %273 = vector.load %arg11[%c0_135, %c32_136] : memref<64x64xf32, #tpu.memory_space<vmem>>, vector<8x32xf32>
    tpu.vector_store %arg11[%c0_135, %c32_136], %272 {strides = array<i32>} : memref<64x64xf32, #tpu.memory_space<vmem>>, vector<8x32xf32>,
    %c0_137 = arith.constant 0 : index
    %c0_138 = arith.constant 0 : index
    %274 = vector.load %arg11[%c0_137, %c0_138] : memref<64x64xf32, #tpu.memory_space<vmem>>, vector<64x64xf32>
    %275 = arith.truncf %274 : vector<64x64xf32> to vector<64x64xbf16>
    %c0_139 = arith.constant 0 : index
    %c0_140 = arith.constant 0 : index
    %276 = vector.load %arg4[%c0_139, %c0_140] : memref<64x512xbf16, #tpu.memory_space<vmem>>, vector<64x512xbf16>
    %cst_141 = arith.constant dense<0.000000e+00> : vector<64x512xf32>
    %277 = tpu.matmul %275, %276, %cst_141 {dimension_numbers = #tpu.dot_dimension_numbers<[1], [0], [0], [1], [0, 0, 1, 1], [], []>} : vector<64x64xbf16>, vector<64x512xbf16>, vector<64x512xf32> -> vector<64x512xf32>
    %c0_142 = arith.constant 0 : index
    %c0_143 = arith.constant 0 : index
    %278 = vector.load %arg6[%c0_142, %c0_143] : memref<1x512xf32, #tpu.memory_space<vmem>>, vector<1x512xf32>
    %279 = vector.broadcast %278 : vector<1x512xf32> to vector<64x512xf32>
    %280 = arith.addf %277, %279 : vector<64x512xf32>
    %c0_144 = arith.constant 0 : index
    %c0_145 = arith.constant 0 : index
    %281 = vector.load %arg10[%c0_144, %c0_145] : memref<64x512xf32, #tpu.memory_space<vmem>>, vector<64x512xf32>
    tpu.vector_store %arg10[%c0_144, %c0_145], %280 {strides = array<i32>} : memref<64x512xf32, #tpu.memory_space<vmem>>, vector<64x512xf32>,
    %cst_146 = arith.constant 0.000000e+00 : f32
    %282 = vector.broadcast %cst_146 : f32 to vector<8x64xf32>
    %cst_147 = arith.constant 0.000000e+00 : f32
    %283 = vector.broadcast %cst_147 : f32 to vector<8x64xf32>
    %284 = arith.truncf %282 : vector<8x64xf32> to vector<8x64xbf16>
    %c0_148 = arith.constant 0 : index
    %c0_149 = arith.constant 0 : index
    %285 = vector.load %arg5[%c0_148, %c0_149] : memref<64x256xbf16, #tpu.memory_space<vmem>>, vector<64x256xbf16>
    %cst_150 = arith.constant dense<0.000000e+00> : vector<8x256xf32>
    %286 = tpu.matmul %284, %285, %cst_150 {dimension_numbers = #tpu.dot_dimension_numbers<[1], [0], [0], [1], [0, 0, 1, 1], [], []>} : vector<8x64xbf16>, vector<64x256xbf16>, vector<8x256xf32> -> vector<8x256xf32>
    %c0_151 = arith.constant 0 : index
    %c0_152 = arith.constant 0 : index
    %287 = vector.load %arg10[%c0_151, %c0_152] : memref<64x512xf32, #tpu.memory_space<vmem>>, vector<8x256xf32>
    %c56_153 = arith.constant 56 : index
    %c256_154 = arith.constant 256 : index
    %288 = vector.load %arg10[%c56_153, %c256_154] : memref<64x512xf32, #tpu.memory_space<vmem>>, vector<8x256xf32>
    %289 = arith.addf %287, %288 : vector<8x256xf32>
    %290 = arith.addf %289, %286 : vector<8x256xf32>
    %291 = math.tanh %290 : vector<8x256xf32>
    %292 = vector.extract_strided_slice %291 {offsets = [0, 0], sizes = [8, 64], strides = [1, 1]} : vector<8x256xf32> to vector<8x64xf32>
    %cst_155 = arith.constant 5.000000e-01 : f32
    %293 = vector.broadcast %cst_155 : f32 to vector<8x64xf32>
    %294 = arith.mulf %293, %292 : vector<8x64xf32>
    %cst_156 = arith.constant 5.000000e-01 : f32
    %295 = vector.broadcast %cst_156 : f32 to vector<8x64xf32>
    %296 = arith.addf %294, %295 : vector<8x64xf32>
    %297 = vector.extract_strided_slice %291 {offsets = [0, 64], sizes = [8, 64], strides = [1, 1]} : vector<8x256xf32> to vector<8x64xf32>
    %cst_157 = arith.constant 5.000000e-01 : f32
    %298 = vector.broadcast %cst_157 : f32 to vector<8x64xf32>
    %299 = arith.mulf %298, %297 : vector<8x64xf32>
    %cst_158 = arith.constant 5.000000e-01 : f32
    %300 = vector.broadcast %cst_158 : f32 to vector<8x64xf32>
    %301 = arith.addf %299, %300 : vector<8x64xf32>
    %302 = vector.extract_strided_slice %291 {offsets = [0, 128], sizes = [8, 64], strides = [1, 1]} : vector<8x256xf32> to vector<8x64xf32>
    %303 = vector.extract_strided_slice %291 {offsets = [0, 192], sizes = [8, 64], strides = [1, 1]} : vector<8x256xf32> to vector<8x64xf32>
    %cst_159 = arith.constant 5.000000e-01 : f32
    %304 = vector.broadcast %cst_159 : f32 to vector<8x64xf32>
    %305 = arith.mulf %304, %303 : vector<8x64xf32>
    %cst_160 = arith.constant 5.000000e-01 : f32
    %306 = vector.broadcast %cst_160 : f32 to vector<8x64xf32>
    %307 = arith.addf %305, %306 : vector<8x64xf32>
    %308 = arith.mulf %301, %283 : vector<8x64xf32>
    %309 = arith.mulf %296, %302 : vector<8x64xf32>
    %310 = arith.addf %308, %309 : vector<8x64xf32>
    %311 = math.tanh %310 : vector<8x64xf32>
    %312 = arith.mulf %307, %311 : vector<8x64xf32>
    %313 = vector.extract_strided_slice %312 {offsets = [0, 0], sizes = [8, 32], strides = [1, 1]} : vector<8x64xf32> to vector<8x32xf32>
    %c0_161 = arith.constant 0 : index
    %c0_162 = arith.constant 0 : index
    %314 = vector.load %arg11[%c0_161, %c0_162] : memref<64x64xf32, #tpu.memory_space<vmem>>, vector<8x32xf32>
    tpu.vector_store %arg11[%c0_161, %c0_162], %313 {strides = array<i32>} : memref<64x64xf32, #tpu.memory_space<vmem>>, vector<8x32xf32>,
    %315 = vector.extract_strided_slice %312 {offsets = [0, 32], sizes = [8, 32], strides = [1, 1]} : vector<8x64xf32> to vector<8x32xf32>
    %c56_163 = arith.constant 56 : index
    %c32_164 = arith.constant 32 : index
    %316 = vector.load %arg11[%c56_163, %c32_164] : memref<64x64xf32, #tpu.memory_space<vmem>>, vector<8x32xf32>
    tpu.vector_store %arg11[%c56_163, %c32_164], %315 {strides = array<i32>} : memref<64x64xf32, #tpu.memory_space<vmem>>, vector<8x32xf32>,
    %317 = arith.truncf %312 : vector<8x64xf32> to vector<8x64xbf16>
    %c0_165 = arith.constant 0 : index
    %c0_166 = arith.constant 0 : index
    %318 = vector.load %arg5[%c0_165, %c0_166] : memref<64x256xbf16, #tpu.memory_space<vmem>>, vector<64x256xbf16>
    %cst_167 = arith.constant dense<0.000000e+00> : vector<8x256xf32>
    %319 = tpu.matmul %317, %318, %cst_167 {dimension_numbers = #tpu.dot_dimension_numbers<[1], [0], [0], [1], [0, 0, 1, 1], [], []>} : vector<8x64xbf16>, vector<64x256xbf16>, vector<8x256xf32> -> vector<8x256xf32>
    %c8_168 = arith.constant 8 : index
    %c0_169 = arith.constant 0 : index
    %320 = vector.load %arg10[%c8_168, %c0_169] : memref<64x512xf32, #tpu.memory_space<vmem>>, vector<8x256xf32>
    %c48_170 = arith.constant 48 : index
    %c256_171 = arith.constant 256 : index
    %321 = vector.load %arg10[%c48_170, %c256_171] : memref<64x512xf32, #tpu.memory_space<vmem>>, vector<8x256xf32>
    %322 = arith.addf %320, %321 : vector<8x256xf32>
    %323 = arith.addf %322, %319 : vector<8x256xf32>
    %324 = math.tanh %323 : vector<8x256xf32>
    %325 = vector.extract_strided_slice %324 {offsets = [0, 0], sizes = [8, 64], strides = [1, 1]} : vector<8x256xf32> to vector<8x64xf32>
    %cst_172 = arith.constant 5.000000e-01 : f32
    %326 = vector.broadcast %cst_172 : f32 to vector<8x64xf32>
    %327 = arith.mulf %326, %325 : vector<8x64xf32>
    %cst_173 = arith.constant 5.000000e-01 : f32
    %328 = vector.broadcast %cst_173 : f32 to vector<8x64xf32>
    %329 = arith.addf %327, %328 : vector<8x64xf32>
    %330 = vector.extract_strided_slice %324 {offsets = [0, 64], sizes = [8, 64], strides = [1, 1]} : vector<8x256xf32> to vector<8x64xf32>
    %cst_174 = arith.constant 5.000000e-01 : f32
    %331 = vector.broadcast %cst_174 : f32 to vector<8x64xf32>
    %332 = arith.mulf %331, %330 : vector<8x64xf32>
    %cst_175 = arith.constant 5.000000e-01 : f32
    %333 = vector.broadcast %cst_175 : f32 to vector<8x64xf32>
    %334 = arith.addf %332, %333 : vector<8x64xf32>
    %335 = vector.extract_strided_slice %324 {offsets = [0, 128], sizes = [8, 64], strides = [1, 1]} : vector<8x256xf32> to vector<8x64xf32>
    %336 = vector.extract_strided_slice %324 {offsets = [0, 192], sizes = [8, 64], strides = [1, 1]} : vector<8x256xf32> to vector<8x64xf32>
    %cst_176 = arith.constant 5.000000e-01 : f32
    %337 = vector.broadcast %cst_176 : f32 to vector<8x64xf32>
    %338 = arith.mulf %337, %336 : vector<8x64xf32>
    %cst_177 = arith.constant 5.000000e-01 : f32
    %339 = vector.broadcast %cst_177 : f32 to vector<8x64xf32>
    %340 = arith.addf %338, %339 : vector<8x64xf32>
    %341 = arith.mulf %334, %310 : vector<8x64xf32>
    %342 = arith.mulf %329, %335 : vector<8x64xf32>
    %343 = arith.addf %341, %342 : vector<8x64xf32>
    %344 = math.tanh %343 : vector<8x64xf32>
    %345 = arith.mulf %340, %344 : vector<8x64xf32>
    %346 = vector.extract_strided_slice %345 {offsets = [0, 0], sizes = [8, 32], strides = [1, 1]} : vector<8x64xf32> to vector<8x32xf32>
    %c8_178 = arith.constant 8 : index
    %c0_179 = arith.constant 0 : index
    %347 = vector.load %arg11[%c8_178, %c0_179] : memref<64x64xf32, #tpu.memory_space<vmem>>, vector<8x32xf32>
    tpu.vector_store %arg11[%c8_178, %c0_179], %346 {strides = array<i32>} : memref<64x64xf32, #tpu.memory_space<vmem>>, vector<8x32xf32>,
    %348 = vector.extract_strided_slice %345 {offsets = [0, 32], sizes = [8, 32], strides = [1, 1]} : vector<8x64xf32> to vector<8x32xf32>
    %c48_180 = arith.constant 48 : index
    %c32_181 = arith.constant 32 : index
    %349 = vector.load %arg11[%c48_180, %c32_181] : memref<64x64xf32, #tpu.memory_space<vmem>>, vector<8x32xf32>
    tpu.vector_store %arg11[%c48_180, %c32_181], %348 {strides = array<i32>} : memref<64x64xf32, #tpu.memory_space<vmem>>, vector<8x32xf32>,
    %350 = arith.truncf %345 : vector<8x64xf32> to vector<8x64xbf16>
    %c0_182 = arith.constant 0 : index
    %c0_183 = arith.constant 0 : index
    %351 = vector.load %arg5[%c0_182, %c0_183] : memref<64x256xbf16, #tpu.memory_space<vmem>>, vector<64x256xbf16>
    %cst_184 = arith.constant dense<0.000000e+00> : vector<8x256xf32>
    %352 = tpu.matmul %350, %351, %cst_184 {dimension_numbers = #tpu.dot_dimension_numbers<[1], [0], [0], [1], [0, 0, 1, 1], [], []>} : vector<8x64xbf16>, vector<64x256xbf16>, vector<8x256xf32> -> vector<8x256xf32>
    %c16_185 = arith.constant 16 : index
    %c0_186 = arith.constant 0 : index
    %353 = vector.load %arg10[%c16_185, %c0_186] : memref<64x512xf32, #tpu.memory_space<vmem>>, vector<8x256xf32>
    %c40_187 = arith.constant 40 : index
    %c256_188 = arith.constant 256 : index
    %354 = vector.load %arg10[%c40_187, %c256_188] : memref<64x512xf32, #tpu.memory_space<vmem>>, vector<8x256xf32>
    %355 = arith.addf %353, %354 : vector<8x256xf32>
    %356 = arith.addf %355, %352 : vector<8x256xf32>
    %357 = math.tanh %356 : vector<8x256xf32>
    %358 = vector.extract_strided_slice %357 {offsets = [0, 0], sizes = [8, 64], strides = [1, 1]} : vector<8x256xf32> to vector<8x64xf32>
    %cst_189 = arith.constant 5.000000e-01 : f32
    %359 = vector.broadcast %cst_189 : f32 to vector<8x64xf32>
    %360 = arith.mulf %359, %358 : vector<8x64xf32>
    %cst_190 = arith.constant 5.000000e-01 : f32
    %361 = vector.broadcast %cst_190 : f32 to vector<8x64xf32>
    %362 = arith.addf %360, %361 : vector<8x64xf32>
    %363 = vector.extract_strided_slice %357 {offsets = [0, 64], sizes = [8, 64], strides = [1, 1]} : vector<8x256xf32> to vector<8x64xf32>
    %cst_191 = arith.constant 5.000000e-01 : f32
    %364 = vector.broadcast %cst_191 : f32 to vector<8x64xf32>
    %365 = arith.mulf %364, %363 : vector<8x64xf32>
    %cst_192 = arith.constant 5.000000e-01 : f32
    %366 = vector.broadcast %cst_192 : f32 to vector<8x64xf32>
    %367 = arith.addf %365, %366 : vector<8x64xf32>
    %368 = vector.extract_strided_slice %357 {offsets = [0, 128], sizes = [8, 64], strides = [1, 1]} : vector<8x256xf32> to vector<8x64xf32>
    %369 = vector.extract_strided_slice %357 {offsets = [0, 192], sizes = [8, 64], strides = [1, 1]} : vector<8x256xf32> to vector<8x64xf32>
    %cst_193 = arith.constant 5.000000e-01 : f32
    %370 = vector.broadcast %cst_193 : f32 to vector<8x64xf32>
    %371 = arith.mulf %370, %369 : vector<8x64xf32>
    %cst_194 = arith.constant 5.000000e-01 : f32
    %372 = vector.broadcast %cst_194 : f32 to vector<8x64xf32>
    %373 = arith.addf %371, %372 : vector<8x64xf32>
    %374 = arith.mulf %367, %343 : vector<8x64xf32>
    %375 = arith.mulf %362, %368 : vector<8x64xf32>
    %376 = arith.addf %374, %375 : vector<8x64xf32>
    %377 = math.tanh %376 : vector<8x64xf32>
    %378 = arith.mulf %373, %377 : vector<8x64xf32>
    %379 = vector.extract_strided_slice %378 {offsets = [0, 0], sizes = [8, 32], strides = [1, 1]} : vector<8x64xf32> to vector<8x32xf32>
    %c16_195 = arith.constant 16 : index
    %c0_196 = arith.constant 0 : index
    %380 = vector.load %arg11[%c16_195, %c0_196] : memref<64x64xf32, #tpu.memory_space<vmem>>, vector<8x32xf32>
    tpu.vector_store %arg11[%c16_195, %c0_196], %379 {strides = array<i32>} : memref<64x64xf32, #tpu.memory_space<vmem>>, vector<8x32xf32>,
    %381 = vector.extract_strided_slice %378 {offsets = [0, 32], sizes = [8, 32], strides = [1, 1]} : vector<8x64xf32> to vector<8x32xf32>
    %c40_197 = arith.constant 40 : index
    %c32_198 = arith.constant 32 : index
    %382 = vector.load %arg11[%c40_197, %c32_198] : memref<64x64xf32, #tpu.memory_space<vmem>>, vector<8x32xf32>
    tpu.vector_store %arg11[%c40_197, %c32_198], %381 {strides = array<i32>} : memref<64x64xf32, #tpu.memory_space<vmem>>, vector<8x32xf32>,
    %383 = arith.truncf %378 : vector<8x64xf32> to vector<8x64xbf16>
    %c0_199 = arith.constant 0 : index
    %c0_200 = arith.constant 0 : index
    %384 = vector.load %arg5[%c0_199, %c0_200] : memref<64x256xbf16, #tpu.memory_space<vmem>>, vector<64x256xbf16>
    %cst_201 = arith.constant dense<0.000000e+00> : vector<8x256xf32>
    %385 = tpu.matmul %383, %384, %cst_201 {dimension_numbers = #tpu.dot_dimension_numbers<[1], [0], [0], [1], [0, 0, 1, 1], [], []>} : vector<8x64xbf16>, vector<64x256xbf16>, vector<8x256xf32> -> vector<8x256xf32>
    %c24_202 = arith.constant 24 : index
    %c0_203 = arith.constant 0 : index
    %386 = vector.load %arg10[%c24_202, %c0_203] : memref<64x512xf32, #tpu.memory_space<vmem>>, vector<8x256xf32>
    %c32_204 = arith.constant 32 : index
    %c256_205 = arith.constant 256 : index
    %387 = vector.load %arg10[%c32_204, %c256_205] : memref<64x512xf32, #tpu.memory_space<vmem>>, vector<8x256xf32>
    %388 = arith.addf %386, %387 : vector<8x256xf32>
    %389 = arith.addf %388, %385 : vector<8x256xf32>
    %390 = math.tanh %389 : vector<8x256xf32>
    %391 = vector.extract_strided_slice %390 {offsets = [0, 0], sizes = [8, 64], strides = [1, 1]} : vector<8x256xf32> to vector<8x64xf32>
    %cst_206 = arith.constant 5.000000e-01 : f32
    %392 = vector.broadcast %cst_206 : f32 to vector<8x64xf32>
    %393 = arith.mulf %392, %391 : vector<8x64xf32>
    %cst_207 = arith.constant 5.000000e-01 : f32
    %394 = vector.broadcast %cst_207 : f32 to vector<8x64xf32>
    %395 = arith.addf %393, %394 : vector<8x64xf32>
    %396 = vector.extract_strided_slice %390 {offsets = [0, 64], sizes = [8, 64], strides = [1, 1]} : vector<8x256xf32> to vector<8x64xf32>
    %cst_208 = arith.constant 5.000000e-01 : f32
    %397 = vector.broadcast %cst_208 : f32 to vector<8x64xf32>
    %398 = arith.mulf %397, %396 : vector<8x64xf32>
    %cst_209 = arith.constant 5.000000e-01 : f32
    %399 = vector.broadcast %cst_209 : f32 to vector<8x64xf32>
    %400 = arith.addf %398, %399 : vector<8x64xf32>
    %401 = vector.extract_strided_slice %390 {offsets = [0, 128], sizes = [8, 64], strides = [1, 1]} : vector<8x256xf32> to vector<8x64xf32>
    %402 = vector.extract_strided_slice %390 {offsets = [0, 192], sizes = [8, 64], strides = [1, 1]} : vector<8x256xf32> to vector<8x64xf32>
    %cst_210 = arith.constant 5.000000e-01 : f32
    %403 = vector.broadcast %cst_210 : f32 to vector<8x64xf32>
    %404 = arith.mulf %403, %402 : vector<8x64xf32>
    %cst_211 = arith.constant 5.000000e-01 : f32
    %405 = vector.broadcast %cst_211 : f32 to vector<8x64xf32>
    %406 = arith.addf %404, %405 : vector<8x64xf32>
    %407 = arith.mulf %400, %376 : vector<8x64xf32>
    %408 = arith.mulf %395, %401 : vector<8x64xf32>
    %409 = arith.addf %407, %408 : vector<8x64xf32>
    %410 = math.tanh %409 : vector<8x64xf32>
    %411 = arith.mulf %406, %410 : vector<8x64xf32>
    %412 = vector.extract_strided_slice %411 {offsets = [0, 0], sizes = [8, 32], strides = [1, 1]} : vector<8x64xf32> to vector<8x32xf32>
    %c24_212 = arith.constant 24 : index
    %c0_213 = arith.constant 0 : index
    %413 = vector.load %arg11[%c24_212, %c0_213] : memref<64x64xf32, #tpu.memory_space<vmem>>, vector<8x32xf32>
    tpu.vector_store %arg11[%c24_212, %c0_213], %412 {strides = array<i32>} : memref<64x64xf32, #tpu.memory_space<vmem>>, vector<8x32xf32>,
    %414 = vector.extract_strided_slice %411 {offsets = [0, 32], sizes = [8, 32], strides = [1, 1]} : vector<8x64xf32> to vector<8x32xf32>
    %c32_214 = arith.constant 32 : index
    %c32_215 = arith.constant 32 : index
    %415 = vector.load %arg11[%c32_214, %c32_215] : memref<64x64xf32, #tpu.memory_space<vmem>>, vector<8x32xf32>
    tpu.vector_store %arg11[%c32_214, %c32_215], %414 {strides = array<i32>} : memref<64x64xf32, #tpu.memory_space<vmem>>, vector<8x32xf32>,
    %416 = arith.truncf %411 : vector<8x64xf32> to vector<8x64xbf16>
    %c0_216 = arith.constant 0 : index
    %c0_217 = arith.constant 0 : index
    %417 = vector.load %arg5[%c0_216, %c0_217] : memref<64x256xbf16, #tpu.memory_space<vmem>>, vector<64x256xbf16>
    %cst_218 = arith.constant dense<0.000000e+00> : vector<8x256xf32>
    %418 = tpu.matmul %416, %417, %cst_218 {dimension_numbers = #tpu.dot_dimension_numbers<[1], [0], [0], [1], [0, 0, 1, 1], [], []>} : vector<8x64xbf16>, vector<64x256xbf16>, vector<8x256xf32> -> vector<8x256xf32>
    %c32_219 = arith.constant 32 : index
    %c0_220 = arith.constant 0 : index
    %419 = vector.load %arg10[%c32_219, %c0_220] : memref<64x512xf32, #tpu.memory_space<vmem>>, vector<8x256xf32>
    %c24_221 = arith.constant 24 : index
    %c256_222 = arith.constant 256 : index
    %420 = vector.load %arg10[%c24_221, %c256_222] : memref<64x512xf32, #tpu.memory_space<vmem>>, vector<8x256xf32>
    %421 = arith.addf %419, %420 : vector<8x256xf32>
    %422 = arith.addf %421, %418 : vector<8x256xf32>
    %423 = math.tanh %422 : vector<8x256xf32>
    %424 = vector.extract_strided_slice %423 {offsets = [0, 0], sizes = [8, 64], strides = [1, 1]} : vector<8x256xf32> to vector<8x64xf32>
    %cst_223 = arith.constant 5.000000e-01 : f32
    %425 = vector.broadcast %cst_223 : f32 to vector<8x64xf32>
    %426 = arith.mulf %425, %424 : vector<8x64xf32>
    %cst_224 = arith.constant 5.000000e-01 : f32
    %427 = vector.broadcast %cst_224 : f32 to vector<8x64xf32>
    %428 = arith.addf %426, %427 : vector<8x64xf32>
    %429 = vector.extract_strided_slice %423 {offsets = [0, 64], sizes = [8, 64], strides = [1, 1]} : vector<8x256xf32> to vector<8x64xf32>
    %cst_225 = arith.constant 5.000000e-01 : f32
    %430 = vector.broadcast %cst_225 : f32 to vector<8x64xf32>
    %431 = arith.mulf %430, %429 : vector<8x64xf32>
    %cst_226 = arith.constant 5.000000e-01 : f32
    %432 = vector.broadcast %cst_226 : f32 to vector<8x64xf32>
    %433 = arith.addf %431, %432 : vector<8x64xf32>
    %434 = vector.extract_strided_slice %423 {offsets = [0, 128], sizes = [8, 64], strides = [1, 1]} : vector<8x256xf32> to vector<8x64xf32>
    %435 = vector.extract_strided_slice %423 {offsets = [0, 192], sizes = [8, 64], strides = [1, 1]} : vector<8x256xf32> to vector<8x64xf32>
    %cst_227 = arith.constant 5.000000e-01 : f32
    %436 = vector.broadcast %cst_227 : f32 to vector<8x64xf32>
    %437 = arith.mulf %436, %435 : vector<8x64xf32>
    %cst_228 = arith.constant 5.000000e-01 : f32
    %438 = vector.broadcast %cst_228 : f32 to vector<8x64xf32>
    %439 = arith.addf %437, %438 : vector<8x64xf32>
    %440 = arith.mulf %433, %409 : vector<8x64xf32>
    %441 = arith.mulf %428, %434 : vector<8x64xf32>
    %442 = arith.addf %440, %441 : vector<8x64xf32>
    %443 = math.tanh %442 : vector<8x64xf32>
    %444 = arith.mulf %439, %443 : vector<8x64xf32>
    %445 = vector.extract_strided_slice %444 {offsets = [0, 0], sizes = [8, 32], strides = [1, 1]} : vector<8x64xf32> to vector<8x32xf32>
    %c32_229 = arith.constant 32 : index
    %c0_230 = arith.constant 0 : index
    %446 = vector.load %arg11[%c32_229, %c0_230] : memref<64x64xf32, #tpu.memory_space<vmem>>, vector<8x32xf32>
    tpu.vector_store %arg11[%c32_229, %c0_230], %445 {strides = array<i32>} : memref<64x64xf32, #tpu.memory_space<vmem>>, vector<8x32xf32>,
    %447 = vector.extract_strided_slice %444 {offsets = [0, 32], sizes = [8, 32], strides = [1, 1]} : vector<8x64xf32> to vector<8x32xf32>
    %c24_231 = arith.constant 24 : index
    %c32_232 = arith.constant 32 : index
    %448 = vector.load %arg11[%c24_231, %c32_232] : memref<64x64xf32, #tpu.memory_space<vmem>>, vector<8x32xf32>
    tpu.vector_store %arg11[%c24_231, %c32_232], %447 {strides = array<i32>} : memref<64x64xf32, #tpu.memory_space<vmem>>, vector<8x32xf32>,
    %449 = arith.truncf %444 : vector<8x64xf32> to vector<8x64xbf16>
    %c0_233 = arith.constant 0 : index
    %c0_234 = arith.constant 0 : index
    %450 = vector.load %arg5[%c0_233, %c0_234] : memref<64x256xbf16, #tpu.memory_space<vmem>>, vector<64x256xbf16>
    %cst_235 = arith.constant dense<0.000000e+00> : vector<8x256xf32>
    %451 = tpu.matmul %449, %450, %cst_235 {dimension_numbers = #tpu.dot_dimension_numbers<[1], [0], [0], [1], [0, 0, 1, 1], [], []>} : vector<8x64xbf16>, vector<64x256xbf16>, vector<8x256xf32> -> vector<8x256xf32>
    %c40_236 = arith.constant 40 : index
    %c0_237 = arith.constant 0 : index
    %452 = vector.load %arg10[%c40_236, %c0_237] : memref<64x512xf32, #tpu.memory_space<vmem>>, vector<8x256xf32>
    %c16_238 = arith.constant 16 : index
    %c256_239 = arith.constant 256 : index
    %453 = vector.load %arg10[%c16_238, %c256_239] : memref<64x512xf32, #tpu.memory_space<vmem>>, vector<8x256xf32>
    %454 = arith.addf %452, %453 : vector<8x256xf32>
    %455 = arith.addf %454, %451 : vector<8x256xf32>
    %456 = math.tanh %455 : vector<8x256xf32>
    %457 = vector.extract_strided_slice %456 {offsets = [0, 0], sizes = [8, 64], strides = [1, 1]} : vector<8x256xf32> to vector<8x64xf32>
    %cst_240 = arith.constant 5.000000e-01 : f32
    %458 = vector.broadcast %cst_240 : f32 to vector<8x64xf32>
    %459 = arith.mulf %458, %457 : vector<8x64xf32>
    %cst_241 = arith.constant 5.000000e-01 : f32
    %460 = vector.broadcast %cst_241 : f32 to vector<8x64xf32>
    %461 = arith.addf %459, %460 : vector<8x64xf32>
    %462 = vector.extract_strided_slice %456 {offsets = [0, 64], sizes = [8, 64], strides = [1, 1]} : vector<8x256xf32> to vector<8x64xf32>
    %cst_242 = arith.constant 5.000000e-01 : f32
    %463 = vector.broadcast %cst_242 : f32 to vector<8x64xf32>
    %464 = arith.mulf %463, %462 : vector<8x64xf32>
    %cst_243 = arith.constant 5.000000e-01 : f32
    %465 = vector.broadcast %cst_243 : f32 to vector<8x64xf32>
    %466 = arith.addf %464, %465 : vector<8x64xf32>
    %467 = vector.extract_strided_slice %456 {offsets = [0, 128], sizes = [8, 64], strides = [1, 1]} : vector<8x256xf32> to vector<8x64xf32>
    %468 = vector.extract_strided_slice %456 {offsets = [0, 192], sizes = [8, 64], strides = [1, 1]} : vector<8x256xf32> to vector<8x64xf32>
    %cst_244 = arith.constant 5.000000e-01 : f32
    %469 = vector.broadcast %cst_244 : f32 to vector<8x64xf32>
    %470 = arith.mulf %469, %468 : vector<8x64xf32>
    %cst_245 = arith.constant 5.000000e-01 : f32
    %471 = vector.broadcast %cst_245 : f32 to vector<8x64xf32>
    %472 = arith.addf %470, %471 : vector<8x64xf32>
    %473 = arith.mulf %466, %442 : vector<8x64xf32>
    %474 = arith.mulf %461, %467 : vector<8x64xf32>
    %475 = arith.addf %473, %474 : vector<8x64xf32>
    %476 = math.tanh %475 : vector<8x64xf32>
    %477 = arith.mulf %472, %476 : vector<8x64xf32>
    %478 = vector.extract_strided_slice %477 {offsets = [0, 0], sizes = [8, 32], strides = [1, 1]} : vector<8x64xf32> to vector<8x32xf32>
    %c40_246 = arith.constant 40 : index
    %c0_247 = arith.constant 0 : index
    %479 = vector.load %arg11[%c40_246, %c0_247] : memref<64x64xf32, #tpu.memory_space<vmem>>, vector<8x32xf32>
    tpu.vector_store %arg11[%c40_246, %c0_247], %478 {strides = array<i32>} : memref<64x64xf32, #tpu.memory_space<vmem>>, vector<8x32xf32>,
    %480 = vector.extract_strided_slice %477 {offsets = [0, 32], sizes = [8, 32], strides = [1, 1]} : vector<8x64xf32> to vector<8x32xf32>
    %c16_248 = arith.constant 16 : index
    %c32_249 = arith.constant 32 : index
    %481 = vector.load %arg11[%c16_248, %c32_249] : memref<64x64xf32, #tpu.memory_space<vmem>>, vector<8x32xf32>
    tpu.vector_store %arg11[%c16_248, %c32_249], %480 {strides = array<i32>} : memref<64x64xf32, #tpu.memory_space<vmem>>, vector<8x32xf32>,
    %482 = arith.truncf %477 : vector<8x64xf32> to vector<8x64xbf16>
    %c0_250 = arith.constant 0 : index
    %c0_251 = arith.constant 0 : index
    %483 = vector.load %arg5[%c0_250, %c0_251] : memref<64x256xbf16, #tpu.memory_space<vmem>>, vector<64x256xbf16>
    %cst_252 = arith.constant dense<0.000000e+00> : vector<8x256xf32>
    %484 = tpu.matmul %482, %483, %cst_252 {dimension_numbers = #tpu.dot_dimension_numbers<[1], [0], [0], [1], [0, 0, 1, 1], [], []>} : vector<8x64xbf16>, vector<64x256xbf16>, vector<8x256xf32> -> vector<8x256xf32>
    %c48_253 = arith.constant 48 : index
    %c0_254 = arith.constant 0 : index
    %485 = vector.load %arg10[%c48_253, %c0_254] : memref<64x512xf32, #tpu.memory_space<vmem>>, vector<8x256xf32>
    %c8_255 = arith.constant 8 : index
    %c256_256 = arith.constant 256 : index
    %486 = vector.load %arg10[%c8_255, %c256_256] : memref<64x512xf32, #tpu.memory_space<vmem>>, vector<8x256xf32>
    %487 = arith.addf %485, %486 : vector<8x256xf32>
    %488 = arith.addf %487, %484 : vector<8x256xf32>
    %489 = math.tanh %488 : vector<8x256xf32>
    %490 = vector.extract_strided_slice %489 {offsets = [0, 0], sizes = [8, 64], strides = [1, 1]} : vector<8x256xf32> to vector<8x64xf32>
    %cst_257 = arith.constant 5.000000e-01 : f32
    %491 = vector.broadcast %cst_257 : f32 to vector<8x64xf32>
    %492 = arith.mulf %491, %490 : vector<8x64xf32>
    %cst_258 = arith.constant 5.000000e-01 : f32
    %493 = vector.broadcast %cst_258 : f32 to vector<8x64xf32>
    %494 = arith.addf %492, %493 : vector<8x64xf32>
    %495 = vector.extract_strided_slice %489 {offsets = [0, 64], sizes = [8, 64], strides = [1, 1]} : vector<8x256xf32> to vector<8x64xf32>
    %cst_259 = arith.constant 5.000000e-01 : f32
    %496 = vector.broadcast %cst_259 : f32 to vector<8x64xf32>
    %497 = arith.mulf %496, %495 : vector<8x64xf32>
    %cst_260 = arith.constant 5.000000e-01 : f32
    %498 = vector.broadcast %cst_260 : f32 to vector<8x64xf32>
    %499 = arith.addf %497, %498 : vector<8x64xf32>
    %500 = vector.extract_strided_slice %489 {offsets = [0, 128], sizes = [8, 64], strides = [1, 1]} : vector<8x256xf32> to vector<8x64xf32>
    %501 = vector.extract_strided_slice %489 {offsets = [0, 192], sizes = [8, 64], strides = [1, 1]} : vector<8x256xf32> to vector<8x64xf32>
    %cst_261 = arith.constant 5.000000e-01 : f32
    %502 = vector.broadcast %cst_261 : f32 to vector<8x64xf32>
    %503 = arith.mulf %502, %501 : vector<8x64xf32>
    %cst_262 = arith.constant 5.000000e-01 : f32
    %504 = vector.broadcast %cst_262 : f32 to vector<8x64xf32>
    %505 = arith.addf %503, %504 : vector<8x64xf32>
    %506 = arith.mulf %499, %475 : vector<8x64xf32>
    %507 = arith.mulf %494, %500 : vector<8x64xf32>
    %508 = arith.addf %506, %507 : vector<8x64xf32>
    %509 = math.tanh %508 : vector<8x64xf32>
    %510 = arith.mulf %505, %509 : vector<8x64xf32>
    %511 = vector.extract_strided_slice %510 {offsets = [0, 0], sizes = [8, 32], strides = [1, 1]} : vector<8x64xf32> to vector<8x32xf32>
    %c48_263 = arith.constant 48 : index
    %c0_264 = arith.constant 0 : index
    %512 = vector.load %arg11[%c48_263, %c0_264] : memref<64x64xf32, #tpu.memory_space<vmem>>, vector<8x32xf32>
    tpu.vector_store %arg11[%c48_263, %c0_264], %511 {strides = array<i32>} : memref<64x64xf32, #tpu.memory_space<vmem>>, vector<8x32xf32>,
    %513 = vector.extract_strided_slice %510 {offsets = [0, 32], sizes = [8, 32], strides = [1, 1]} : vector<8x64xf32> to vector<8x32xf32>
    %c8_265 = arith.constant 8 : index
    %c32_266 = arith.constant 32 : index
    %514 = vector.load %arg11[%c8_265, %c32_266] : memref<64x64xf32, #tpu.memory_space<vmem>>, vector<8x32xf32>
    tpu.vector_store %arg11[%c8_265, %c32_266], %513 {strides = array<i32>} : memref<64x64xf32, #tpu.memory_space<vmem>>, vector<8x32xf32>,
    %515 = arith.truncf %510 : vector<8x64xf32> to vector<8x64xbf16>
    %c0_267 = arith.constant 0 : index
    %c0_268 = arith.constant 0 : index
    %516 = vector.load %arg5[%c0_267, %c0_268] : memref<64x256xbf16, #tpu.memory_space<vmem>>, vector<64x256xbf16>
    %cst_269 = arith.constant dense<0.000000e+00> : vector<8x256xf32>
    %517 = tpu.matmul %515, %516, %cst_269 {dimension_numbers = #tpu.dot_dimension_numbers<[1], [0], [0], [1], [0, 0, 1, 1], [], []>} : vector<8x64xbf16>, vector<64x256xbf16>, vector<8x256xf32> -> vector<8x256xf32>
    %c56_270 = arith.constant 56 : index
    %c0_271 = arith.constant 0 : index
    %518 = vector.load %arg10[%c56_270, %c0_271] : memref<64x512xf32, #tpu.memory_space<vmem>>, vector<8x256xf32>
    %c0_272 = arith.constant 0 : index
    %c256_273 = arith.constant 256 : index
    %519 = vector.load %arg10[%c0_272, %c256_273] : memref<64x512xf32, #tpu.memory_space<vmem>>, vector<8x256xf32>
    %520 = arith.addf %518, %519 : vector<8x256xf32>
    %521 = arith.addf %520, %517 : vector<8x256xf32>
    %522 = math.tanh %521 : vector<8x256xf32>
    %523 = vector.extract_strided_slice %522 {offsets = [0, 0], sizes = [8, 64], strides = [1, 1]} : vector<8x256xf32> to vector<8x64xf32>
    %cst_274 = arith.constant 5.000000e-01 : f32
    %524 = vector.broadcast %cst_274 : f32 to vector<8x64xf32>
    %525 = arith.mulf %524, %523 : vector<8x64xf32>
    %cst_275 = arith.constant 5.000000e-01 : f32
    %526 = vector.broadcast %cst_275 : f32 to vector<8x64xf32>
    %527 = arith.addf %525, %526 : vector<8x64xf32>
    %528 = vector.extract_strided_slice %522 {offsets = [0, 64], sizes = [8, 64], strides = [1, 1]} : vector<8x256xf32> to vector<8x64xf32>
    %cst_276 = arith.constant 5.000000e-01 : f32
    %529 = vector.broadcast %cst_276 : f32 to vector<8x64xf32>
    %530 = arith.mulf %529, %528 : vector<8x64xf32>
    %cst_277 = arith.constant 5.000000e-01 : f32
    %531 = vector.broadcast %cst_277 : f32 to vector<8x64xf32>
    %532 = arith.addf %530, %531 : vector<8x64xf32>
    %533 = vector.extract_strided_slice %522 {offsets = [0, 128], sizes = [8, 64], strides = [1, 1]} : vector<8x256xf32> to vector<8x64xf32>
    %534 = vector.extract_strided_slice %522 {offsets = [0, 192], sizes = [8, 64], strides = [1, 1]} : vector<8x256xf32> to vector<8x64xf32>
    %cst_278 = arith.constant 5.000000e-01 : f32
    %535 = vector.broadcast %cst_278 : f32 to vector<8x64xf32>
    %536 = arith.mulf %535, %534 : vector<8x64xf32>
    %cst_279 = arith.constant 5.000000e-01 : f32
    %537 = vector.broadcast %cst_279 : f32 to vector<8x64xf32>
    %538 = arith.addf %536, %537 : vector<8x64xf32>
    %539 = arith.mulf %532, %508 : vector<8x64xf32>
    %540 = arith.mulf %527, %533 : vector<8x64xf32>
    %541 = arith.addf %539, %540 : vector<8x64xf32>
    %542 = math.tanh %541 : vector<8x64xf32>
    %543 = arith.mulf %538, %542 : vector<8x64xf32>
    %544 = vector.extract_strided_slice %543 {offsets = [0, 0], sizes = [8, 32], strides = [1, 1]} : vector<8x64xf32> to vector<8x32xf32>
    %c56_280 = arith.constant 56 : index
    %c0_281 = arith.constant 0 : index
    %545 = vector.load %arg11[%c56_280, %c0_281] : memref<64x64xf32, #tpu.memory_space<vmem>>, vector<8x32xf32>
    tpu.vector_store %arg11[%c56_280, %c0_281], %544 {strides = array<i32>} : memref<64x64xf32, #tpu.memory_space<vmem>>, vector<8x32xf32>,
    %546 = vector.extract_strided_slice %543 {offsets = [0, 32], sizes = [8, 32], strides = [1, 1]} : vector<8x64xf32> to vector<8x32xf32>
    %c0_282 = arith.constant 0 : index
    %c32_283 = arith.constant 32 : index
    %547 = vector.load %arg11[%c0_282, %c32_283] : memref<64x64xf32, #tpu.memory_space<vmem>>, vector<8x32xf32>
    tpu.vector_store %arg11[%c0_282, %c32_283], %546 {strides = array<i32>} : memref<64x64xf32, #tpu.memory_space<vmem>>, vector<8x32xf32>,
    %c56_284 = arith.constant 56 : index
    %c0_285 = arith.constant 0 : index
    %548 = vector.load %arg11[%c56_284, %c0_285] : memref<64x64xf32, #tpu.memory_space<vmem>>, vector<8x64xf32>
    %c0_286 = arith.constant 0 : index
    %c0_287 = arith.constant 0 : index
    %549 = vector.load %arg7[%c0_286, %c0_287] : memref<64x5xf32, #tpu.memory_space<vmem>>, vector<64x5xf32>
    %cst_288 = arith.constant dense<0.000000e+00> : vector<8x5xf32>
    %550 = tpu.matmul %548, %549, %cst_288 {dimension_numbers = #tpu.dot_dimension_numbers<[1], [0], [0], [1], [0, 0, 1, 1], [], []>} : vector<8x64xf32>, vector<64x5xf32>, vector<8x5xf32> -> vector<8x5xf32>
    %c0_289 = arith.constant 0 : index
    %c0_290 = arith.constant 0 : index
    %551 = vector.load %arg8[%c0_289, %c0_290] : memref<1x5xf32, #tpu.memory_space<vmem>>, vector<1x5xf32>
    %552 = vector.broadcast %551 : vector<1x5xf32> to vector<8x5xf32>
    %553 = arith.addf %550, %552 : vector<8x5xf32>
    %cst_291 = arith.constant 0.000000e+00 : f32
    %554 = vector.broadcast %cst_291 : f32 to vector<8x5xf32>
    %555 = arith.cmpf oge, %553, %554 : vector<8x5xf32>
    %cst_292 = arith.constant 0.00999999977 : f32
    %556 = vector.broadcast %cst_292 : f32 to vector<8x5xf32>
    %557 = arith.mulf %556, %553 : vector<8x5xf32>
    %558 = arith.select %555, %553, %557 : vector<8x5xi1>, vector<8x5xf32>
    %cst_293 = arith.constant 5.000000e-01 : f32
    %559 = vector.broadcast %cst_293 : f32 to vector<8x5xf32>
    %560 = arith.mulf %559, %558 : vector<8x5xf32>
    %561 = math.tanh %560 : vector<8x5xf32>
    %cst_294 = arith.constant 5.000000e-01 : f32
    %562 = vector.broadcast %cst_294 : f32 to vector<8x5xf32>
    %563 = arith.mulf %562, %561 : vector<8x5xf32>
    %cst_295 = arith.constant 5.000000e-01 : f32
    %564 = vector.broadcast %cst_295 : f32 to vector<8x5xf32>
    %565 = arith.addf %563, %564 : vector<8x5xf32>
    %c0_296 = arith.constant 0 : index
    %c0_297 = arith.constant 0 : index
    %566 = vector.load %arg9[%c0_296, %c0_297] : memref<8x5xf32, #tpu.memory_space<vmem>>, vector<8x5xf32>
    tpu.vector_store %arg9[%c0_296, %c0_297], %565 {strides = array<i32>} : memref<8x5xf32, #tpu.memory_space<vmem>>, vector<8x5xf32>,
    return
  }
}

</mosaic_0001>

<bundles_post_ra>
// kernel: bilstm_forward.1
= control target key start
LH: loop header
LB: loop body
LE: loop exit
PB: predicated region body
PF: predicated region fallthrough
CT: control target
= control target key end

     0   :  { %14 = vsyncpa [#allocation5], 0  ;;  %s4322_s0 = inlined_call_operand.vmem [shape: f32[64,16], index: 0, kind: input, shape index: {}]   ;;  %s4323_s1 = inlined_call_operand.vmem [shape: bf16[16,512], index: 1, kind: input, shape index: {}]   ;;  %s4324_s2 = inlined_call_operand.vmem [shape: bf16[64,256], index: 2, kind: input, shape index: {}]   ;;  %s4325_s3 = inlined_call_operand.vmem [shape: f32[1,512], index: 3, kind: input, shape index: {}]   ;;  %s4326_s4 = inlined_call_operand.vmem [shape: bf16[64,512], index: 4, kind: input, shape index: {}]   ;;  %s4327_s5 = inlined_call_operand.hbm [shape: bf16[64,256], index: 5, kind: input, shape index: {}]   ;;  %s4328_s6 = inlined_call_operand.hbm [shape: f32[1,512], index: 6, kind: input, shape index: {}]   ;;  %s4329_s7 = inlined_call_operand.vmem [shape: f32[64,5], index: 7, kind: input, shape index: {}]   ;;  %s4330_s8 = inlined_call_operand.vmem [shape: f32[1,5], index: 8, kind: input, shape index: {}]   ;;  %s4331_s9 = inlined_call_operand.vmem [shape: f32[8,5], index: 9, kind: output, shape index: {}]  }
   0x1   :  { %s30_s11 = sshll.u32 %s4327_s5, 4  ;;  %s31_s11 = int_to_ptr.hbm [resolvable:$true] %s30_s11 }
   0x2   :  { %15 = vsyncpa [#allocation7], 0  ;;  %s3309_s12 = smov [#allocation4]   ;;  %s44_s16 = sshll.u32 %s4328_s6, 4  ;;  %s45_s16 = int_to_ptr.hbm [resolvable:$true] %s44_s16 }
   0x3   :  { %s32_s13 = sshll.u32 %s3309_s12, 4  ;;  %s3310_s17 = smov 128   ;;  %s33_s13 = int_to_ptr.vmem [resolvable:$true] %s32_s13 }
   0x4   :  { %s3311_s18 = smov 8   ;;  %s3312_s19 = smov [#allocation6]  }
   0x5   :  { %38 = dma.hbm_to_vmem [thread:$0]  %s31_s11, 1024, %s33_s13, [#allocation5], %s3310_s17, %s3310_s17, %s3311_s18  }
   0x6   :  { %s46_s20 = sshll.u32 %s3312_s19, 4  ;;  %s47_s20 = int_to_ptr.vmem [resolvable:$true] %s46_s20 }
   0x7   :  { %49 = dma.hbm_to_vmem [thread:$0]  %s45_s16, 64, %s47_s20, [#allocation7]  }
   0x8   :  { %3305 = dma.done.wait [#allocation5], 1024  }
   0x9   :  { %3306 = vsyncadd [#allocation5], 4294966272 }
   0xa   :  { %3307 = dma.done.wait [#allocation7], 64  }
   0xb   :  { %3308 = vsyncadd [#allocation7], 4294967232  ;;  %v2353_v0 = vld [vmem:[%s4323_s1] sm:$0xf]  ;;  %v3006_v1 = vld [vmem:[%s4323_s1 + $0xc] sm:$0xf0] }
   0xc   :  { %v3004_v2 = vld [vmem:[%s4323_s1 + $0x4] sm:$0xf]  ;;  %v2354_v3 = vor.u32 %v3006_v1, %v2353_v0  ;;  %v2355_v4 = vld [vmem:[%s4323_s1 + $0x10] sm:$0xf0]  ;;  %v2361_v5 = vld [vmem:[%s4323_s1 + $0x8] sm:$0xf] }
   0xd   :  { %v3007_v6 = vld [vmem:[%s4323_s1 + $0x14] sm:$0xf0]  ;;  %v2358_v7 = vor.u32 %v3004_v2, %v2355_v4  ;;  %v3005_v9 = vld [vmem:[%s4323_s1 + $0xc] sm:$0xf]  ;;  %v2363_v10 = vld [vmem:[%s4323_s1 + $0x18] sm:$0xf0] }
   0xe   :  { %v2362_v8 = vor.u32 %v3007_v6, %v2361_v5  ;;  %v63_v11 = vld [vmem:[%s4322_s0] sm:$0xff]  ;;  %129 = vmatpush.bf16.msra.mxu0 %v2354_v3  ;;  %v2366_v12 = vor.u32 %v3005_v9, %v2363_v10  ;;  %v64_v13 = vld [vmem:[%s4322_s0 + $0x8] sm:$0xff]  ;;  %vm109_vm0 = vcmask 130048   ;;  %v2409_v14 = vld [vmem:[%s4324_s2 + $0x30] sm:$0xf]  ;;  %v3313_v48 = vmov 0  }
   0xf   :  { %v3015_v15 = vld [vmem:[%s4324_s2 + $0x34] sm:$0xf0]  ;;  %158 = vmatpush.bf16.msra.mxu1 %v2358_v7  ;;  %v71_v16 = vpack.c.bf16 %v64_v13, %v63_v11  ;;  %v3014_v18 = vld [vmem:[%s4324_s2 + $0x34] sm:$0xf]  ;;  %v2411_v19 = vld [vmem:[%s4324_s2 + $0x38] sm:$0xf0] }
  0x10   :  { %187 = vmatpush.bf16.msra.mxu2 %v2362_v8  ;;  %v2410_v17 = vor.u32 %v3015_v15, %v2409_v14  ;;  %216 = vmatpush.bf16.msra.mxu3 %v2366_v12  ;;  %v2414_v20 = vor.u32 %v3014_v18, %v2411_v19  ;;  %v2401_v21 = vld [vmem:[%s4324_s2 + $0x20] sm:$0xf]  ;;  %v3013_v22 = vld [vmem:[%s4324_s2 + $0x24] sm:$0xf0]  ;;  %v3012_v23 = vld [vmem:[%s4324_s2 + $0x24] sm:$0xf] }
  0x11   :  { %2367 = vmatmul.msk.bf16.vlgmr.msra.gmra.mxu0 %vm109_vm0, %v71_v16  ;;  %v2403_v24 = vld [vmem:[%s4324_s2 + $0x28] sm:$0xf0]  ;;  %v2402_v25 = vor.u32 %v3013_v22, %v2401_v21  ;;  %v2393_v27 = vld [vmem:[%s4324_s2 + $0x10] sm:$0xf]  ;;  %v3011_v28 = vld [vmem:[%s4324_s2 + $0x14] sm:$0xf0] }
  0x12   :  { %2371 = vmatmul.msk.bf16.vlgmr.msra.gmra.mxu1 %vm109_vm0, %v71_v16  ;;  %326 = vmatpush.bf16.msrb.mxu0 %v2410_v17  ;;  %v2406_v26 = vor.u32 %v3012_v23, %v2403_v24  ;;  %v3010_v29 = vld [vmem:[%s4324_s2 + $0x14] sm:$0xf]  ;;  %v2395_v30 = vld [vmem:[%s4324_s2 + $0x18] sm:$0xf0]  ;;  %v2394_v31 = vor.u32 %v3011_v28, %v2393_v27  ;;  %v2385_v36 = vld [vmem:[%s4324_s2] sm:$0xf] }
  0x13   :  { %2375 = vmatmul.msk.bf16.vlgmr.msra.gmra.mxu2 %vm109_vm0, %v71_v16  ;;  %2379 = vmatmul.msk.bf16.vlgmr.msra.gmra.mxu3 %vm109_vm0, %v71_v16  ;;  %v2398_v32 = vor.u32 %v3010_v29, %v2395_v30  ;;  %v65_v33 = vld [vmem:[%s4322_s0 + $0x10] sm:$0xff]  ;;  %v66_v34 = vld [vmem:[%s4322_s0 + $0x18] sm:$0xff]  ;;  %v3009_v37 = vld [vmem:[%s4324_s2 + $0x4] sm:$0xf0]  ;;  %vm318_vm1 = vcmask 523264   ;;  %vm375_vm2 = vcmask 261120  }
  0x14   :  { %339 = vmatpush.bf16.msrb.mxu1 %v2414_v20  ;;  %v72_v35 = vpack.c.bf16 %v66_v34, %v65_v33  ;;  %v3008_v38 = vld [vmem:[%s4324_s2 + $0x4] sm:$0xf]  ;;  %v2386_v39 = vor.u32 %v3009_v37, %v2385_v36  ;;  %v2387_v40 = vld [vmem:[%s4324_s2 + $0x8] sm:$0xf0]  ;;  %v69_v45 = vld [vmem:[%s4322_s0 + $0x30] sm:$0xff]  ;;  %vm377_vm3 = vcmask 523520  }
  0x15   :  { %v2390_v41 = vor.u32 %v3008_v38, %v2387_v40  ;;  %v67_v42 = vld [vmem:[%s4322_s0 + $0x20] sm:$0xff]  ;;  %v68_v43 = vld [vmem:[%s4322_s0 + $0x28] sm:$0xff]  ;;  %v70_v46 = vld [vmem:[%s4322_s0 + $0x38] sm:$0xff]  ;;  %vm2343_vm5 = vcmask 39936  }
  0x16   :  { %327 = vmatpush.bf16.msrb.mxu0 %v2402_v25  ;;  %v73_v44 = vpack.c.bf16 %v68_v43, %v67_v42  ;;  %v74_v47 = vpack.c.bf16 %v70_v46, %v69_v45  ;;  %v79_v51 = vld [vmem:[%s4325_s3] sm:$0xf]  ;;  %s3314_s3 = smov 64  }
  0x17   :  { %v3492_v52 = vperm.slane %v79_v51, 2  ;;  %v3494_v53 = vperm.slane %v79_v51, 3  ;;  %v3502_v60 = vperm.slane %v79_v51, 0  ;;  %v3504_v62 = vperm.slane %v79_v51, 1 }
  0x18   :  { %340 = vmatpush.bf16.msrb.mxu1 %v2406_v26 }
  0x1a   :  { %328 = vmatpush.bf16.msrb.mxu0 %v2394_v31 }
  0x1c   :  { %341 = vmatpush.bf16.msrb.mxu1 %v2398_v32 }
  0x1e   :  { %329 = vmatpush.bf16.msrb.mxu0 %v2386_v39 }
  0x20   :  { %342 = vmatpush.bf16.msrb.mxu1 %v2390_v41 }
  0x21   :  { %2368 = vmatmul.msk.bf16.gmra.mxu0 %vm109_vm0, %v72_v35 }
  0x22   :  { %2372 = vmatmul.msk.bf16.gmra.mxu1 %vm109_vm0, %v72_v35 }
  0x23   :  { %2376 = vmatmul.msk.bf16.gmra.mxu2 %vm109_vm0, %v72_v35  ;;  %2380 = vmatmul.msk.bf16.gmra.mxu3 %vm109_vm0, %v72_v35 }
  0x31   :  { %2369 = vmatmul.msk.bf16.gmra.mxu0 %vm109_vm0, %v73_v44 }
  0x32   :  { %2373 = vmatmul.msk.bf16.gmra.mxu1 %vm109_vm0, %v73_v44 }
  0x33   :  { %2377 = vmatmul.msk.bf16.gmra.mxu2 %vm109_vm0, %v73_v44  ;;  %2381 = vmatmul.msk.bf16.gmra.mxu3 %vm109_vm0, %v73_v44 }
  0x41   :  { %2370 = vmatmul.msk.bf16.gmra.mxu0 %vm109_vm0, %v74_v47 }
  0x42   :  { %2374 = vmatmul.msk.bf16.gmra.mxu1 %vm109_vm0, %v74_v47 }
  0x43   :  { %2378 = vmatmul.msk.bf16.gmra.mxu2 %vm109_vm0, %v74_v47  ;;  %2382 = vmatmul.msk.bf16.gmra.mxu3 %vm109_vm0, %v74_v47 }
  0x51   :  { %330 = vmatmul.bf16.vlgmr.msrb.gmra.mxu0 %v3313_v48 }
  0x52   :  { %343 = vmatmul.bf16.vlgmr.msrb.gmra.mxu1 %v3313_v48 }
  0x8e   :  { %v3485_v49 = vpop.f32.mrf.mxu0 }
  0x8f   :  { %v3487_v50 = vpop.f32.mrf.mxu1 }
  0x96   :  { %v189_v54 = vpop.f32.mrf.mxu2  ;;  %v218_v56 = vpop.f32.mrf.mxu3 }
  0x97   :  { %v3497_v55 = vadd.f32 %v189_v54, %v3492_v52  ;;  %v133_v57 = vpop.f32.mrf.mxu0  ;;  %v3500_v58 = vadd.f32 %v218_v56, %v3494_v53  ;;  %v162_v59 = vpop.f32.mrf.mxu1 }
  0x98   :  { %v134_v54 = vadd.f32 %v133_v57, %v3502_v60 }
  0x9e   :  { %v191_v61 = vpop.f32.mrf.mxu2  ;;  %v220_v63 = vpop.f32.mrf.mxu3 }
  0x9f   :  { %v136_v0 = vpop.f32.mrf.mxu0  ;;  %v165_v2 = vpop.f32.mrf.mxu1  ;;  %v192_v38 = vadd.f32 %v191_v61, %v3492_v52  ;;  %v221_v42 = vadd.f32 %v220_v63, %v3494_v53 }
  0xa0   :  { %v137_v1 = vadd.f32 %v136_v0, %v3502_v60  ;;  %v166_v3 = vadd.f32 %v165_v2, %v3504_v62  ;;  %v163_v2 = vadd.f32 %v162_v59, %v3504_v62  ;;  %v132_v59 = vadd.f32 %v3485_v49, %v3502_v60 }
  0xa6   :  { %v194_v4 = vpop.f32.mrf.mxu2  ;;  %v223_v6 = vpop.f32.mrf.mxu3 }
  0xa7   :  { %v195_v5 = vadd.f32 %v194_v4, %v3492_v52  ;;  %v138_v7 = vpop.f32.mrf.mxu0  ;;  %v224_v8 = vadd.f32 %v223_v6, %v3494_v53  ;;  %v167_v9 = vpop.f32.mrf.mxu1 }
  0xa8   :  { %v139_v21 = vadd.f32 %v138_v7, %v3502_v60  ;;  %v168_v25 = vadd.f32 %v167_v9, %v3504_v62 }
  0xae   :  { %v196_v10 = vpop.f32.mrf.mxu2  ;;  %v225_v11 = vpop.f32.mrf.mxu3 }
  0xaf   :  { %v141_v12 = vpop.f32.mrf.mxu0  ;;  %v197_v13 = vadd.f32 %v196_v10, %v3492_v52  ;;  %v170_v15 = vpop.f32.mrf.mxu1  ;;  %v226_v16 = vadd.f32 %v225_v11, %v3494_v53 }
  0xb0   :  { %v142_v14 = vadd.f32 %v141_v12, %v3502_v60  ;;  %v171_v17 = vadd.f32 %v170_v15, %v3504_v62  ;;  %v161_v12 = vadd.f32 %v3487_v50, %v3504_v62  ;;  %v2441_v50 = vld [vmem:[%s4324_s2 + $0x30] sm:$0xf] }
  0xb2   :  { %v3514_v18 = vadd.f32 %v197_v13, %v142_v14  ;;  %v3516_v19 = vadd.f32 %v226_v16, %v171_v17 }
  0xb6   :  { %v199_v20 = vpop.f32.mrf.mxu2  ;;  %v228_v23 = vpop.f32.mrf.mxu3 }
  0xb7   :  { %v200_v22 = vadd.f32 %v199_v20, %v3492_v52  ;;  %v143_v24 = vpop.f32.mrf.mxu0  ;;  %v229_v26 = vadd.f32 %v228_v23, %v3494_v53  ;;  %v172_v28 = vpop.f32.mrf.mxu1 }
  0xb8   :  { %v144_v27 = vadd.f32 %v143_v24, %v3502_v60  ;;  %v173_v29 = vadd.f32 %v172_v28, %v3504_v62  ;;  %v2443_v24 = vld [vmem:[%s4324_s2 + $0x38] sm:$0xf0]  ;;  %v3020_v28 = vld [vmem:[%s4324_s2 + $0x24] sm:$0xf] }
  0xb9   :  { %v3524_v30 = vadd.f32 %v200_v22, %v139_v21  ;;  %v3526_v31 = vadd.f32 %v229_v26, %v168_v25  ;;  %v2433_v25 = vld [vmem:[%s4324_s2 + $0x20] sm:$0xf]  ;;  %v3021_v26 = vld [vmem:[%s4324_s2 + $0x24] sm:$0xf0] }
  0xba   :  { %v3528_v32 = vadd.f32 %v195_v5, %v144_v27  ;;  %v3530_v33 = vadd.f32 %v224_v8, %v173_v29  ;;  %v2435_v29 = vld [vmem:[%s4324_s2 + $0x28] sm:$0xf0] }
  0xbe   :  { %v201_v34 = vpop.f32.mrf.mxu2  ;;  %v230_v36 = vpop.f32.mrf.mxu3 }
  0xbf   :  { %v202_v35 = vadd.f32 %v201_v34, %v3492_v52  ;;  %v146_v37 = vpop.f32.mrf.mxu0  ;;  %v231_v39 = vadd.f32 %v230_v36, %v3494_v53  ;;  %v175_v41 = vpop.f32.mrf.mxu1  ;;  %v2434_v34 = vor.u32 %v3021_v26, %v2433_v25  ;;  %v2425_v36 = vld [vmem:[%s4324_s2 + $0x10] sm:$0xf]  ;;  %v3027_v26 = vld [vmem:[%s4324_s2 + $0x14] sm:$0xf0] }
  0xc0   :  { %v147_v40 = vadd.f32 %v146_v37, %v3502_v60  ;;  %v176_v43 = vadd.f32 %v175_v41, %v3504_v62  ;;  %v3019_v37 = vld [vmem:[%s4324_s2 + $0x14] sm:$0xf0]  ;;  %v2459_v25 = vld [vmem:[%s4324_s2 + $0x10] sm:$0xf] }
  0xc1   :  { %v3538_v44 = vadd.f32 %v202_v35, %v137_v1  ;;  %v3540_v45 = vadd.f32 %v231_v39, %v166_v3  ;;  %v2438_v35 = vor.u32 %v3020_v28, %v2435_v29  ;;  %v2427_v39 = vld [vmem:[%s4324_s2 + $0x18] sm:$0xf0]  ;;  %v2460_v29 = vor.u32 %v3027_v26, %v2459_v25  ;;  %v3032_v25 = vld [vmem:[%s4324_s2 + $0x4] sm:$0xf]  ;;  %v2487_v26 = vld [vmem:[%s4324_s2 + $0x8] sm:$0xf0] }
  0xc2   :  { %v3542_v46 = vadd.f32 %v192_v38, %v147_v40  ;;  %v3544_v47 = vadd.f32 %v221_v42, %v176_v43  ;;  %v3018_v38 = vld [vmem:[%s4324_s2 + $0x14] sm:$0xf]  ;;  %v2426_v40 = vor.u32 %v3019_v37, %v2425_v36  ;;  %v2417_v42 = vld [vmem:[%s4324_s2] sm:$0xf]  ;;  %v3017_v43 = vld [vmem:[%s4324_s2 + $0x4] sm:$0xf0] }
  0xc3   :  { %v2430_v41 = vor.u32 %v3018_v38, %v2427_v39  ;;  %v2461_v28 = vld [vmem:[%s4324_s2 + $0x18] sm:$0xf0]  ;;  %v3025_v36 = vld [vmem:[%s4324_s2 + $0x4] sm:$0xf0]  ;;  %v3024_v37 = vld [vmem:[%s4324_s2 + $0x4] sm:$0xf] }
  0xc4   :  { %v2453_v38 = vld [vmem:[%s4324_s2 + $0x8] sm:$0xf0] }
  0xc6   :  { %v204_v51 = vpop.f32.mrf.mxu2  ;;  %v233_v61 = vpop.f32.mrf.mxu3 }
  0xc7   :  { %v205_v56 = vadd.f32 %v204_v51, %v3492_v52  ;;  %v148_v0 = vpop.f32.mrf.mxu0  ;;  %v234_v63 = vadd.f32 %v233_v61, %v3494_v53  ;;  %v177_v4 = vpop.f32.mrf.mxu1  ;;  %v3016_v51 = vld [vmem:[%s4324_s2 + $0x4] sm:$0xf] }
  0xc8   :  { %v149_v1 = vadd.f32 %v148_v0, %v3502_v60  ;;  %v178_v3 = vadd.f32 %v177_v4, %v3504_v62  ;;  %v3022_v62 = vld [vmem:[%s4324_s2 + $0x34] sm:$0xf] }
  0xc9   :  { %v3552_v5 = vadd.f32 %v205_v56, %v134_v54  ;;  %v3554_v6 = vadd.f32 %v234_v63, %v163_v2  ;;  %v2446_v27 = vor.u32 %v3022_v62, %v2443_v24  ;;  %v2419_v54 = vld [vmem:[%s4324_s2 + $0x8] sm:$0xf0]  ;;  %v2418_v56 = vor.u32 %v3017_v43, %v2417_v42 }
  0xca   :  { %v3557_v7 = vadd.f32 %v3497_v55, %v149_v1  ;;  %v3560_v57 = vadd.f32 %v3500_v58, %v178_v3  ;;  %v2422_v61 = vor.u32 %v3016_v51, %v2419_v54  ;;  %v2469_v62 = vld [vmem:[%s4324_s2 + $0x28] sm:$0xf0] }
  0xcb   :  { %451 = vmatpush.bf16.msrb.mxu3 %v2446_v27  ;;  %v3026_v27 = vld [vmem:[%s4324_s2 + $0x14] sm:$0xf] }
  0xce   :  { %v206_v8 = vpop.f32.mrf.mxu2  ;;  %v235_v10 = vpop.f32.mrf.mxu3 }
  0xcf   :  { %v207_v9 = vadd.f32 %v206_v8, %v3492_v52  ;;  %v331_v11 = vpop.f32.mrf.mxu0  ;;  %v236_v13 = vadd.f32 %v235_v10, %v3494_v53  ;;  %v344_v14 = vpop.f32.mrf.mxu1  ;;  %v3023_v53 = vld [vmem:[%s4324_s2 + $0x34] sm:$0xf0]  ;;  %452 = vmatpush.bf16.msrb.mxu3 %v2438_v35  ;;  %v2451_v35 = vld [vmem:[%s4324_s2] sm:$0xf] }
  0xd0   :  { %v2442_v23 = vor.u32 %v3023_v53, %v2441_v50  ;;  %v3028_v53 = vld [vmem:[%s4324_s2 + $0x24] sm:$0xf]  ;;  %v2452_v39 = vor.u32 %v3025_v36, %v2451_v35 }
  0xd1   :  { %v352_v15 = vadd.f32 %v207_v9, %v132_v59  ;;  %v353_v55 = vadd.f32 %v236_v13, %v161_v12  ;;  %v2472_v24 = vor.u32 %v3028_v53, %v2469_v62 }
  0xd2   :  { %438 = vmatpush.bf16.msrb.mxu2 %v2442_v23 }
  0xd3   :  { %v354_v16 = vadd.f32 %v352_v15, %v331_v11  ;;  %v355_v58 = vadd.f32 %v353_v55, %v344_v14  ;;  %453 = vmatpush.bf16.msrb.mxu3 %v2430_v41 }
  0xd5   :  { %3159 = vtanh.f32 %v354_v16 }
  0xd6   :  { %3161 = vtanh.f32 %v355_v58  ;;  %439 = vmatpush.bf16.msrb.mxu2 %v2434_v34  ;;  %v2464_v34 = vor.u32 %v3026_v27, %v2461_v28  ;;  %v2490_v28 = vor.u32 %v3032_v25, %v2487_v26 }
  0xd7   :  { %v333_v17 = vpop.f32.mrf.mxu0  ;;  %v346_v20 = vpop.f32.mrf.mxu1  ;;  %454 = vmatpush.bf16.msrb.mxu3 %v2422_v61 }
  0xda   :  { %440 = vmatpush.bf16.msrb.mxu2 %v2426_v40  ;;  %v2456_v40 = vor.u32 %v3024_v37, %v2453_v38 }
  0xdb   :  { %v3160_v21 = vpop.eup %3159 }
  0xdc   :  { %v358_v49 = vmul.f32 0.5, %v3160_v21  ;;  %v3162_v52 = vpop.eup %3161  ;;  %v2475_v21 = vld [vmem:[%s4324_s2 + $0x30] sm:$0xf] }
  0xdd   :  { %v360_v1 = vmul.f32 0.5, %v3162_v52 }
  0xde   :  { %v359_v60 = vadd.f32 0.5, %v358_v49  ;;  %441 = vmatpush.bf16.msrb.mxu2 %v2418_v56 }
  0xdf   :  { %v361_v4 = vadd.f32 0.5, %v360_v1 }
  0xe0   :  { %v363_v22 = vmul.f32 %v3162_v52, %v359_v60  ;;  %v362_v0 = vmul.f32 0.0, %v359_v60  ;;  %v2477_v60 = vld [vmem:[%s4324_s2 + $0x38] sm:$0xf0]  ;;  %v2467_v52 = vld [vmem:[%s4324_s2 + $0x20] sm:$0xf] }
  0xe2   :  { %365 = vrot.lane.b32.xlu0 %v363_v22, %s3314_s3  ;;  %v3029_v22 = vld [vmem:[%s4324_s2 + $0x24] sm:$0xf0] }
  0xe3   :  { %v2468_v23 = vor.u32 %v3029_v22, %v2467_v52  ;;  %v3035_v52 = vld [vmem:[%s4324_s2 + $0x14] sm:$0xf0]  ;;  %v3034_v22 = vld [vmem:[%s4324_s2 + $0x14] sm:$0xf] }
 0x154   :  { %v366_v2 = vpop.permute.xlu0 %365 }
 0x155   :  { %v368_v63 = vadd.f32 %v366_v2, %v362_v0 }
 0x157   :  { %3163 = vtanh.f32 %v368_v63 }
 0x15d   :  { %v3164_v3 = vpop.eup %3163 }
 0x15e   :  { %v3617_v8 = vmul.f32 %v3164_v3, %v361_v4 }
 0x160   :  { %v379_v59 = vpack.c.bf16 %v3617_v8, %v3617_v8 }
 0x162   :  { %389 = vrot.lane.b32.xlu0 %v379_v59, %s3314_s3 }
 0x1d4   :  { %v390_v9 = vpop.permute.xlu0 %389 }
 0x1d5   :  { %2447 = vmatmul.msk.bf16.vlgmr.msrb.gmra.mxu2 %vm318_vm1, %v390_v9  ;;  %2448 = vmatmul.msk.bf16.vlgmr.msrb.gmra.mxu3 %vm318_vm1, %v390_v9 }
 0x258   :  { %v443_v10 = vpop.f32.mrf.mxu2  ;;  %v456_v11 = vpop.f32.mrf.mxu3 }
 0x259   :  { %v466_v12 = vadd.f32 %v3552_v5, %v443_v10  ;;  %v467_v13 = vadd.f32 %v3554_v6, %v456_v11  ;;  %v3031_v5 = vld [vmem:[%s4324_s2 + $0x34] sm:$0xf0]  ;;  %v3030_v6 = vld [vmem:[%s4324_s2 + $0x34] sm:$0xf] }
 0x25a   :  { %v2476_v49 = vor.u32 %v3031_v5, %v2475_v21  ;;  %v2480_v50 = vor.u32 %v3030_v6, %v2477_v60  ;;  %v3036_v21 = vld [vmem:[%s4324_s2 + $0x24] sm:$0xf]  ;;  %v2503_v5 = vld [vmem:[%s4324_s2 + $0x28] sm:$0xf0]  ;;  %v2493_v60 = vld [vmem:[%s4324_s2 + $0x10] sm:$0xf] }
 0x25b   :  { %3165 = vtanh.f32 %v466_v12  ;;  %v2494_v53 = vor.u32 %v3035_v52, %v2493_v60  ;;  %v2521_v60 = vld [vmem:[%s4324_s2 + $0x8] sm:$0xf0] }
 0x25c   :  { %3167 = vtanh.f32 %v467_v13  ;;  %548 = vmatpush.bf16.msra.mxu0 %v2476_v49  ;;  %561 = vmatpush.bf16.msra.mxu1 %v2480_v50  ;;  %v2506_v49 = vor.u32 %v3036_v21, %v2503_v5  ;;  %v2495_v50 = vld [vmem:[%s4324_s2 + $0x18] sm:$0xf0]  ;;  %v2519_v5 = vld [vmem:[%s4324_s2] sm:$0xf] }
 0x25d   :  { %v2498_v62 = vor.u32 %v3034_v22, %v2495_v50 }
 0x260   :  { %v445_v14 = vpop.f32.mrf.mxu2  ;;  %v458_v15 = vpop.f32.mrf.mxu3  ;;  %549 = vmatpush.bf16.msra.mxu0 %v2468_v23  ;;  %562 = vmatpush.bf16.msra.mxu1 %v2472_v24  ;;  %v2485_v23 = vld [vmem:[%s4324_s2] sm:$0xf]  ;;  %v3033_v24 = vld [vmem:[%s4324_s2 + $0x4] sm:$0xf0] }
 0x261   :  { %v3166_v55 = vpop.eup %3165  ;;  %v2509_v15 = vld [vmem:[%s4324_s2 + $0x30] sm:$0xf]  ;;  %v2486_v27 = vor.u32 %v3033_v24, %v2485_v23 }
 0x262   :  { %v470_v16 = vmul.f32 0.5, %v3166_v55  ;;  %v3168_v17 = vpop.eup %3167 }
 0x263   :  { %v472_v51 = vmul.f32 0.5, %v3168_v17 }
 0x264   :  { %v471_v58 = vadd.f32 0.5, %v470_v16  ;;  %550 = vmatpush.bf16.msra.mxu0 %v2460_v29  ;;  %563 = vmatpush.bf16.msra.mxu1 %v2464_v34  ;;  %v2511_v16 = vld [vmem:[%s4324_s2 + $0x38] sm:$0xf0] }
 0x265   :  { %v473_v54 = vadd.f32 0.5, %v472_v51 }
 0x266   :  { %v475_v20 = vmul.f32 %v3168_v17, %v471_v58  ;;  %v474_v41 = vmul.f32 %v471_v58, %v368_v63  ;;  %v2501_v58 = vld [vmem:[%s4324_s2 + $0x20] sm:$0xf]  ;;  %v3037_v17 = vld [vmem:[%s4324_s2 + $0x24] sm:$0xf0] }
 0x267   :  { %v2502_v6 = vor.u32 %v3037_v17, %v2501_v58  ;;  %v3042_v58 = vld [vmem:[%s4324_s2 + $0x14] sm:$0xf]  ;;  %v2529_v17 = vld [vmem:[%s4324_s2 + $0x18] sm:$0xf0] }
 0x268   :  { %477 = vrot.lane.b32.xlu1 %v475_v20, %s3314_s3  ;;  %551 = vmatpush.bf16.msra.mxu0 %v2452_v39  ;;  %v2532_v21 = vor.u32 %v3042_v58, %v2529_v17 }
 0x269   :  { %564 = vmatpush.bf16.msra.mxu1 %v2456_v40 }
 0x2da   :  { %v478_v42 = vpop.permute.xlu1 %477 }
 0x2db   :  { %v480_v43 = vadd.f32 %v478_v42, %v474_v41 }
 0x2dd   :  { %3169 = vtanh.f32 %v480_v43 }
 0x2e3   :  { %v3170_v56 = vpop.eup %3169 }
 0x2e4   :  { %v3675_v61 = vmul.f32 %v3170_v56, %v473_v54 }
 0x2e6   :  { %v489_v0 = vpack.c.bf16 %v3675_v61, %v3675_v61 }
 0x2e8   :  { %499 = vrot.lane.b32.xlu1 %v489_v0, %s3314_s3 }
 0x35a   :  { %v500_v2 = vpop.permute.xlu1 %499 }
 0x35b   :  { %2481 = vmatmul.msk.bf16.vlgmr.msra.gmra.mxu0 %vm318_vm1, %v500_v2  ;;  %2482 = vmatmul.msk.bf16.vlgmr.msra.gmra.mxu1 %vm318_vm1, %v500_v2 }
 0x3d8   :  { %v553_v1 = vpop.f32.mrf.mxu0  ;;  %v566_v63 = vpop.f32.mrf.mxu1 }
 0x3d9   :  { %v576_v4 = vadd.f32 %v3538_v44, %v553_v1  ;;  %v577_v3 = vadd.f32 %v3540_v45, %v566_v63  ;;  %v3039_v44 = vld [vmem:[%s4324_s2 + $0x34] sm:$0xf0]  ;;  %v3038_v45 = vld [vmem:[%s4324_s2 + $0x34] sm:$0xf] }
 0x3da   :  { %v2510_v55 = vor.u32 %v3039_v44, %v2509_v15  ;;  %v2514_v20 = vor.u32 %v3038_v45, %v2511_v16  ;;  %v2537_v15 = vld [vmem:[%s4324_s2 + $0x28] sm:$0xf0]  ;;  %v3043_v16 = vld [vmem:[%s4324_s2 + $0x14] sm:$0xf0] }
 0x3db   :  { %3171 = vtanh.f32 %v576_v4 }
 0x3dc   :  { %3173 = vtanh.f32 %v577_v3  ;;  %658 = vmatpush.bf16.msra.mxu2 %v2510_v55  ;;  %671 = vmatpush.bf16.msra.mxu3 %v2514_v20  ;;  %v2527_v55 = vld [vmem:[%s4324_s2 + $0x10] sm:$0xf] }
 0x3dd   :  { %v2528_v20 = vor.u32 %v3043_v16, %v2527_v55 }
 0x3e0   :  { %v555_v59 = vpop.f32.mrf.mxu0  ;;  %v568_v9 = vpop.f32.mrf.mxu1  ;;  %659 = vmatpush.bf16.msra.mxu2 %v2502_v6  ;;  %672 = vmatpush.bf16.msra.mxu3 %v2506_v49  ;;  %v3041_v6 = vld [vmem:[%s4324_s2 + $0x4] sm:$0xf0]  ;;  %v3040_v49 = vld [vmem:[%s4324_s2 + $0x4] sm:$0xf] }
 0x3e1   :  { %v3172_v10 = vpop.eup %3171  ;;  %v2543_v59 = vld [vmem:[%s4324_s2 + $0x30] sm:$0xf]  ;;  %v2520_v52 = vor.u32 %v3041_v6, %v2519_v5  ;;  %v2524_v22 = vor.u32 %v3040_v49, %v2521_v60 }
 0x3e2   :  { %v580_v11 = vmul.f32 0.5, %v3172_v10  ;;  %v3174_v13 = vpop.eup %3173  ;;  %v2545_v10 = vld [vmem:[%s4324_s2 + $0x38] sm:$0xf0] }
 0x3e3   :  { %v582_v36 = vmul.f32 0.5, %v3174_v13 }
 0x3e4   :  { %v581_v12 = vadd.f32 0.5, %v580_v11  ;;  %660 = vmatpush.bf16.msra.mxu2 %v2494_v53  ;;  %673 = vmatpush.bf16.msra.mxu3 %v2498_v62  ;;  %v2535_v11 = vld [vmem:[%s4324_s2 + $0x20] sm:$0xf] }
 0x3e5   :  { %v583_v37 = vadd.f32 0.5, %v582_v36 }
 0x3e6   :  { %v585_v14 = vmul.f32 %v3174_v13, %v581_v12  ;;  %v584_v29 = vmul.f32 %v581_v12, %v480_v43  ;;  %v3045_v12 = vld [vmem:[%s4324_s2 + $0x24] sm:$0xf0] }
 0x3e7   :  { %v2536_v44 = vor.u32 %v3045_v12, %v2535_v11  ;;  %v2563_v11 = vld [vmem:[%s4324_s2 + $0x18] sm:$0xf0] }
 0x3e8   :  { %587 = vrot.lane.b32.xlu2 %v585_v14, %s3314_s3  ;;  %661 = vmatpush.bf16.msra.mxu2 %v2486_v27  ;;  %v3044_v14 = vld [vmem:[%s4324_s2 + $0x24] sm:$0xf] }
 0x3e9   :  { %674 = vmatpush.bf16.msra.mxu3 %v2490_v28  ;;  %v2540_v45 = vor.u32 %v3044_v14, %v2537_v15  ;;  %v2553_v14 = vld [vmem:[%s4324_s2] sm:$0xf]  ;;  %v3049_v15 = vld [vmem:[%s4324_s2 + $0x4] sm:$0xf0] }
 0x3ea   :  { %v2554_v55 = vor.u32 %v3049_v15, %v2553_v14 }
 0x442   :  { %v588_v34 = vpop.permute.xlu2 %587 }
 0x443   :  { %v590_v35 = vadd.f32 %v588_v34, %v584_v29 }
 0x445   :  { %3175 = vtanh.f32 %v590_v35 }
 0x44b   :  { %v3176_v38 = vpop.eup %3175 }
 0x44c   :  { %v3733_v39 = vmul.f32 %v3176_v38, %v583_v37 }
 0x44e   :  { %v599_v40 = vpack.c.bf16 %v3733_v39, %v3733_v39 }
 0x450   :  { %609 = vrot.lane.b32.xlu2 %v599_v40, %s3314_s3 }
 0x4aa   :  { %v610_v41 = vpop.permute.xlu2 %609 }
 0x4ab   :  { %2515 = vmatmul.msk.bf16.vlgmr.msra.gmra.mxu2 %vm318_vm1, %v610_v41  ;;  %2516 = vmatmul.msk.bf16.vlgmr.msra.gmra.mxu3 %vm318_vm1, %v610_v41 }
 0x52e   :  { %v663_v42 = vpop.f32.mrf.mxu2  ;;  %v676_v43 = vpop.f32.mrf.mxu3 }
 0x52f   :  { %v686_v51 = vadd.f32 %v3524_v30, %v663_v42  ;;  %v687_v54 = vadd.f32 %v3526_v31, %v676_v43  ;;  %v3047_v30 = vld [vmem:[%s4324_s2 + $0x34] sm:$0xf0]  ;;  %v3046_v31 = vld [vmem:[%s4324_s2 + $0x34] sm:$0xf] }
 0x530   :  { %v2544_v9 = vor.u32 %v3047_v30, %v2543_v59  ;;  %v2548_v13 = vor.u32 %v3046_v31, %v2545_v10  ;;  %v2561_v31 = vld [vmem:[%s4324_s2 + $0x10] sm:$0xf]  ;;  %v3050_v10 = vld [vmem:[%s4324_s2 + $0x14] sm:$0xf] }
 0x531   :  { %3177 = vtanh.f32 %v686_v51 }
 0x532   :  { %3179 = vtanh.f32 %v687_v54  ;;  %768 = vmatpush.bf16.msrb.mxu0 %v2544_v9  ;;  %781 = vmatpush.bf16.msrb.mxu1 %v2548_v13  ;;  %v2577_v54 = vld [vmem:[%s4324_s2 + $0x30] sm:$0xf]  ;;  %v3051_v9 = vld [vmem:[%s4324_s2 + $0x14] sm:$0xf0]  ;;  %v2566_v13 = vor.u32 %v3050_v10, %v2563_v11 }
 0x533   :  { %v2562_v12 = vor.u32 %v3051_v9, %v2561_v31 }
 0x536   :  { %v665_v56 = vpop.f32.mrf.mxu2  ;;  %v678_v0 = vpop.f32.mrf.mxu3  ;;  %769 = vmatpush.bf16.msrb.mxu0 %v2536_v44  ;;  %782 = vmatpush.bf16.msrb.mxu1 %v2540_v45  ;;  %v3048_v44 = vld [vmem:[%s4324_s2 + $0x4] sm:$0xf]  ;;  %v2555_v45 = vld [vmem:[%s4324_s2 + $0x8] sm:$0xf0] }
 0x537   :  { %v3178_v2 = vpop.eup %3177  ;;  %v2579_v0 = vld [vmem:[%s4324_s2 + $0x38] sm:$0xf0]  ;;  %v2558_v16 = vor.u32 %v3048_v44, %v2555_v45 }
 0x538   :  { %v690_v1 = vmul.f32 0.5, %v3178_v2  ;;  %v3180_v4 = vpop.eup %3179  ;;  %v2569_v2 = vld [vmem:[%s4324_s2 + $0x20] sm:$0xf] }
 0x539   :  { %v692_v23 = vmul.f32 0.5, %v3180_v4 }
 0x53a   :  { %v691_v63 = vadd.f32 0.5, %v690_v1  ;;  %770 = vmatpush.bf16.msrb.mxu0 %v2528_v20  ;;  %783 = vmatpush.bf16.msrb.mxu1 %v2532_v21  ;;  %v3053_v1 = vld [vmem:[%s4324_s2 + $0x24] sm:$0xf0] }
 0x53b   :  { %v693_v24 = vadd.f32 0.5, %v692_v23  ;;  %v2570_v59 = vor.u32 %v3053_v1, %v2569_v2 }
 0x53c   :  { %v695_v3 = vmul.f32 %v3180_v4, %v691_v63  ;;  %v694_v50 = vmul.f32 %v691_v63, %v590_v35  ;;  %v3052_v4 = vld [vmem:[%s4324_s2 + $0x24] sm:$0xf] }
 0x53e   :  { %697 = vrot.lane.b32.xlu0 %v695_v3, %s3314_s3  ;;  %771 = vmatpush.bf16.msrb.mxu0 %v2520_v52  ;;  %v2571_v3 = vld [vmem:[%s4324_s2 + $0x28] sm:$0xf0] }
 0x53f   :  { %784 = vmatpush.bf16.msrb.mxu1 %v2524_v22  ;;  %v2574_v30 = vor.u32 %v3052_v4, %v2571_v3  ;;  %v3057_v4 = vld [vmem:[%s4324_s2 + $0x4] sm:$0xf0]  ;;  %v3056_v3 = vld [vmem:[%s4324_s2 + $0x4] sm:$0xf] }
 0x5b0   :  { %v698_v53 = vpop.permute.xlu0 %697 }
 0x5b1   :  { %v700_v62 = vadd.f32 %v698_v53, %v694_v50 }
 0x5b3   :  { %3181 = vtanh.f32 %v700_v62 }
 0x5b9   :  { %v3182_v25 = vpop.eup %3181 }
 0x5ba   :  { %v3791_v26 = vmul.f32 %v3182_v25, %v693_v24 }
 0x5bc   :  { %v709_v27 = vpack.c.bf16 %v3791_v26, %v3791_v26 }
 0x5be   :  { %719 = vrot.lane.b32.xlu1 %v709_v27, %s3314_s3 }
 0x630   :  { %v720_v28 = vpop.permute.xlu1 %719 }
 0x631   :  { %2549 = vmatmul.msk.bf16.vlgmr.msrb.gmra.mxu0 %vm318_vm1, %v720_v28  ;;  %2550 = vmatmul.msk.bf16.vlgmr.msrb.gmra.mxu1 %vm318_vm1, %v720_v28 }
 0x6ae   :  { %v773_v29 = vpop.f32.mrf.mxu0  ;;  %v786_v34 = vpop.f32.mrf.mxu1 }
 0x6af   :  { %v796_v35 = vadd.f32 %v3514_v18, %v773_v29  ;;  %v797_v36 = vadd.f32 %v3516_v19, %v786_v34  ;;  %v3055_v18 = vld [vmem:[%s4324_s2 + $0x34] sm:$0xf0]  ;;  %v3054_v19 = vld [vmem:[%s4324_s2 + $0x34] sm:$0xf] }
 0x6b0   :  { %v2578_v56 = vor.u32 %v3055_v18, %v2577_v54  ;;  %v2582_v63 = vor.u32 %v3054_v19, %v2579_v0  ;;  %v2595_v18 = vld [vmem:[%s4324_s2 + $0x10] sm:$0xf]  ;;  %v3059_v19 = vld [vmem:[%s4324_s2 + $0x14] sm:$0xf0]  ;;  %v2597_v0 = vld [vmem:[%s4324_s2 + $0x18] sm:$0xf0] }
 0x6b1   :  { %3183 = vtanh.f32 %v796_v35  ;;  %v2611_v35 = vld [vmem:[%s4324_s2 + $0x30] sm:$0xf]  ;;  %v2596_v2 = vor.u32 %v3059_v19, %v2595_v18 }
 0x6b2   :  { %3185 = vtanh.f32 %v797_v36  ;;  %878 = vmatpush.bf16.msrb.mxu2 %v2578_v56  ;;  %891 = vmatpush.bf16.msrb.mxu3 %v2582_v63  ;;  %v3058_v56 = vld [vmem:[%s4324_s2 + $0x14] sm:$0xf]  ;;  %v2587_v63 = vld [vmem:[%s4324_s2] sm:$0xf] }
 0x6b3   :  { %v2600_v1 = vor.u32 %v3058_v56, %v2597_v0  ;;  %v2621_v56 = vld [vmem:[%s4324_s2] sm:$0xf]  ;;  %v3065_v0 = vld [vmem:[%s4324_s2 + $0x4] sm:$0xf0] }
 0x6b6   :  { %v775_v37 = vpop.f32.mrf.mxu0  ;;  %v788_v38 = vpop.f32.mrf.mxu1  ;;  %879 = vmatpush.bf16.msrb.mxu2 %v2570_v59  ;;  %892 = vmatpush.bf16.msrb.mxu3 %v2574_v30  ;;  %v2589_v59 = vld [vmem:[%s4324_s2 + $0x8] sm:$0xf0]  ;;  %v2588_v30 = vor.u32 %v3057_v4, %v2587_v63  ;;  %v2622_v63 = vor.u32 %v3065_v0, %v2621_v56  ;;  %v2681_v0 = vld [vmem:[%s4326_s4 + $0x38] sm:$0xf0] }
 0x6b7   :  { %v3184_v40 = vpop.eup %3183  ;;  %v2613_v37 = vld [vmem:[%s4324_s2 + $0x38] sm:$0xf0]  ;;  %v2603_v38 = vld [vmem:[%s4324_s2 + $0x20] sm:$0xf]  ;;  %v2592_v31 = vor.u32 %v3056_v3, %v2589_v59  ;;  %v3077_v56 = vld [vmem:[%s4326_s4 + $0x2c] sm:$0xf] }
 0x6b8   :  { %v800_v41 = vmul.f32 0.5, %v3184_v40  ;;  %v3186_v43 = vpop.eup %3185  ;;  %v3061_v40 = vld [vmem:[%s4324_s2 + $0x24] sm:$0xf0] }
 0x6b9   :  { %v802_v21 = vmul.f32 0.5, %v3186_v43 }
 0x6ba   :  { %v801_v42 = vadd.f32 0.5, %v800_v41  ;;  %880 = vmatpush.bf16.msrb.mxu2 %v2562_v12  ;;  %893 = vmatpush.bf16.msrb.mxu3 %v2566_v13 }
 0x6bb   :  { %v803_v5 = vadd.f32 0.5, %v802_v21 }
 0x6bc   :  { %v805_v51 = vmul.f32 %v3186_v43, %v801_v42  ;;  %v804_v58 = vmul.f32 %v801_v42, %v700_v62  ;;  %v3060_v42 = vld [vmem:[%s4324_s2 + $0x24] sm:$0xf]  ;;  %v2605_v43 = vld [vmem:[%s4324_s2 + $0x28] sm:$0xf0] }
 0x6bd   :  { %v2608_v54 = vor.u32 %v3060_v42, %v2605_v43  ;;  %v3067_v42 = vld [vmem:[%s4324_s2 + $0x14] sm:$0xf0]  ;;  %v3066_v43 = vld [vmem:[%s4324_s2 + $0x14] sm:$0xf] }
 0x6be   :  { %807 = vrot.lane.b32.xlu2 %v805_v51, %s3314_s3  ;;  %881 = vmatpush.bf16.msrb.mxu2 %v2554_v55  ;;  %v2604_v51 = vor.u32 %v3061_v40, %v2603_v38 }
 0x6bf   :  { %894 = vmatpush.bf16.msrb.mxu3 %v2558_v16 }
 0x718   :  { %v808_v17 = vpop.permute.xlu2 %807 }
 0x719   :  { %v810_v20 = vadd.f32 %v808_v17, %v804_v58 }
 0x71b   :  { %3187 = vtanh.f32 %v810_v20 }
 0x721   :  { %v3188_v6 = vpop.eup %3187 }
 0x722   :  { %v3849_v49 = vmul.f32 %v3188_v6, %v803_v5 }
 0x724   :  { %v819_v60 = vpack.c.bf16 %v3849_v49, %v3849_v49 }
 0x726   :  { %829 = vrot.lane.b32.xlu0 %v819_v60, %s3314_s3 }
 0x798   :  { %v830_v52 = vpop.permute.xlu0 %829 }
 0x799   :  { %2583 = vmatmul.msk.bf16.vlgmr.msrb.gmra.mxu2 %vm318_vm1, %v830_v52  ;;  %2584 = vmatmul.msk.bf16.vlgmr.msrb.gmra.mxu3 %vm318_vm1, %v830_v52 }
 0x81c   :  { %v883_v22 = vpop.f32.mrf.mxu2  ;;  %v896_v50 = vpop.f32.mrf.mxu3 }
 0x81d   :  { %v906_v53 = vadd.f32 %v3528_v32, %v883_v22  ;;  %v907_v62 = vadd.f32 %v3530_v33, %v896_v50  ;;  %v3063_v32 = vld [vmem:[%s4324_s2 + $0x34] sm:$0xf0]  ;;  %v3062_v33 = vld [vmem:[%s4324_s2 + $0x34] sm:$0xf] }
 0x81e   :  { %v2612_v36 = vor.u32 %v3063_v32, %v2611_v35  ;;  %v2616_v41 = vor.u32 %v3062_v33, %v2613_v37  ;;  %v3068_v32 = vld [vmem:[%s4324_s2 + $0x24] sm:$0xf]  ;;  %v2639_v33 = vld [vmem:[%s4324_s2 + $0x28] sm:$0xf0] }
 0x81f   :  { %3189 = vtanh.f32 %v906_v53  ;;  %v2642_v40 = vor.u32 %v3068_v32, %v2639_v33 }
 0x820   :  { %3191 = vtanh.f32 %v907_v62  ;;  %988 = vmatpush.bf16.msra.mxu0 %v2612_v36  ;;  %1001 = vmatpush.bf16.msra.mxu1 %v2616_v41  ;;  %v2629_v41 = vld [vmem:[%s4324_s2 + $0x10] sm:$0xf] }
 0x821   :  { %v2630_v18 = vor.u32 %v3067_v42, %v2629_v41  ;;  %v3079_v41 = vld [vmem:[%s4326_s4 + $0x34] sm:$0xf0]  ;;  %v2671_v42 = vld [vmem:[%s4326_s4 + $0x20] sm:$0xf] }
 0x824   :  { %v885_v23 = vpop.f32.mrf.mxu2  ;;  %v898_v24 = vpop.f32.mrf.mxu3  ;;  %989 = vmatpush.bf16.msra.mxu0 %v2604_v51  ;;  %1002 = vmatpush.bf16.msra.mxu1 %v2608_v54  ;;  %v2631_v51 = vld [vmem:[%s4324_s2 + $0x18] sm:$0xf0] }
 0x825   :  { %v3190_v25 = vpop.eup %3189  ;;  %v3071_v23 = vld [vmem:[%s4324_s2 + $0x34] sm:$0xf0]  ;;  %v2634_v19 = vor.u32 %v3066_v43, %v2631_v51  ;;  %v3078_v51 = vld [vmem:[%s4326_s4 + $0x2c] sm:$0xf0] }
 0x826   :  { %v910_v27 = vmul.f32 0.5, %v3190_v25  ;;  %v3192_v29 = vpop.eup %3191  ;;  %v2647_v25 = vld [vmem:[%s4324_s2 + $0x38] sm:$0xf0] }
 0x827   :  { %v912_v12 = vmul.f32 0.5, %v3192_v29 }
 0x828   :  { %v911_v28 = vadd.f32 0.5, %v910_v27  ;;  %990 = vmatpush.bf16.msra.mxu0 %v2596_v2  ;;  %1003 = vmatpush.bf16.msra.mxu1 %v2600_v1  ;;  %v2637_v27 = vld [vmem:[%s4324_s2 + $0x20] sm:$0xf]  ;;  %v3064_v2 = vld [vmem:[%s4324_s2 + $0x4] sm:$0xf] }
 0x829   :  { %v913_v13 = vadd.f32 0.5, %v912_v12  ;;  %v2623_v1 = vld [vmem:[%s4324_s2 + $0x8] sm:$0xf0] }
 0x82a   :  { %v915_v34 = vmul.f32 %v3192_v29, %v911_v28  ;;  %v914_v9 = vmul.f32 %v911_v28, %v810_v20  ;;  %v3069_v28 = vld [vmem:[%s4324_s2 + $0x24] sm:$0xf0]  ;;  %v2626_v4 = vor.u32 %v3064_v2, %v2623_v1  ;;  %v2684_v1 = vor.u32 %v3077_v56, %v2681_v0 }
 0x82b   :  { %v2638_v37 = vor.u32 %v3069_v28, %v2637_v27  ;;  %v2697_v27 = vld [vmem:[%s4326_s4 + $0x58] sm:$0xf0]  ;;  %v2663_v2 = vld [vmem:[%s4326_s4 + $0x8] sm:$0xf] }
 0x82c   :  { %917 = vrot.lane.b32.xlu1 %v915_v34, %s3314_s3  ;;  %991 = vmatpush.bf16.msra.mxu0 %v2588_v30 }
 0x82d   :  { %1004 = vmatpush.bf16.msra.mxu1 %v2592_v31 }
 0x89e   :  { %v918_v10 = vpop.permute.xlu1 %917 }
 0x89f   :  { %v920_v11 = vadd.f32 %v918_v10, %v914_v9 }
 0x8a1   :  { %3193 = vtanh.f32 %v920_v11 }
 0x8a7   :  { %v3194_v14 = vpop.eup %3193 }
 0x8a8   :  { %v3907_v15 = vmul.f32 %v3194_v14, %v913_v13 }
 0x8aa   :  { %v929_v44 = vpack.c.bf16 %v3907_v15, %v3907_v15 }
 0x8ac   :  { %939 = vrot.lane.b32.xlu2 %v929_v44, %s3314_s3 }
 0x906   :  { %v940_v45 = vpop.permute.xlu2 %939 }
 0x907   :  { %2617 = vmatmul.msk.bf16.vlgmr.msra.gmra.mxu0 %vm318_vm1, %v940_v45  ;;  %2618 = vmatmul.msk.bf16.vlgmr.msra.gmra.mxu1 %vm318_vm1, %v940_v45 }
 0x984   :  { %v993_v55 = vpop.f32.mrf.mxu0  ;;  %v1006_v16 = vpop.f32.mrf.mxu1 }
 0x985   :  { %v1016_v58 = vadd.f32 %v3542_v46, %v993_v55  ;;  %v1017_v17 = vadd.f32 %v3544_v47, %v1006_v16  ;;  %v2645_v47 = vld [vmem:[%s4324_s2 + $0x30] sm:$0xf]  ;;  %v2703_v55 = vld [vmem:[%s4326_s4 + $0x60] sm:$0xf] }
 0x986   :  { %v2646_v24 = vor.u32 %v3071_v23, %v2645_v47  ;;  %v3080_v23 = vld [vmem:[%s4326_s4 + $0x44] sm:$0xf] }
 0x987   :  { %3195 = vtanh.f32 %v1016_v58  ;;  %v3086_v58 = vld [vmem:[%s4326_s4 + $0x6c] sm:$0xf0] }
 0x988   :  { %3197 = vtanh.f32 %v1017_v17  ;;  %1098 = vmatpush.bf16.msra.mxu2 %v2646_v24  ;;  %v2705_v17 = vld [vmem:[%s4326_s4 + $0x70] sm:$0xf0]  ;;  %v3081_v24 = vld [vmem:[%s4326_s4 + $0x4c] sm:$0xf] }
 0x989   :  { %v2700_v28 = vor.u32 %v3081_v24, %v2697_v27  ;;  %v2735_v24 = vld [vmem:[#allocation4] sm:$0xf]  ;;  %v3088_v27 = vld [vmem:[#allocation4 + $0x4] sm:$0xf] }
 0x98c   :  { %v995_v20 = vpop.f32.mrf.mxu0  ;;  %v1008_v21 = vpop.f32.mrf.mxu1  ;;  %1099 = vmatpush.bf16.msra.mxu2 %v2638_v37 }
 0x98d   :  { %v3196_v5 = vpop.eup %3195  ;;  %v2704_v20 = vor.u32 %v3086_v58, %v2703_v55  ;;  %v3092_v55 = vld [vmem:[#allocation4 + $0x24] sm:$0xf]  ;;  %v2753_v58 = vld [vmem:[#allocation4 + $0x28] sm:$0xf0] }
 0x98e   :  { %v1020_v6 = vmul.f32 0.5, %v3196_v5  ;;  %v3198_v52 = vpop.eup %3197  ;;  %v3085_v5 = vld [vmem:[%s4326_s4 + $0x6c] sm:$0xf] }
 0x98f   :  { %v1022_v46 = vmul.f32 0.5, %v3198_v52  ;;  %1283 = vmatpush.bf16.msrb.mxu0 %v2704_v20 }
 0x990   :  { %v1021_v60 = vadd.f32 0.5, %v1020_v6  ;;  %1100 = vmatpush.bf16.msra.mxu2 %v2630_v18  ;;  %v2713_v6 = vld [vmem:[%s4326_s4 + $0x78] sm:$0xf0]  ;;  %v2672_v18 = vor.u32 %v3078_v51, %v2671_v42 }
 0x991   :  { %v1023_v34 = vadd.f32 0.5, %v1022_v46 }
 0x992   :  { %v1025_v22 = vmul.f32 %v3198_v52, %v1021_v60  ;;  %v1024_v50 = vmul.f32 %v1021_v60, %v920_v11  ;;  %v2695_v60 = vld [vmem:[%s4326_s4 + $0x48] sm:$0xf]  ;;  %v2716_v52 = vor.u32 %v3085_v5, %v2713_v6 }
 0x994   :  { %1027 = vrot.lane.b32.xlu0 %v1025_v22, %s3314_s3  ;;  %1101 = vmatpush.bf16.msra.mxu2 %v2622_v63  ;;  %v3083_v22 = vld [vmem:[%s4326_s4 + $0x54] sm:$0xf0] }
 0x995   :  { %v2696_v46 = vor.u32 %v3083_v22, %v2695_v60  ;;  %v3075_v63 = vld [vmem:[%s4326_s4 + $0x14] sm:$0xf0]  ;;  %v2743_v60 = vld [vmem:[#allocation4 + $0x10] sm:$0xf]  ;;  %v3090_v22 = vld [vmem:[#allocation4 + $0x14] sm:$0xf] }
 0x99c   :  { %372 = vrot.lane.b32.xlu0 %v3617_v8, %s3314_s3  ;;  %v3070_v8 = vld [vmem:[%s4324_s2 + $0x34] sm:$0xf] }
 0x99d   :  { %v2650_v35 = vor.u32 %v3070_v8, %v2647_v25  ;;  %v2689_v8 = vld [vmem:[%s4326_s4 + $0x50] sm:$0xf0] }
 0x99e   :  { %v2692_v25 = vor.u32 %v3080_v23, %v2689_v8 }
 0x99f   :  { %1111 = vmatpush.bf16.msra.mxu3 %v2650_v35 }
 0x9a3   :  { %1112 = vmatpush.bf16.msra.mxu3 %v2642_v40 }
 0x9a7   :  { %1113 = vmatpush.bf16.msra.mxu3 %v2634_v19 }
 0x9ab   :  { %1114 = vmatpush.bf16.msra.mxu3 %v2626_v4  ;;  %v2655_v4 = vld [vmem:[%s4326_s4] sm:$0xf] }
 0x9af   :  { %1370 = vmatpush.bf16.msrb.mxu3 %v2716_v52  ;;  %v3091_v52 = vld [vmem:[#allocation4 + $0x14] sm:$0xf0] }
 0x9b3   :  { %1371 = vmatpush.bf16.msrb.mxu3 %v2700_v28 }
 0x9b7   :  { %1372 = vmatpush.bf16.msrb.mxu3 %v2684_v1 }
 0xa06   :  { %v1028_v53 = vpop.permute.xlu0 %1027 }
 0xa07   :  { %v3919_v62 = vadd.f32 %v1028_v53, %v1024_v50  ;;  %v2687_v50 = vld [vmem:[%s4326_s4 + $0x40] sm:$0xf]  ;;  %v3082_v53 = vld [vmem:[%s4326_s4 + $0x4c] sm:$0xf0] }
 0xa08   :  { %v2688_v47 = vor.u32 %v3082_v53, %v2687_v50  ;;  %v2744_v50 = vor.u32 %v3091_v52, %v2743_v60  ;;  %v2745_v53 = vld [vmem:[#allocation4 + $0x18] sm:$0xf0] }
 0xa09   :  { %3199 = vtanh.f32 %v3919_v62 }
 0xa0a   :  { %1284 = vmatpush.bf16.msrb.mxu0 %v2688_v47 }
 0xa0e   :  { %v373_v29 = vpop.permute.xlu0 %372  ;;  %1285 = vmatpush.bf16.msrb.mxu0 %v2672_v18 }
 0xa0f   :  { %v3200_v36 = vpop.eup %3199  ;;  %376 = vst.msk [vmem:[#allocation3] sm:$0xff] %vm375_vm2, %v373_v29 }
 0xa10   :  { %378 = vst.msk [vmem:[#allocation3 + $0x38] sm:$0xff] %vm377_vm3, %v373_v29  ;;  %v1032_v38 = vmul.f32 %v3200_v36, %v1023_v34 }
 0xa12   :  { %v1039_v54 = vpack.c.bf16 %v1032_v38, %v1032_v38 }
 0xa14   :  { %1049 = vrot.lane.b32.xlu1 %v1039_v54, %s3314_s3  ;;  %v2673_v54 = vld [vmem:[%s4326_s4 + $0x30] sm:$0xf0] }
 0xa1c   :  { %484 = vrot.lane.b32.xlu1 %v3675_v61, %s3314_s3 }
 0xa24   :  { %594 = vrot.lane.b32.xlu1 %v3733_v39, %s3314_s3 }
 0xa2c   :  { %924 = vrot.lane.b32.xlu1 %v3907_v15, %s3314_s3 }
 0xa86   :  { %v1050_v3 = vpop.permute.xlu1 %1049 }
 0xa87   :  { %2651 = vmatmul.msk.bf16.vlgmr.msra.gmra.mxu2 %vm318_vm1, %v1050_v3  ;;  %2652 = vmatmul.msk.bf16.vlgmr.msra.gmra.mxu3 %vm318_vm1, %v1050_v3  ;;  %v3074_v3 = vld [vmem:[%s4326_s4 + $0xc] sm:$0xf0] }
 0xa8e   :  { %v485_v59 = vpop.permute.xlu1 %484 }
 0xa8f   :  { %487 = vst.msk [vmem:[#allocation3 + $0x8] sm:$0xff] %vm375_vm2, %v485_v59 }
 0xa90   :  { %488 = vst.msk [vmem:[#allocation3 + $0x30] sm:$0xff] %vm377_vm3, %v485_v59  ;;  %v2664_v59 = vor.u32 %v3075_v63, %v2663_v2 }
 0xa96   :  { %v595_v30 = vpop.permute.xlu1 %594 }
 0xa97   :  { %597 = vst.msk [vmem:[#allocation3 + $0x10] sm:$0xff] %vm375_vm2, %v595_v30 }
 0xa98   :  { %598 = vst.msk [vmem:[#allocation3 + $0x28] sm:$0xff] %vm377_vm3, %v595_v30  ;;  %v2656_v30 = vor.u32 %v3074_v3, %v2655_v4 }
 0xa9a   :  { %1286 = vmatpush.bf16.msrb.mxu0 %v2656_v30 }
 0xa9e   :  { %v925_v61 = vpop.permute.xlu1 %924 }
 0xa9f   :  { %927 = vst.msk [vmem:[#allocation3 + $0x28] sm:$0xff] %vm375_vm2, %v925_v61 }
 0xaa0   :  { %928 = vst.msk [vmem:[#allocation3 + $0x10] sm:$0xff] %vm377_vm3, %v925_v61  ;;  %v3072_v61 = vld [vmem:[%s4326_s4 + $0x4] sm:$0xf] }
 0xaa7   :  { %v1151_v23 = vld [vmem:[#allocation3 + $0x10] sm:$0xff] }
 0xb0a   :  { %v1103_v39 = vpop.f32.mrf.mxu2  ;;  %v1116_v31 = vpop.f32.mrf.mxu3 }
 0xb0b   :  { %v1126_v9 = vadd.f32 %v3557_v7, %v1103_v39  ;;  %v1127_v10 = vadd.f32 %v3560_v57, %v1116_v31  ;;  %v2711_v7 = vld [vmem:[%s4326_s4 + $0x68] sm:$0xf]  ;;  %v3087_v57 = vld [vmem:[%s4326_s4 + $0x74] sm:$0xf0]  ;;  %v2657_v39 = vld [vmem:[%s4326_s4 + $0x10] sm:$0xf0] }
 0xb0c   :  { %v2712_v16 = vor.u32 %v3087_v57, %v2711_v7  ;;  %v3073_v31 = vld [vmem:[%s4326_s4 + $0xc] sm:$0xf]  ;;  %v2751_v7 = vld [vmem:[#allocation4 + $0x20] sm:$0xf]  ;;  %v3093_v57 = vld [vmem:[#allocation4 + $0x24] sm:$0xf0] }
 0xb0d   :  { %3201 = vtanh.f32 %v1126_v9  ;;  %v2660_v9 = vor.u32 %v3072_v61, %v2657_v39 }
 0xb0e   :  { %3203 = vtanh.f32 %v1127_v10  ;;  %1341 = vmatpush.bf16.msrb.mxu2 %v2712_v16  ;;  %v2665_v10 = vld [vmem:[%s4326_s4 + $0x18] sm:$0xf0]  ;;  %v2752_v16 = vor.u32 %v3093_v57, %v2751_v7 }
 0xb12   :  { %v1105_v11 = vpop.f32.mrf.mxu2  ;;  %v1118_v12 = vpop.f32.mrf.mxu3  ;;  %1342 = vmatpush.bf16.msrb.mxu2 %v2696_v46  ;;  %v2748_v46 = vor.u32 %v3090_v22, %v2745_v53 }
 0xb13   :  { %v3202_v13 = vpop.eup %3201  ;;  %v2668_v11 = vor.u32 %v3073_v31, %v2665_v10  ;;  %v2759_v12 = vld [vmem:[#allocation4 + $0x30] sm:$0xf] }
 0xb14   :  { %v1130_v14 = vmul.f32 0.5, %v3202_v13  ;;  %v3204_v44 = vpop.eup %3203  ;;  %v3095_v13 = vld [vmem:[#allocation4 + $0x34] sm:$0xf0] }
 0xb15   :  { %v1132_v32 = vmul.f32 0.5, %v3204_v44  ;;  %1373 = vmatpush.bf16.msrb.mxu3 %v2668_v11 }
 0xb16   :  { %v1131_v15 = vadd.f32 0.5, %v1130_v14  ;;  %v3094_v14 = vld [vmem:[#allocation4 + $0x34] sm:$0xf] }
 0xb17   :  { %v1133_v36 = vadd.f32 0.5, %v1132_v32  ;;  %v1154_v32 = vld [vmem:[#allocation3 + $0x28] sm:$0xff] }
 0xb18   :  { %v1135_v45 = vmul.f32 %v3204_v44, %v1131_v15  ;;  %v1134_v29 = vmul.f32 %v1131_v15, %v3919_v62  ;;  %v2679_v62 = vld [vmem:[%s4326_s4 + $0x28] sm:$0xf]  ;;  %v2760_v15 = vor.u32 %v3095_v13, %v2759_v12  ;;  %v2761_v44 = vld [vmem:[#allocation4 + $0x38] sm:$0xf0] }
 0xb19   :  { %v2680_v43 = vor.u32 %v3079_v41, %v2679_v62  ;;  %v1177_v41 = vld [vmem:[#allocation6] sm:$0xf] }
 0xb1a   :  { %1137 = vrot.lane.b32.xlu2 %v1135_v45, %s3314_s3  ;;  %v2764_v45 = vor.u32 %v3094_v14, %v2761_v44  ;;  %1479 = vmatpush.bf16.msra.mxu0 %v2760_v15  ;;  %v4123_v42 = vperm.slane %v1177_v41, 2  ;;  %v4127_v51 = vperm.slane %v1177_v41, 0 }
 0xb1b   :  { %1343 = vmatpush.bf16.msrb.mxu2 %v2680_v43  ;;  %v4125_v43 = vperm.slane %v1177_v41, 3 }
 0xb1e   :  { %1480 = vmatpush.bf16.msra.mxu0 %v2752_v16 }
 0xb1f   :  { %1344 = vmatpush.bf16.msrb.mxu2 %v2664_v59 }
 0xb22   :  { %1034 = vrot.lane.b32.xlu2 %v1032_v38, %s3314_s3  ;;  %1481 = vmatpush.bf16.msra.mxu0 %v2744_v50 }
 0xb2a   :  { %704 = vrot.lane.b32.xlu2 %v3791_v26, %s3314_s3  ;;  %v3084_v26 = vld [vmem:[%s4326_s4 + $0x64] sm:$0xf] }
 0xb2b   :  { %v2708_v21 = vor.u32 %v3084_v26, %v2705_v17  ;;  %v2756_v26 = vor.u32 %v3092_v55, %v2753_v58 }
 0xb2d   :  { %1312 = vmatpush.bf16.msrb.mxu1 %v2708_v21 }
 0xb31   :  { %1313 = vmatpush.bf16.msrb.mxu1 %v2692_v25  ;;  %v3089_v25 = vld [vmem:[#allocation4 + $0x4] sm:$0xf0] }
 0xb32   :  { %v2736_v28 = vor.u32 %v3089_v25, %v2735_v24 }
 0xb34   :  { %1482 = vmatpush.bf16.msra.mxu0 %v2736_v28 }
 0xb74   :  { %v1138_v34 = vpop.permute.xlu2 %1137 }
 0xb75   :  { %v1140_v35 = vadd.f32 %v1138_v34, %v1134_v29  ;;  %v2737_v29 = vld [vmem:[#allocation4 + $0x8] sm:$0xf0] }
 0xb76   :  { %v2740_v34 = vor.u32 %v3088_v27, %v2737_v29 }
 0xb77   :  { %3205 = vtanh.f32 %v1140_v35 }
 0xb7c   :  { %v1035_v33 = vpop.permute.xlu2 %1034 }
 0xb7d   :  { %v3206_v37 = vpop.eup %3205  ;;  %1037 = vst.msk [vmem:[#allocation3 + $0x30] sm:$0xff] %vm375_vm2, %v1035_v33 }
 0xb7e   :  { %1038 = vst.msk [vmem:[#allocation3 + $0x8] sm:$0xff] %vm377_vm3, %v1035_v33  ;;  %v1142_v38 = vmul.f32 %v3206_v37, %v1133_v36 }
 0xb80   :  { %1144 = vrot.lane.b32.xlu0 %v1142_v38, %s3314_s3 }
 0xb84   :  { %v705_v40 = vpop.permute.xlu2 %704  ;;  %v1155_v37 = vld [vmem:[#allocation3 + $0x30] sm:$0xff] }
 0xb85   :  { %707 = vst.msk [vmem:[#allocation3 + $0x18] sm:$0xff] %vm375_vm2, %v705_v40  ;;  %v1150_v5 = vld [vmem:[#allocation3 + $0x8] sm:$0xff] }
 0xb86   :  { %708 = vst.msk [vmem:[#allocation3 + $0x20] sm:$0xff] %vm377_vm3, %v705_v40 }
 0xb88   :  { %814 = vrot.lane.b32.xlu0 %v3849_v49, %s3314_s3  ;;  %v3076_v49 = vld [vmem:[%s4326_s4 + $0x24] sm:$0xf] }
 0xb89   :  { %v2676_v19 = vor.u32 %v3076_v49, %v2673_v54  ;;  %v4129_v49 = vperm.slane %v1177_v41, 1 }
 0xb8b   :  { %1314 = vmatpush.bf16.msrb.mxu1 %v2676_v19 }
 0xb8f   :  { %1315 = vmatpush.bf16.msrb.mxu1 %v2660_v9 }
 0xb93   :  { %1492 = vmatpush.bf16.msra.mxu1 %v2764_v45 }
 0xb97   :  { %1493 = vmatpush.bf16.msra.mxu1 %v2756_v26 }
 0xb9b   :  { %1494 = vmatpush.bf16.msra.mxu1 %v2748_v46 }
 0xb9f   :  { %1495 = vmatpush.bf16.msra.mxu1 %v2740_v34 }
 0xbf2   :  { %v1145_v17 = vpop.permute.xlu0 %1144 }
 0xbf3   :  { %1147 = vst.msk [vmem:[#allocation3 + $0x38] sm:$0xff] %vm375_vm2, %v1145_v17 }
 0xbf4   :  { %1148 = vst.msk [vmem:[#allocation3] sm:$0xff] %vm377_vm3, %v1145_v17 }
 0xbfa   :  { %v815_v20 = vpop.permute.xlu0 %814  ;;  %v1156_v36 = vld [vmem:[#allocation3 + $0x38] sm:$0xff] }
 0xbfb   :  { %817 = vst.msk [vmem:[#allocation3 + $0x20] sm:$0xff] %vm375_vm2, %v815_v20  ;;  %v1149_v21 = vld [vmem:[#allocation3] sm:$0xff]  ;;  %v1160_v38 = vpack.c.bf16 %v1156_v36, %v1155_v37 }
 0xbfc   :  { %818 = vst.msk [vmem:[#allocation3 + $0x18] sm:$0xff] %vm377_vm3, %v815_v20  ;;  %v1157_v6 = vpack.c.bf16 %v1150_v5, %v1149_v21 }
 0xbfe   :  { %2717 = vmatmul.msk.bf16.vlgmr.msrb.gmra.mxu0 %vm318_vm1, %v1157_v6  ;;  %2721 = vmatmul.msk.bf16.vlgmr.msrb.gmra.mxu1 %vm318_vm1, %v1157_v6 }
 0xbff   :  { %2725 = vmatmul.msk.bf16.vlgmr.msrb.gmra.mxu2 %vm318_vm1, %v1157_v6  ;;  %2729 = vmatmul.msk.bf16.vlgmr.msrb.gmra.mxu3 %vm318_vm1, %v1157_v6 }
 0xc02   :  { %v1153_v35 = vld [vmem:[#allocation3 + $0x20] sm:$0xff] }
 0xc03   :  { %v1152_v47 = vld [vmem:[#allocation3 + $0x18] sm:$0xff]  ;;  %v1159_v33 = vpack.c.bf16 %v1154_v32, %v1153_v35 }
 0xc04   :  { %v1158_v8 = vpack.c.bf16 %v1152_v47, %v1151_v23 }
 0xc0e   :  { %2718 = vmatmul.msk.bf16.gmra.mxu0 %vm318_vm1, %v1158_v8  ;;  %2722 = vmatmul.msk.bf16.gmra.mxu1 %vm318_vm1, %v1158_v8 }
 0xc0f   :  { %2726 = vmatmul.msk.bf16.gmra.mxu2 %vm318_vm1, %v1158_v8  ;;  %2730 = vmatmul.msk.bf16.gmra.mxu3 %vm318_vm1, %v1158_v8 }
 0xc1e   :  { %2719 = vmatmul.msk.bf16.gmra.mxu0 %vm318_vm1, %v1159_v33  ;;  %2723 = vmatmul.msk.bf16.gmra.mxu1 %vm318_vm1, %v1159_v33 }
 0xc1f   :  { %2727 = vmatmul.msk.bf16.gmra.mxu2 %vm318_vm1, %v1159_v33  ;;  %2731 = vmatmul.msk.bf16.gmra.mxu3 %vm318_vm1, %v1159_v33 }
 0xc2e   :  { %2720 = vmatmul.msk.bf16.gmra.mxu0 %vm318_vm1, %v1160_v38  ;;  %2724 = vmatmul.msk.bf16.gmra.mxu1 %vm318_vm1, %v1160_v38 }
 0xc2f   :  { %2728 = vmatmul.msk.bf16.gmra.mxu2 %vm318_vm1, %v1160_v38  ;;  %2732 = vmatmul.msk.bf16.gmra.mxu3 %vm318_vm1, %v1160_v38 }
 0xc3e   :  { %1483 = vmatmul.bf16.vlgmr.msra.gmra.mxu0 %v3313_v48  ;;  %1496 = vmatmul.bf16.vlgmr.msra.gmra.mxu1 %v3313_v48 }
 0xc7b   :  { %v4119_v40 = vpop.f32.mrf.mxu0  ;;  %v4121_v62 = vpop.f32.mrf.mxu1 }
 0xc82   :  { %v1346_v54 = vpop.f32.mrf.mxu2  ;;  %v1375_v18 = vpop.f32.mrf.mxu3 }
 0xc83   :  { %v4132_v19 = vadd.f32 %v1346_v54, %v4123_v42  ;;  %v4135_v48 = vadd.f32 %v1375_v18, %v4125_v43  ;;  %v1290_v56 = vpop.f32.mrf.mxu0  ;;  %v1319_v0 = vpop.f32.mrf.mxu1 }
 0xc84   :  { %v1291_v2 = vadd.f32 %v1290_v56, %v4127_v51  ;;  %v1320_v1 = vadd.f32 %v1319_v0, %v4129_v49 }
 0xc8a   :  { %v1348_v63 = vpop.f32.mrf.mxu2  ;;  %v1377_v4 = vpop.f32.mrf.mxu3 }
 0xc8b   :  { %v1349_v3 = vadd.f32 %v1348_v63, %v4123_v42  ;;  %v1378_v59 = vadd.f32 %v1377_v4, %v4125_v43  ;;  %v1293_v30 = vpop.f32.mrf.mxu0  ;;  %v1322_v61 = vpop.f32.mrf.mxu1 }
 0xc8c   :  { %v1294_v39 = vadd.f32 %v1293_v30, %v4127_v51  ;;  %v1323_v31 = vadd.f32 %v1322_v61, %v4129_v49 }
 0xc92   :  { %v1351_v9 = vpop.f32.mrf.mxu2  ;;  %v1380_v10 = vpop.f32.mrf.mxu3 }
 0xc93   :  { %v1352_v11 = vadd.f32 %v1351_v9, %v4123_v42  ;;  %v1381_v12 = vadd.f32 %v1380_v10, %v4125_v43  ;;  %v1295_v13 = vpop.f32.mrf.mxu0  ;;  %v1324_v14 = vpop.f32.mrf.mxu1 }
 0xc94   :  { %v1296_v15 = vadd.f32 %v1295_v13, %v4127_v51  ;;  %v1325_v44 = vadd.f32 %v1324_v14, %v4129_v49 }
 0xc9a   :  { %v1353_v45 = vpop.f32.mrf.mxu2  ;;  %v1382_v7 = vpop.f32.mrf.mxu3 }
 0xc9b   :  { %v1354_v57 = vadd.f32 %v1353_v45, %v4123_v42  ;;  %v1383_v55 = vadd.f32 %v1382_v7, %v4125_v43  ;;  %v1298_v16 = vpop.f32.mrf.mxu0  ;;  %v1327_v58 = vpop.f32.mrf.mxu1 }
 0xc9c   :  { %v1299_v26 = vadd.f32 %v1298_v16, %v4127_v51  ;;  %v1328_v17 = vadd.f32 %v1327_v58, %v4129_v49  ;;  %v2793_v58 = vld [vmem:[#allocation4 + $0x38] sm:$0xf0] }
 0xc9e   :  { %v4151_v20 = vadd.f32 %v1354_v57, %v1299_v26  ;;  %v4153_v21 = vadd.f32 %v1383_v55, %v1328_v17  ;;  %v2783_v26 = vld [vmem:[#allocation4 + $0x20] sm:$0xf]  ;;  %v3101_v17 = vld [vmem:[#allocation4 + $0x24] sm:$0xf0] }
 0xca2   :  { %v1356_v5 = vpop.f32.mrf.mxu2  ;;  %v1385_v6 = vpop.f32.mrf.mxu3 }
 0xca3   :  { %v1357_v60 = vadd.f32 %v1356_v5, %v4123_v42  ;;  %v1386_v52 = vadd.f32 %v1385_v6, %v4125_v43  ;;  %v1300_v22 = vpop.f32.mrf.mxu0  ;;  %v1329_v50 = vpop.f32.mrf.mxu1  ;;  %v3100_v6 = vld [vmem:[#allocation4 + $0x24] sm:$0xf] }
 0xca4   :  { %v1301_v53 = vadd.f32 %v1300_v22, %v4127_v51  ;;  %v1330_v46 = vadd.f32 %v1329_v50, %v4129_v49  ;;  %v2775_v50 = vld [vmem:[#allocation4 + $0x10] sm:$0xf] }
 0xca5   :  { %v4159_v47 = vadd.f32 %v1357_v60, %v1296_v15  ;;  %v4161_v23 = vadd.f32 %v1386_v52, %v1325_v44  ;;  %v2785_v60 = vld [vmem:[#allocation4 + $0x28] sm:$0xf0]  ;;  %v2784_v52 = vor.u32 %v3101_v17, %v2783_v26  ;;  %v3107_v26 = vld [vmem:[#allocation4 + $0x14] sm:$0xf0]  ;;  %v3106_v17 = vld [vmem:[#allocation4 + $0x14] sm:$0xf] }
 0xca6   :  { %v4163_v8 = vadd.f32 %v1352_v11, %v1301_v53  ;;  %v4165_v24 = vadd.f32 %v1381_v12, %v1330_v46  ;;  %v1289_v11 = vadd.f32 %v4119_v40, %v4127_v51  ;;  %v1318_v12 = vadd.f32 %v4121_v62, %v4129_v49  ;;  %v2791_v62 = vld [vmem:[#allocation4 + $0x30] sm:$0xf]  ;;  %v3099_v53 = vld [vmem:[#allocation4 + $0x14] sm:$0xf0]  ;;  %v3098_v46 = vld [vmem:[#allocation4 + $0x14] sm:$0xf] }
 0xca7   :  { %v2788_v22 = vor.u32 %v3100_v6, %v2785_v60 }
 0xcaa   :  { %v1358_v25 = vpop.f32.mrf.mxu2  ;;  %v1387_v27 = vpop.f32.mrf.mxu3 }
 0xcab   :  { %v1359_v28 = vadd.f32 %v1358_v25, %v4123_v42  ;;  %v1388_v29 = vadd.f32 %v1387_v27, %v4125_v43  ;;  %v1303_v34 = vpop.f32.mrf.mxu0  ;;  %v1332_v35 = vpop.f32.mrf.mxu1  ;;  %v2777_v25 = vld [vmem:[#allocation4 + $0x18] sm:$0xf0]  ;;  %v2776_v27 = vor.u32 %v3099_v53, %v2775_v50  ;;  %v3104_v50 = vld [vmem:[#allocation4 + $0x4] sm:$0xf]  ;;  %v2803_v53 = vld [vmem:[#allocation4 + $0x8] sm:$0xf0] }
 0xcac   :  { %v1304_v32 = vadd.f32 %v1303_v34, %v4127_v51  ;;  %v1333_v33 = vadd.f32 %v1332_v35, %v4129_v49  ;;  %v3097_v34 = vld [vmem:[#allocation4 + $0x4] sm:$0xf0]  ;;  %v3096_v35 = vld [vmem:[#allocation4 + $0x4] sm:$0xf] }
 0xcad   :  { %v4171_v36 = vadd.f32 %v1359_v28, %v1294_v39  ;;  %v4173_v37 = vadd.f32 %v1388_v29, %v1323_v31  ;;  %v2780_v28 = vor.u32 %v3098_v46, %v2777_v25  ;;  %v2767_v29 = vld [vmem:[#allocation4] sm:$0xf]  ;;  %v2806_v25 = vor.u32 %v3104_v50, %v2803_v53 }
 0xcae   :  { %v4175_v38 = vadd.f32 %v1349_v3, %v1304_v32  ;;  %v4177_v41 = vadd.f32 %v1378_v59, %v1333_v33  ;;  %v2769_v32 = vld [vmem:[#allocation4 + $0x8] sm:$0xf0]  ;;  %v2768_v33 = vor.u32 %v3097_v34, %v2767_v29 }
 0xcb2   :  { %v1361_v54 = vpop.f32.mrf.mxu2  ;;  %v1390_v18 = vpop.f32.mrf.mxu3 }
 0xcb3   :  { %v1362_v56 = vadd.f32 %v1361_v54, %v4123_v42  ;;  %v1391_v0 = vadd.f32 %v1390_v18, %v4125_v43  ;;  %v1305_v63 = vpop.f32.mrf.mxu0  ;;  %v1334_v4 = vpop.f32.mrf.mxu1  ;;  %v2772_v54 = vor.u32 %v3096_v35, %v2769_v32 }
 0xcb4   :  { %v1306_v30 = vadd.f32 %v1305_v63, %v4127_v51  ;;  %v1335_v61 = vadd.f32 %v1334_v4, %v4129_v49 }
 0xcb5   :  { %v4183_v39 = vadd.f32 %v1362_v56, %v1291_v2  ;;  %v4185_v31 = vadd.f32 %v1391_v0, %v1320_v1 }
 0xcb6   :  { %v4188_v3 = vadd.f32 %v4132_v19, %v1306_v30  ;;  %v4191_v59 = vadd.f32 %v4135_v48, %v1335_v61 }
 0xcba   :  { %v1363_v9 = vpop.f32.mrf.mxu2  ;;  %v1392_v10 = vpop.f32.mrf.mxu3 }
 0xcbb   :  { %v1364_v13 = vadd.f32 %v1363_v9, %v4123_v42  ;;  %v1393_v2 = vadd.f32 %v1392_v10, %v4125_v43  ;;  %v1484_v1 = vpop.f32.mrf.mxu0  ;;  %v1497_v14 = vpop.f32.mrf.mxu1  ;;  %v3103_v42 = vld [vmem:[#allocation4 + $0x34] sm:$0xf0]  ;;  %v3102_v43 = vld [vmem:[#allocation4 + $0x34] sm:$0xf] }
 0xcbc   :  { %v2792_v49 = vor.u32 %v3103_v42, %v2791_v62  ;;  %v2796_v5 = vor.u32 %v3102_v43, %v2793_v58  ;;  %v3108_v42 = vld [vmem:[#allocation4 + $0x24] sm:$0xf]  ;;  %v2809_v58 = vld [vmem:[#allocation4 + $0x10] sm:$0xf] }
 0xcbd   :  { %v1505_v15 = vadd.f32 %v1364_v13, %v1289_v11  ;;  %v1506_v19 = vadd.f32 %v1393_v2, %v1318_v12  ;;  %v2810_v6 = vor.u32 %v3107_v26, %v2809_v58  ;;  %v2837_v58 = vld [vmem:[#allocation4 + $0x8] sm:$0xf0] }
 0xcbe   :  { %1589 = vmatpush.bf16.msra.mxu2 %v2792_v49  ;;  %1602 = vmatpush.bf16.msra.mxu3 %v2796_v5  ;;  %v2811_v5 = vld [vmem:[#allocation4 + $0x18] sm:$0xf0] }
 0xcbf   :  { %v1507_v44 = vadd.f32 %v1505_v15, %v1484_v1  ;;  %v1508_v48 = vadd.f32 %v1506_v19, %v1497_v14  ;;  %v2814_v60 = vor.u32 %v3106_v17, %v2811_v5 }
 0xcc1   :  { %3207 = vtanh.f32 %v1507_v44 }
 0xcc2   :  { %3209 = vtanh.f32 %v1508_v48  ;;  %1590 = vmatpush.bf16.msra.mxu2 %v2784_v52  ;;  %1603 = vmatpush.bf16.msra.mxu3 %v2788_v22  ;;  %v2801_v52 = vld [vmem:[#allocation4] sm:$0xf]  ;;  %v3105_v22 = vld [vmem:[#allocation4 + $0x4] sm:$0xf0] }
 0xcc3   :  { %v1486_v45 = vpop.f32.mrf.mxu0  ;;  %v1499_v7 = vpop.f32.mrf.mxu1  ;;  %v2802_v46 = vor.u32 %v3105_v22, %v2801_v52 }
 0xcc4   :  { %v2825_v7 = vld [vmem:[#allocation4 + $0x30] sm:$0xf] }
 0xcc6   :  { %1591 = vmatpush.bf16.msra.mxu2 %v2776_v27  ;;  %1604 = vmatpush.bf16.msra.mxu3 %v2780_v28 }
 0xcc7   :  { %v3208_v57 = vpop.eup %3207 }
 0xcc8   :  { %v1511_v55 = vmul.f32 0.5, %v3208_v57  ;;  %v3210_v51 = vpop.eup %3209  ;;  %v3111_v57 = vld [vmem:[#allocation4 + $0x34] sm:$0xf0] }
 0xcc9   :  { %v1513_v63 = vmul.f32 0.5, %v3210_v51 }
 0xcca   :  { %v1512_v40 = vadd.f32 0.5, %v1511_v55  ;;  %1592 = vmatpush.bf16.msra.mxu2 %v2768_v33  ;;  %1605 = vmatpush.bf16.msra.mxu3 %v2772_v54  ;;  %v3110_v55 = vld [vmem:[#allocation4 + $0x34] sm:$0xf] }
 0xccb   :  { %v1514_v4 = vadd.f32 0.5, %v1513_v63 }
 0xccc   :  { %v1516_v16 = vmul.f32 %v3210_v51, %v1512_v40  ;;  %v1515_v18 = vmul.f32 0.0, %v1512_v40  ;;  %v2826_v40 = vor.u32 %v3111_v57, %v2825_v7  ;;  %v2827_v51 = vld [vmem:[#allocation4 + $0x38] sm:$0xf0]  ;;  %v3116_v7 = vld [vmem:[#allocation4 + $0x24] sm:$0xf] }
 0xccd   :  { %v2830_v62 = vor.u32 %v3110_v55, %v2827_v51  ;;  %v3115_v51 = vld [vmem:[#allocation4 + $0x14] sm:$0xf0] }
 0xcce   :  { %1518 = vrot.lane.b32.xlu2 %v1516_v16, %s3314_s3  ;;  %v2817_v16 = vld [vmem:[#allocation4 + $0x20] sm:$0xf]  ;;  %1699 = vmatpush.bf16.msrb.mxu0 %v2826_v40  ;;  %v2843_v40 = vld [vmem:[#allocation4 + $0x10] sm:$0xf] }
 0xccf   :  { %1712 = vmatpush.bf16.msrb.mxu1 %v2830_v62  ;;  %v2844_v62 = vor.u32 %v3115_v51, %v2843_v40 }
 0xd28   :  { %v1519_v56 = vpop.permute.xlu2 %1518 }
 0xd29   :  { %v1521_v0 = vadd.f32 %v1519_v56, %v1515_v18 }
 0xd2b   :  { %3211 = vtanh.f32 %v1521_v0 }
 0xd31   :  { %v3212_v30 = vpop.eup %3211 }
 0xd32   :  { %v4200_v61 = vmul.f32 %v3212_v30, %v1514_v4 }
 0xd34   :  { %v1530_v9 = vpack.c.bf16 %v4200_v61, %v4200_v61 }
 0xd36   :  { %1540 = vrot.lane.b32.xlu0 %v1530_v9, %s3314_s3 }
 0xda8   :  { %v1541_v10 = vpop.permute.xlu0 %1540 }
 0xda9   :  { %2797 = vmatmul.msk.bf16.vlgmr.msra.gmra.mxu2 %vm318_vm1, %v1541_v10  ;;  %2798 = vmatmul.msk.bf16.vlgmr.msra.gmra.mxu3 %vm318_vm1, %v1541_v10 }
 0xe2c   :  { %v1594_v11 = vpop.f32.mrf.mxu2  ;;  %v1607_v12 = vpop.f32.mrf.mxu3 }
 0xe2d   :  { %v1617_v13 = vadd.f32 %v4183_v39, %v1594_v11  ;;  %v1618_v2 = vadd.f32 %v4185_v31, %v1607_v12  ;;  %v3109_v39 = vld [vmem:[#allocation4 + $0x24] sm:$0xf0]  ;;  %v2819_v31 = vld [vmem:[#allocation4 + $0x28] sm:$0xf0] }
 0xe2e   :  { %v2818_v43 = vor.u32 %v3109_v39, %v2817_v16  ;;  %v2822_v49 = vor.u32 %v3108_v42, %v2819_v31  ;;  %v3114_v16 = vld [vmem:[#allocation4 + $0x14] sm:$0xf]  ;;  %v2845_v39 = vld [vmem:[#allocation4 + $0x18] sm:$0xf0]  ;;  %v2835_v31 = vld [vmem:[#allocation4] sm:$0xf] }
 0xe2f   :  { %3213 = vtanh.f32 %v1617_v13  ;;  %v2848_v42 = vor.u32 %v3114_v16, %v2845_v39 }
 0xe30   :  { %3215 = vtanh.f32 %v1618_v2  ;;  %1700 = vmatpush.bf16.msrb.mxu0 %v2818_v43  ;;  %1713 = vmatpush.bf16.msrb.mxu1 %v2822_v49  ;;  %v3113_v43 = vld [vmem:[#allocation4 + $0x4] sm:$0xf0]  ;;  %v3112_v49 = vld [vmem:[#allocation4 + $0x4] sm:$0xf] }
 0xe31   :  { %v2836_v26 = vor.u32 %v3113_v43, %v2835_v31  ;;  %v2840_v17 = vor.u32 %v3112_v49, %v2837_v58 }
 0xe34   :  { %v1596_v1 = vpop.f32.mrf.mxu2  ;;  %v1609_v14 = vpop.f32.mrf.mxu3  ;;  %1701 = vmatpush.bf16.msrb.mxu0 %v2810_v6  ;;  %1714 = vmatpush.bf16.msrb.mxu1 %v2814_v60 }
 0xe35   :  { %v3214_v15 = vpop.eup %3213  ;;  %v2859_v1 = vld [vmem:[#allocation4 + $0x30] sm:$0xf]  ;;  %v3119_v14 = vld [vmem:[#allocation4 + $0x34] sm:$0xf0] }
 0xe36   :  { %v1621_v19 = vmul.f32 0.5, %v3214_v15  ;;  %v3216_v48 = vpop.eup %3215  ;;  %v3118_v15 = vld [vmem:[#allocation4 + $0x34] sm:$0xf] }
 0xe37   :  { %v1623_v34 = vmul.f32 0.5, %v3216_v48 }
 0xe38   :  { %v1622_v44 = vadd.f32 0.5, %v1621_v19  ;;  %1702 = vmatpush.bf16.msrb.mxu0 %v2802_v46  ;;  %1715 = vmatpush.bf16.msrb.mxu1 %v2806_v25  ;;  %v2860_v19 = vor.u32 %v3119_v14, %v2859_v1 }
 0xe39   :  { %v1624_v35 = vadd.f32 0.5, %v1623_v34 }
 0xe3a   :  { %v1626_v45 = vmul.f32 %v3216_v48, %v1622_v44  ;;  %v1625_v27 = vmul.f32 %v1622_v44, %v1521_v0  ;;  %v2861_v44 = vld [vmem:[#allocation4 + $0x38] sm:$0xf0]  ;;  %v2851_v48 = vld [vmem:[#allocation4 + $0x20] sm:$0xf]  ;;  %1809 = vmatpush.bf16.msrb.mxu2 %v2860_v19  ;;  %v3123_v19 = vld [vmem:[#allocation4 + $0x14] sm:$0xf0] }
 0xe3c   :  { %1628 = vrot.lane.b32.xlu1 %v1626_v45, %s3314_s3  ;;  %v2864_v45 = vor.u32 %v3118_v15, %v2861_v44  ;;  %v2877_v15 = vld [vmem:[#allocation4 + $0x10] sm:$0xf]  ;;  %v3122_v44 = vld [vmem:[#allocation4 + $0x14] sm:$0xf] }
 0xe3e   :  { %1822 = vmatpush.bf16.msrb.mxu3 %v2864_v45 }
 0xeae   :  { %v1629_v28 = vpop.permute.xlu1 %1628 }
 0xeaf   :  { %v1631_v29 = vadd.f32 %v1629_v28, %v1625_v27 }
 0xeb1   :  { %3217 = vtanh.f32 %v1631_v29 }
 0xeb7   :  { %v3218_v32 = vpop.eup %3217 }
 0xeb8   :  { %v4210_v33 = vmul.f32 %v3218_v32, %v1624_v35 }
 0xeba   :  { %v1640_v54 = vpack.c.bf16 %v4210_v33, %v4210_v33 }
 0xebc   :  { %1650 = vrot.lane.b32.xlu2 %v1640_v54, %s3314_s3 }
 0xf16   :  { %v1651_v18 = vpop.permute.xlu2 %1650 }
 0xf17   :  { %2831 = vmatmul.msk.bf16.vlgmr.msrb.gmra.mxu0 %vm318_vm1, %v1651_v18  ;;  %2832 = vmatmul.msk.bf16.vlgmr.msrb.gmra.mxu1 %vm318_vm1, %v1651_v18 }
 0xf94   :  { %v1704_v56 = vpop.f32.mrf.mxu0  ;;  %v1717_v0 = vpop.f32.mrf.mxu1 }
 0xf95   :  { %v1727_v63 = vadd.f32 %v4171_v36, %v1704_v56  ;;  %v1728_v4 = vadd.f32 %v4173_v37, %v1717_v0  ;;  %v3117_v36 = vld [vmem:[#allocation4 + $0x24] sm:$0xf0]  ;;  %v2853_v37 = vld [vmem:[#allocation4 + $0x28] sm:$0xf0] }
 0xf96   :  { %v2852_v57 = vor.u32 %v3117_v36, %v2851_v48  ;;  %v2856_v55 = vor.u32 %v3116_v7, %v2853_v37  ;;  %v2879_v48 = vld [vmem:[#allocation4 + $0x18] sm:$0xf0]  ;;  %v2878_v36 = vor.u32 %v3123_v19, %v2877_v15  ;;  %v2869_v7 = vld [vmem:[#allocation4] sm:$0xf]  ;;  %v3121_v37 = vld [vmem:[#allocation4 + $0x4] sm:$0xf0] }
 0xf97   :  { %3219 = vtanh.f32 %v1727_v63  ;;  %v2882_v45 = vor.u32 %v3122_v44, %v2879_v48  ;;  %v2870_v40 = vor.u32 %v3121_v37, %v2869_v7 }
 0xf98   :  { %3221 = vtanh.f32 %v1728_v4  ;;  %1810 = vmatpush.bf16.msrb.mxu2 %v2852_v57  ;;  %1823 = vmatpush.bf16.msrb.mxu3 %v2856_v55  ;;  %v2893_v4 = vld [vmem:[#allocation4 + $0x30] sm:$0xf]  ;;  %v3120_v57 = vld [vmem:[#allocation4 + $0x4] sm:$0xf]  ;;  %v2871_v55 = vld [vmem:[#allocation4 + $0x8] sm:$0xf0] }
 0xf99   :  { %v2874_v51 = vor.u32 %v3120_v57, %v2871_v55 }
 0xf9c   :  { %v1706_v30 = vpop.f32.mrf.mxu0  ;;  %v1719_v9 = vpop.f32.mrf.mxu1  ;;  %1811 = vmatpush.bf16.msrb.mxu2 %v2844_v62  ;;  %1824 = vmatpush.bf16.msrb.mxu3 %v2848_v42 }
 0xf9d   :  { %v3220_v10 = vpop.eup %3219  ;;  %v3127_v30 = vld [vmem:[#allocation4 + $0x34] sm:$0xf0]  ;;  %v3126_v9 = vld [vmem:[#allocation4 + $0x34] sm:$0xf] }
 0xf9e   :  { %v1731_v11 = vmul.f32 0.5, %v3220_v10  ;;  %v3222_v13 = vpop.eup %3221  ;;  %v2894_v10 = vor.u32 %v3127_v30, %v2893_v4  ;;  %v2911_v30 = vld [vmem:[#allocation4 + $0x10] sm:$0xf] }
 0xf9f   :  { %v1733_v52 = vmul.f32 0.5, %v3222_v13 }
 0xfa0   :  { %v1732_v12 = vadd.f32 0.5, %v1731_v11  ;;  %1812 = vmatpush.bf16.msrb.mxu2 %v2836_v26  ;;  %1825 = vmatpush.bf16.msrb.mxu3 %v2840_v17  ;;  %v2895_v11 = vld [vmem:[#allocation4 + $0x38] sm:$0xf0] }
 0xfa1   :  { %v1734_v22 = vadd.f32 0.5, %v1733_v52  ;;  %1919 = vmatpush.bf16.msra.mxu0 %v2894_v10  ;;  %v3130_v10 = vld [vmem:[#allocation4 + $0x14] sm:$0xf] }
 0xfa2   :  { %v1736_v2 = vmul.f32 %v3222_v13, %v1732_v12  ;;  %v1735_v5 = vmul.f32 %v1732_v12, %v1631_v29  ;;  %v2885_v12 = vld [vmem:[#allocation4 + $0x20] sm:$0xf]  ;;  %v2898_v13 = vor.u32 %v3126_v9, %v2895_v11  ;;  %v3131_v9 = vld [vmem:[#allocation4 + $0x14] sm:$0xf0]  ;;  %v2913_v11 = vld [vmem:[#allocation4 + $0x18] sm:$0xf0] }
 0xfa4   :  { %1738 = vrot.lane.b32.xlu0 %v1736_v2, %s3314_s3  ;;  %v3124_v2 = vld [vmem:[#allocation4 + $0x24] sm:$0xf]  ;;  %1932 = vmatpush.bf16.msra.mxu1 %v2898_v13  ;;  %v2903_v13 = vld [vmem:[#allocation4] sm:$0xf] }
0x1016   :  { %v1739_v6 = vpop.permute.xlu0 %1738 }
0x1017   :  { %v1741_v60 = vadd.f32 %v1739_v6, %v1735_v5 }
0x1019   :  { %3223 = vtanh.f32 %v1741_v60 }
0x101f   :  { %v3224_v50 = vpop.eup %3223 }
0x1020   :  { %v4220_v53 = vmul.f32 %v3224_v50, %v1734_v22 }
0x1022   :  { %v1750_v46 = vpack.c.bf16 %v4220_v53, %v4220_v53 }
0x1024   :  { %1760 = vrot.lane.b32.xlu1 %v1750_v46, %s3314_s3 }
0x1096   :  { %v1761_v25 = vpop.permute.xlu1 %1760 }
0x1097   :  { %2865 = vmatmul.msk.bf16.vlgmr.msrb.gmra.mxu2 %vm318_vm1, %v1761_v25  ;;  %2866 = vmatmul.msk.bf16.vlgmr.msrb.gmra.mxu3 %vm318_vm1, %v1761_v25 }
0x111a   :  { %v1814_v27 = vpop.f32.mrf.mxu2  ;;  %v1827_v28 = vpop.f32.mrf.mxu3 }
0x111b   :  { %v1837_v29 = vadd.f32 %v4159_v47, %v1814_v27  ;;  %v1838_v34 = vadd.f32 %v4161_v23, %v1827_v28  ;;  %v3125_v47 = vld [vmem:[#allocation4 + $0x24] sm:$0xf0]  ;;  %v2887_v23 = vld [vmem:[#allocation4 + $0x28] sm:$0xf0] }
0x111c   :  { %v2886_v1 = vor.u32 %v3125_v47, %v2885_v12  ;;  %v2890_v14 = vor.u32 %v3124_v2, %v2887_v23  ;;  %v2912_v12 = vor.u32 %v3131_v9, %v2911_v30  ;;  %v2916_v47 = vor.u32 %v3130_v10, %v2913_v11  ;;  %v3129_v2 = vld [vmem:[#allocation4 + $0x4] sm:$0xf0]  ;;  %v3128_v23 = vld [vmem:[#allocation4 + $0x4] sm:$0xf] }
0x111d   :  { %3225 = vtanh.f32 %v1837_v29  ;;  %v2927_v29 = vld [vmem:[#allocation4 + $0x30] sm:$0xf] }
0x111e   :  { %3227 = vtanh.f32 %v1838_v34  ;;  %1920 = vmatpush.bf16.msra.mxu0 %v2886_v1  ;;  %1933 = vmatpush.bf16.msra.mxu1 %v2890_v14  ;;  %v3135_v34 = vld [vmem:[#allocation4 + $0x34] sm:$0xf0]  ;;  %v2905_v1 = vld [vmem:[#allocation4 + $0x8] sm:$0xf0]  ;;  %v2904_v14 = vor.u32 %v3129_v2, %v2903_v13 }
0x111f   :  { %v2908_v15 = vor.u32 %v3128_v23, %v2905_v1 }
0x1122   :  { %v1816_v35 = vpop.f32.mrf.mxu2  ;;  %v1829_v32 = vpop.f32.mrf.mxu3  ;;  %1921 = vmatpush.bf16.msra.mxu0 %v2878_v36  ;;  %1934 = vmatpush.bf16.msra.mxu1 %v2882_v45 }
0x1123   :  { %v3226_v54 = vpop.eup %3225  ;;  %v3134_v35 = vld [vmem:[#allocation4 + $0x34] sm:$0xf]  ;;  %v2928_v32 = vor.u32 %v3135_v34, %v2927_v29  ;;  %v2945_v29 = vld [vmem:[#allocation4 + $0x10] sm:$0xf]  ;;  %v3139_v34 = vld [vmem:[#allocation4 + $0x14] sm:$0xf0] }
0x1124   :  { %v1841_v18 = vmul.f32 0.5, %v3226_v54  ;;  %v3228_v0 = vpop.eup %3227  ;;  %v2929_v54 = vld [vmem:[#allocation4 + $0x38] sm:$0xf0] }
0x1125   :  { %v1843_v42 = vmul.f32 0.5, %v3228_v0  ;;  %2029 = vmatpush.bf16.msra.mxu2 %v2928_v32  ;;  %v2947_v32 = vld [vmem:[#allocation4 + $0x18] sm:$0xf0] }
0x1126   :  { %v1842_v56 = vadd.f32 0.5, %v1841_v18  ;;  %1922 = vmatpush.bf16.msra.mxu0 %v2870_v40  ;;  %1935 = vmatpush.bf16.msra.mxu1 %v2874_v51  ;;  %v2919_v18 = vld [vmem:[#allocation4 + $0x20] sm:$0xf] }
0x1127   :  { %v1844_v31 = vadd.f32 0.5, %v1843_v42 }
0x1128   :  { %v1846_v63 = vmul.f32 %v3228_v0, %v1842_v56  ;;  %v1845_v16 = vmul.f32 %v1842_v56, %v1741_v60  ;;  %v2932_v56 = vor.u32 %v3134_v35, %v2929_v54  ;;  %v3132_v0 = vld [vmem:[#allocation4 + $0x24] sm:$0xf]  ;;  %v3138_v35 = vld [vmem:[#allocation4 + $0x14] sm:$0xf]  ;;  %v2946_v54 = vor.u32 %v3139_v34, %v2945_v29 }
0x112a   :  { %1848 = vrot.lane.b32.xlu2 %v1846_v63, %s3314_s3  ;;  %2042 = vmatpush.bf16.msra.mxu3 %v2932_v56  ;;  %v3137_v56 = vld [vmem:[#allocation4 + $0x4] sm:$0xf0] }
0x1184   :  { %v1849_v39 = vpop.permute.xlu2 %1848 }
0x1185   :  { %v1851_v62 = vadd.f32 %v1849_v39, %v1845_v16 }
0x1187   :  { %3229 = vtanh.f32 %v1851_v62 }
0x118d   :  { %v3230_v43 = vpop.eup %3229 }
0x118e   :  { %v4230_v49 = vmul.f32 %v3230_v43, %v1844_v31 }
0x1190   :  { %v1860_v58 = vpack.c.bf16 %v4230_v49, %v4230_v49 }
0x1192   :  { %1870 = vrot.lane.b32.xlu0 %v1860_v58, %s3314_s3 }
0x1204   :  { %v1871_v26 = vpop.permute.xlu0 %1870 }
0x1205   :  { %2899 = vmatmul.msk.bf16.vlgmr.msra.gmra.mxu0 %vm318_vm1, %v1871_v26  ;;  %2900 = vmatmul.msk.bf16.vlgmr.msra.gmra.mxu1 %vm318_vm1, %v1871_v26 }
0x1282   :  { %v1924_v17 = vpop.f32.mrf.mxu0  ;;  %v1937_v5 = vpop.f32.mrf.mxu1 }
0x1283   :  { %v1947_v6 = vadd.f32 %v4151_v20, %v1924_v17  ;;  %v1948_v60 = vadd.f32 %v4153_v21, %v1937_v5  ;;  %v3133_v20 = vld [vmem:[#allocation4 + $0x24] sm:$0xf0]  ;;  %v2921_v21 = vld [vmem:[#allocation4 + $0x28] sm:$0xf0]  ;;  %v2961_v5 = vld [vmem:[#allocation4 + $0x30] sm:$0xf] }
0x1284   :  { %v2920_v63 = vor.u32 %v3133_v20, %v2919_v18  ;;  %v2924_v4 = vor.u32 %v3132_v0, %v2921_v21  ;;  %v2950_v18 = vor.u32 %v3138_v35, %v2947_v32  ;;  %v2937_v20 = vld [vmem:[#allocation4] sm:$0xf]  ;;  %v3136_v0 = vld [vmem:[#allocation4 + $0x4] sm:$0xf]  ;;  %v2939_v21 = vld [vmem:[#allocation4 + $0x8] sm:$0xf0] }
0x1285   :  { %3231 = vtanh.f32 %v1947_v6  ;;  %v3143_v6 = vld [vmem:[#allocation4 + $0x34] sm:$0xf0] }
0x1286   :  { %3233 = vtanh.f32 %v1948_v60  ;;  %2030 = vmatpush.bf16.msra.mxu2 %v2920_v63  ;;  %2043 = vmatpush.bf16.msra.mxu3 %v2924_v4  ;;  %v3142_v60 = vld [vmem:[#allocation4 + $0x34] sm:$0xf]  ;;  %v2938_v63 = vor.u32 %v3137_v56, %v2937_v20  ;;  %v2942_v4 = vor.u32 %v3136_v0, %v2939_v21 }
0x128a   :  { %v1926_v52 = vpop.f32.mrf.mxu0  ;;  %v1939_v22 = vpop.f32.mrf.mxu1  ;;  %2031 = vmatpush.bf16.msra.mxu2 %v2912_v12  ;;  %2044 = vmatpush.bf16.msra.mxu3 %v2916_v47 }
0x128b   :  { %v3232_v50 = vpop.eup %3231  ;;  %v2962_v52 = vor.u32 %v3143_v6, %v2961_v5  ;;  %v2963_v22 = vld [vmem:[#allocation4 + $0x38] sm:$0xf0] }
0x128c   :  { %v1951_v46 = vmul.f32 0.5, %v3232_v50  ;;  %v3234_v27 = vpop.eup %3233  ;;  %v2953_v50 = vld [vmem:[#allocation4 + $0x20] sm:$0xf]  ;;  %v2981_v6 = vld [vmem:[#allocation4 + $0x18] sm:$0xf0] }
0x128d   :  { %v1953_v36 = vmul.f32 0.5, %v3234_v27  ;;  %2139 = vmatpush.bf16.msrb.mxu0 %v2962_v52 }
0x128e   :  { %v1952_v25 = vadd.f32 0.5, %v1951_v46  ;;  %2032 = vmatpush.bf16.msra.mxu2 %v2904_v14  ;;  %2045 = vmatpush.bf16.msra.mxu3 %v2908_v15  ;;  %v2966_v46 = vor.u32 %v3142_v60, %v2963_v22 }
0x128f   :  { %v1954_v45 = vadd.f32 0.5, %v1953_v36 }
0x1290   :  { %v1956_v28 = vmul.f32 %v3234_v27, %v1952_v25  ;;  %v1955_v19 = vmul.f32 %v1952_v25, %v1851_v62  ;;  %v3140_v25 = vld [vmem:[#allocation4 + $0x24] sm:$0xf]  ;;  %2152 = vmatpush.bf16.msrb.mxu1 %v2966_v46  ;;  %v3145_v46 = vld [vmem:[#allocation4 + $0x4] sm:$0xf0] }
0x1292   :  { %1958 = vrot.lane.b32.xlu1 %v1956_v28, %s3314_s3 }
0x1304   :  { %v1959_v44 = vpop.permute.xlu1 %1958 }
0x1305   :  { %v1961_v48 = vadd.f32 %v1959_v44, %v1955_v19 }
0x1307   :  { %3235 = vtanh.f32 %v1961_v48 }
0x130d   :  { %v3236_v7 = vpop.eup %3235 }
0x130e   :  { %v4240_v37 = vmul.f32 %v3236_v7, %v1954_v45 }
0x1310   :  { %v1970_v57 = vpack.c.bf16 %v4240_v37, %v4240_v37 }
0x1312   :  { %1980 = vrot.lane.b32.xlu2 %v1970_v57, %s3314_s3 }
0x136c   :  { %v1981_v55 = vpop.permute.xlu2 %1980 }
0x136d   :  { %2933 = vmatmul.msk.bf16.vlgmr.msra.gmra.mxu2 %vm318_vm1, %v1981_v55  ;;  %2934 = vmatmul.msk.bf16.vlgmr.msra.gmra.mxu3 %vm318_vm1, %v1981_v55 }
0x13f0   :  { %v2034_v40 = vpop.f32.mrf.mxu2  ;;  %v2047_v51 = vpop.f32.mrf.mxu3 }
0x13f1   :  { %v2057_v16 = vadd.f32 %v4163_v8, %v2034_v40  ;;  %v2058_v39 = vadd.f32 %v4165_v24, %v2047_v51  ;;  %v3141_v8 = vld [vmem:[#allocation4 + $0x24] sm:$0xf0]  ;;  %v2955_v24 = vld [vmem:[#allocation4 + $0x28] sm:$0xf0]  ;;  %v3150_v40 = vld [vmem:[#allocation4 + $0x34] sm:$0xf] }
0x13f2   :  { %v2954_v27 = vor.u32 %v3141_v8, %v2953_v50  ;;  %v2958_v28 = vor.u32 %v3140_v25, %v2955_v24  ;;  %v2971_v8 = vld [vmem:[#allocation4] sm:$0xf]  ;;  %v3144_v25 = vld [vmem:[#allocation4 + $0x4] sm:$0xf]  ;;  %v2973_v24 = vld [vmem:[#allocation4 + $0x8] sm:$0xf0] }
0x13f3   :  { %3237 = vtanh.f32 %v2057_v16  ;;  %v2997_v16 = vld [vmem:[#allocation4 + $0x38] sm:$0xf0]  ;;  %v2976_v29 = vor.u32 %v3144_v25, %v2973_v24 }
0x13f4   :  { %3239 = vtanh.f32 %v2058_v39  ;;  %2140 = vmatpush.bf16.msrb.mxu0 %v2954_v27  ;;  %2153 = vmatpush.bf16.msrb.mxu1 %v2958_v28  ;;  %v2987_v39 = vld [vmem:[#allocation4 + $0x20] sm:$0xf]  ;;  %v2972_v28 = vor.u32 %v3145_v46, %v2971_v8 }
0x13f8   :  { %v2036_v62 = vpop.f32.mrf.mxu2  ;;  %v2049_v42 = vpop.f32.mrf.mxu3  ;;  %2141 = vmatpush.bf16.msrb.mxu0 %v2946_v54  ;;  %2154 = vmatpush.bf16.msrb.mxu1 %v2950_v18 }
0x13f9   :  { %v3238_v31 = vpop.eup %3237  ;;  %v3149_v62 = vld [vmem:[#allocation4 + $0x24] sm:$0xf0]  ;;  %v3000_v42 = vor.u32 %v3150_v40, %v2997_v16  ;;  %v3158_v16 = vld [vmem:[%s4330_s8] ss:$0 sm:$0xff] }
0x13fa   :  { %v2061_v43 = vmul.f32 0.5, %v3238_v31  ;;  %v3240_v26 = vpop.eup %3239  ;;  %v3148_v31 = vld [vmem:[#allocation4 + $0x24] sm:$0xf] }
0x13fb   :  { %v2063_v11 = vmul.f32 0.5, %v3240_v26  ;;  %2262 = vmatpush.bf16.msrb.mxu3 %v3000_v42 }
0x13fc   :  { %v2062_v58 = vadd.f32 0.5, %v2061_v43  ;;  %2142 = vmatpush.bf16.msrb.mxu0 %v2938_v63  ;;  %2155 = vmatpush.bf16.msrb.mxu1 %v2942_v4  ;;  %v2989_v43 = vld [vmem:[#allocation4 + $0x28] sm:$0xf0] }
0x13fd   :  { %v2064_v12 = vadd.f32 0.5, %v2063_v11 }
0x13fe   :  { %v2066_v17 = vmul.f32 %v3240_v26, %v2062_v58  ;;  %v2065_v30 = vmul.f32 %v2062_v58, %v1961_v48  ;;  %v2988_v58 = vor.u32 %v3149_v62, %v2987_v39  ;;  %v2992_v26 = vor.u32 %v3148_v31, %v2989_v43 }
0x1400   :  { %2068 = vrot.lane.b32.xlu0 %v2066_v17, %s3314_s3  ;;  %v3147_v17 = vld [vmem:[#allocation4 + $0x14] sm:$0xf0]  ;;  %2263 = vmatpush.bf16.msrb.mxu3 %v2992_v26 }
0x1472   :  { %v2069_v9 = vpop.permute.xlu0 %2068 }
0x1473   :  { %v2071_v10 = vadd.f32 %v2069_v9, %v2065_v30 }
0x1475   :  { %3241 = vtanh.f32 %v2071_v10 }
0x147b   :  { %v3242_v47 = vpop.eup %3241 }
0x147c   :  { %v2073_v13 = vmul.f32 %v3242_v47, %v2064_v12 }
0x147e   :  { %v2080_v2 = vpack.c.bf16 %v2073_v13, %v2073_v13 }
0x1480   :  { %2090 = vrot.lane.b32.xlu1 %v2080_v2, %s3314_s3 }
0x14f2   :  { %v2091_v23 = vpop.permute.xlu1 %2090 }
0x14f3   :  { %2967 = vmatmul.msk.bf16.vlgmr.msrb.gmra.mxu0 %vm318_vm1, %v2091_v23  ;;  %2968 = vmatmul.msk.bf16.vlgmr.msrb.gmra.mxu1 %vm318_vm1, %v2091_v23  ;;  %v2306_v23 = vld [vmem:[%s4329_s7 + $0x28] sm:$0xff] }
0x1570   :  { %v2144_v1 = vpop.f32.mrf.mxu0  ;;  %v2157_v14 = vpop.f32.mrf.mxu1 }
0x1571   :  { %v2167_v15 = vadd.f32 %v4175_v38, %v2144_v1  ;;  %v2168_v19 = vadd.f32 %v4177_v41, %v2157_v14  ;;  %v2995_v38 = vld [vmem:[#allocation4 + $0x30] sm:$0xf]  ;;  %v3151_v41 = vld [vmem:[#allocation4 + $0x34] sm:$0xf0] }
0x1572   :  { %v2996_v51 = vor.u32 %v3151_v41, %v2995_v38 }
0x1573   :  { %3243 = vtanh.f32 %v2167_v15 }
0x1574   :  { %3245 = vtanh.f32 %v2168_v19  ;;  %2249 = vmatpush.bf16.msrb.mxu2 %v2996_v51 }
0x1578   :  { %v2146_v44 = vpop.f32.mrf.mxu0  ;;  %v2159_v48 = vpop.f32.mrf.mxu1  ;;  %2250 = vmatpush.bf16.msrb.mxu2 %v2988_v58 }
0x1579   :  { %v3244_v36 = vpop.eup %3243 }
0x157a   :  { %v2171_v45 = vmul.f32 0.5, %v3244_v36  ;;  %v3246_v57 = vpop.eup %3245 }
0x157b   :  { %v2173_v27 = vmul.f32 0.5, %v3246_v57 }
0x157c   :  { %v2172_v7 = vadd.f32 0.5, %v2171_v45  ;;  %v2304_v45 = vld [vmem:[%s4329_s7 + $0x18] sm:$0xff] }
0x157d   :  { %v2174_v35 = vadd.f32 0.5, %v2173_v27 }
0x157e   :  { %v2176_v55 = vmul.f32 %v3246_v57, %v2172_v7  ;;  %v2175_v5 = vmul.f32 %v2172_v7, %v2071_v10  ;;  %v2303_v7 = vld [vmem:[%s4329_s7 + $0x10] sm:$0xff]  ;;  %v2302_v57 = vld [vmem:[%s4329_s7 + $0x8] sm:$0xff] }
0x1580   :  { %2178 = vrot.lane.b32.xlu2 %v2176_v55, %s3314_s3 }
0x1588   :  { %1525 = vrot.lane.b32.xlu2 %v4200_v61, %s3314_s3  ;;  %v2979_v61 = vld [vmem:[#allocation4 + $0x10] sm:$0xf] }
0x1589   :  { %v2980_v22 = vor.u32 %v3147_v17, %v2979_v61 }
0x158b   :  { %2251 = vmatpush.bf16.msrb.mxu2 %v2980_v22 }
0x158f   :  { %2252 = vmatpush.bf16.msrb.mxu2 %v2972_v28 }
0x1590   :  { %1745 = vrot.lane.b32.xlu2 %v4220_v53, %s3314_s3  ;;  %v3146_v53 = vld [vmem:[#allocation4 + $0x14] sm:$0xf] }
0x1591   :  { %v2984_v50 = vor.u32 %v3146_v53, %v2981_v6 }
0x1593   :  { %2264 = vmatpush.bf16.msrb.mxu3 %v2984_v50 }
0x1597   :  { %2265 = vmatpush.bf16.msrb.mxu3 %v2976_v29 }
0x1598   :  { %2075 = vrot.lane.b32.xlu2 %v2073_v13, %s3314_s3 }
0x15da   :  { %v2179_v60 = vpop.permute.xlu2 %2178 }
0x15db   :  { %v2181_v52 = vadd.f32 %v2179_v60, %v2175_v5 }
0x15dd   :  { %3247 = vtanh.f32 %v2181_v52 }
0x15e2   :  { %v1526_v34 = vpop.permute.xlu2 %1525 }
0x15e3   :  { %v3248_v32 = vpop.eup %3247  ;;  %1528 = vst.msk [vmem:[#allocation3] sm:$0xff] %vm375_vm2, %v1526_v34 }
0x15e4   :  { %1529 = vst.msk [vmem:[#allocation3 + $0x38] sm:$0xff] %vm377_vm3, %v1526_v34  ;;  %v2183_v54 = vmul.f32 %v3248_v32, %v2174_v35 }
0x15e6   :  { %v2190_v18 = vpack.c.bf16 %v2183_v54, %v2183_v54 }
0x15e8   :  { %2200 = vrot.lane.b32.xlu0 %v2190_v18, %s3314_s3 }
0x15ea   :  { %v1746_v20 = vpop.permute.xlu2 %1745 }
0x15eb   :  { %1748 = vst.msk [vmem:[#allocation3 + $0x10] sm:$0xff] %vm375_vm2, %v1746_v20 }
0x15ec   :  { %1749 = vst.msk [vmem:[#allocation3 + $0x28] sm:$0xff] %vm377_vm3, %v1746_v20 }
0x15f2   :  { %v2076_v56 = vpop.permute.xlu2 %2075 }
0x15f3   :  { %2078 = vst.msk [vmem:[#allocation3 + $0x28] sm:$0xff] %vm375_vm2, %v2076_v56 }
0x15f4   :  { %2079 = vst.msk [vmem:[#allocation3 + $0x10] sm:$0xff] %vm377_vm3, %v2076_v56 }
0x165a   :  { %v2201_v0 = vpop.permute.xlu0 %2200 }
0x165b   :  { %3001 = vmatmul.msk.bf16.vlgmr.msrb.gmra.mxu2 %vm318_vm1, %v2201_v0  ;;  %3002 = vmatmul.msk.bf16.vlgmr.msrb.gmra.mxu3 %vm318_vm1, %v2201_v0 }
0x16de   :  { %v2254_v21 = vpop.f32.mrf.mxu2  ;;  %v2267_v63 = vpop.f32.mrf.mxu3 }
0x16df   :  { %v2277_v4 = vadd.f32 %v4188_v3, %v2254_v21  ;;  %v2278_v30 = vadd.f32 %v4191_v59, %v2267_v63  ;;  %v2308_v3 = vld [vmem:[%s4329_s7 + $0x38] sm:$0xff]  ;;  %v2307_v59 = vld [vmem:[%s4329_s7 + $0x30] sm:$0xff] }
0x16e0   :  { %2324 = vmatpush.msra.mxu0 %v2308_v3 }
0x16e1   :  { %3249 = vtanh.f32 %v2277_v4 }
0x16e2   :  { %3251 = vtanh.f32 %v2278_v30  ;;  %2325 = vmatpush.msra.mxu0 %v2307_v59 }
0x16e4   :  { %2326 = vmatpush.msra.mxu0 %v2306_v23 }
0x16e6   :  { %v2256_v9 = vpop.f32.mrf.mxu2  ;;  %v2269_v10 = vpop.f32.mrf.mxu3 }
0x16e7   :  { %v3250_v11 = vpop.eup %3249 }
0x16e8   :  { %v2281_v12 = vmul.f32 0.5, %v3250_v11  ;;  %v3252_v13 = vpop.eup %3251 }
0x16e9   :  { %v2283_v15 = vmul.f32 0.5, %v3252_v13 }
0x16ea   :  { %v2282_v47 = vadd.f32 0.5, %v2281_v12 }
0x16eb   :  { %v2284_v44 = vadd.f32 0.5, %v2283_v15 }
0x16ec   :  { %v2286_v2 = vmul.f32 %v3252_v13, %v2282_v47  ;;  %v2285_v1 = vmul.f32 %v2282_v47, %v2181_v52 }
0x16ee   :  { %2288 = vrot.lane.b32.xlu1 %v2286_v2, %s3314_s3 }
0x16f6   :  { %1635 = vrot.lane.b32.xlu1 %v4210_v33, %s3314_s3  ;;  %v2305_v33 = vld [vmem:[%s4329_s7 + $0x20] sm:$0xff] }
0x16f7   :  { %2327 = vmatpush.msra.mxu0 %v2305_v33 }
0x16f9   :  { %2328 = vmatpush.msra.mxu0 %v2304_v45 }
0x16fb   :  { %2329 = vmatpush.msra.mxu0 %v2303_v7 }
0x16fd   :  { %2330 = vmatpush.msra.mxu0 %v2302_v57 }
0x16fe   :  { %1965 = vrot.lane.b32.xlu1 %v4240_v37, %s3314_s3 }
0x1760   :  { %v2289_v14 = vpop.permute.xlu1 %2288 }
0x1761   :  { %v2291_v37 = vadd.f32 %v2289_v14, %v2285_v1 }
0x1763   :  { %3253 = vtanh.f32 %v2291_v37 }
0x1768   :  { %v1636_v19 = vpop.permute.xlu1 %1635 }
0x1769   :  { %v3254_v48 = vpop.eup %3253  ;;  %1638 = vst.msk [vmem:[#allocation3 + $0x8] sm:$0xff] %vm375_vm2, %v1636_v19 }
0x176a   :  { %1639 = vst.msk [vmem:[#allocation3 + $0x30] sm:$0xff] %vm377_vm3, %v1636_v19  ;;  %v2293_v36 = vmul.f32 %v3254_v48, %v2284_v44 }
0x176c   :  { %2295 = vrot.lane.b32.xlu0 %v2293_v36, %s3314_s3 }
0x1770   :  { %v1966_v40 = vpop.permute.xlu1 %1965 }
0x1774   :  { %1855 = vrot.lane.b32.xlu0 %v4230_v49, %s3314_s3  ;;  %v2301_v49 = vld [vmem:[%s4329_s7] sm:$0xff] }
0x1775   :  { %2331 = vmatpush.msra.mxu0 %v2301_v49 }
0x177c   :  { %2185 = vrot.lane.b32.xlu0 %v2183_v54, %s3314_s3 }
0x17de   :  { %v2296_v55 = vpop.permute.xlu0 %2295 }
0x17df   :  { %2298 = vst.msk [vmem:[#allocation3 + $0x38] sm:$0xff] %vm375_vm2, %v2296_v55 }
0x17e0   :  { %2299 = vst.msk [vmem:[#allocation3] sm:$0xff] %vm377_vm3, %v2296_v55 }
0x17e6   :  { %v1856_v38 = vpop.permute.xlu0 %1855  ;;  %v2300_v41 = vld [vmem:[#allocation3 + $0x38] sm:$0xff] }
0x17e7   :  { %1858 = vst.msk [vmem:[#allocation3 + $0x18] sm:$0xff] %vm375_vm2, %v1856_v38  ;;  %3003 = vmatmul.msk.f32.vlgmr.msra.gmra.mxu0 %vm318_vm1, %v2300_v41 }
0x17e8   :  { %1859 = vst.msk [vmem:[#allocation3 + $0x20] sm:$0xff] %vm377_vm3, %v1856_v38 }
0x17e9   :  { %1968 = vst.msk [vmem:[#allocation3 + $0x20] sm:$0xff] %vm375_vm2, %v1966_v40 }
0x17ea   :  { %1969 = vst.msk [vmem:[#allocation3 + $0x18] sm:$0xff] %vm377_vm3, %v1966_v40 }
0x17ee   :  { %v2186_v51 = vpop.permute.xlu0 %2185 }
0x17ef   :  { %2188 = vst.msk [vmem:[#allocation3 + $0x30] sm:$0xff] %vm375_vm2, %v2186_v51 }
0x17f0   :  { %2189 = vst.msk [vmem:[#allocation3 + $0x8] sm:$0xff] %vm377_vm3, %v2186_v51 }
0x1864   :  { %v2333_v39 = vpop.f32.mrf.mxu0 }
0x1865   :  { %v2334_v62 = vadd.f32 %v3158_v16, %v2333_v39 }
0x1867   :  { %vm2336_vm4 = vcmp.ge.f32.partialorder %v2334_v62, 0.0  ;;  %v2337_v42 = vmul.f32 0.01, %v2334_v62 }
0x1869   :  { %v2338_v31 = vsel %vm2336_vm4, %v2334_v62, %v2337_v42 }
0x186a   :  { %v2339_v43 = vmul.f32 0.5, %v2338_v31 }
0x186c   :  { %3255 = vtanh.f32 %v2339_v43 }
0x1872   :  { %v3256_v58 = vpop.eup %3255 }
0x1873   :  { %v2341_v26 = vmul.f32 0.5, %v3256_v58 }
0x1875   :  { %v2342_v61 = vadd.f32 0.5, %v2341_v26 }
0x1877   :  { %2344 = vst.msk [vmem:[%s4331_s9] sm:$0xff] %vm2343_vm5, %v2342_v61 }
0x1878   :  { %2349 = vsyncpa [#allocation5], 1 }
0x1879   :  { %2350 = vsyncpa [#allocation7], 1 }

</bundles_post_ra>
